<compile_context>
chip_gen: v7x
topology: tpu7x:2x2x1
jax: 0.10.0
libtpu: 0.0.40
codegen_flags: <defaults>
</compile_context>

<pallas_src>
import jax
import jax.numpy as jnp
from jax.experimental import pallas as pl
from jax.experimental.pallas import tpu as pltpu


def _round_up(x, m):
    return (x + m - 1) // m * m


# ---------------------------------------------------------------------------
# Fused forward kernel
# ---------------------------------------------------------------------------
def _make_fused_kernel(B, H, W, CP):
    """Builds the fused Discriminator kernel for a fixed (B, H, W, CP)."""
    S = (H // 16) * (W // 16)                      # spatial size after conv4

    def conv_block(a_prev, Hi, Wi, pe, po, w_ref, b_ref, act):
        """One Conv2d(k=4, s=2, p=1) layer, everything VMEM-resident.

        a_prev : (B*Hi*Wi, CP) f32 value, rows ordered (b, h, w).
        pe/po  : scratch refs (B, Hi//2 + 1, Wi + 2, CP): spatially padded
                 input split by padded-row parity (even / odd rows).
        w_ref  : (16, CP, CP) bf16, tap-major (kh*4 + kw).
        b_ref  : (1, CP) f32.
        Returns (B*Ho*Wo, CP) f32, rows ordered (b, i, j).
        """
        Ho, Wo = Hi // 2, Wi // 2

        # Scatter the previous activation into the padded, row-parity-split
        # scratches (static indices only; the H-parity is resolved on the
        # write side so reads only ever stride along the sublane (W) dim).
        pe[...] = jnp.zeros_like(pe)
        po[...] = jnp.zeros_like(po)
        for b in range(B):
            base = b * Hi * Wi
            for h in range(Hi):
                p = h + 1                           # padded row index
                tgt = pe if p % 2 == 0 else po
                tgt[b, p // 2, 1:1 + Wi, :] = a_prev[base + h * Wi:
                                                     base + (h + 1) * Wi, :]

        # 16 shifted taps, each an (M, CP) x (CP, CP) MXU matmul
        # (bf16 inputs, f32 accumulation kept in vregs).
        M = B * Ho * Wo
        acc = jnp.zeros((M, CP), jnp.float32)
        for kh in range(4):
            src = pe if kh % 2 == 0 else po
            for kw in range(4):
                slab = src[:, pl.ds(kh // 2, Ho), pl.ds(kw, Wo, stride=2), :]
                lhs = slab.reshape(M, CP).astype(jnp.bfloat16)
                acc = acc + jnp.dot(lhs, w_ref[kh * 4 + kw],
                                    preferred_element_type=jnp.float32)
        y = acc + b_ref[...]
        if act == "lrelu":
            return jnp.where(y > 0, y, 0.2 * y)
        return jax.nn.sigmoid(y)

    def kernel(p1_ref, w1_ref, b1_ref, w2_ref, b2_ref, w3_ref, b3_ref,
               w4_ref, b4_ref, fcw_ref, fcb_ref, o_ref,
               pe2, po2, pe3, po3, pe4, po4):
        # ---- layer 1: pre-gathered patches (tiny network input) -> one
        #      lane-dense GEMM (K already a multiple of 128).
        a1 = jnp.dot(p1_ref[...], w1_ref[...],
                     preferred_element_type=jnp.float32) + b1_ref[...]
        a1 = jnp.where(a1 > 0, a1, 0.2 * a1)        # (B*(H/2)*(W/2), CP)

        # ---- layers 2..4: in-kernel patch gathering, activations never
        #      leave VMEM.
        a2 = conv_block(a1, H // 2, W // 2, pe2, po2, w2_ref, b2_ref, "lrelu")
        a3 = conv_block(a2, H // 4, W // 4, pe3, po3, w3_ref, b3_ref, "lrelu")
        a4 = conv_block(a3, H // 8, W // 8, pe4, po4, w4_ref, b4_ref, "sigmoid")

        # ---- flatten + Linear + Sigmoid as ONE lane-dense GEMM.  fcw is
        #      packed flat (S*CP, CP) in the wrapper; for S == 1 (16x16 imgs)
        #      the reshape below is a no-op.
        lhs = a4.reshape(B, S * CP).astype(jnp.bfloat16)
        logits = jnp.dot(lhs, fcw_ref[...],
                         preferred_element_type=jnp.float32) + fcb_ref[...]
        o_ref[...] = jax.nn.sigmoid(logits)

    return kernel


# ---------------------------------------------------------------------------
# Weight packing (permute + zero-pad the small weights, not the activations)
# ---------------------------------------------------------------------------
def _pack_conv_weight(w, cin_pad, cout_pad):
    """(Cout, Cin, 4, 4) -> (16, cin_pad, cout_pad), tap order (kh, kw, ci)."""
    co, ci = w.shape[0], w.shape[1]
    wp = jnp.zeros((4, 4, cin_pad, cout_pad), jnp.float32)
    wp = wp.at[:, :, :ci, :co].set(jnp.transpose(w, (2, 3, 1, 0)))
    return wp.reshape(16, cin_pad, cout_pad)


def _pack_bias(b, cout_pad):
    return jnp.zeros((1, cout_pad), jnp.float32).at[0, :b.shape[0]].set(b)


# ---------------------------------------------------------------------------
# Discriminator forward (matches the PyTorch module semantics)
# ---------------------------------------------------------------------------
def discriminator_forward(params, x_nchw):
    """x_nchw: (B, C, H, W) float32, same convention as the PyTorch module."""
    B, C, H, W = x_nchw.shape
    assert H % 16 == 0 and W % 16 == 0, "H and W must be multiples of 16"
    dim = params["convs"][0]["w"].shape[0]

    CP = _round_up(8 * dim, 128)        # lane-dense channel padding
    CIN_P = _round_up(max(C, 1), 8)     # layer-1 input pad -> 16*CIN_P % 128 == 0
    Ho1, Wo1 = H // 2, W // 2

    # NCHW -> NHWC once; pad channels + 1-pixel spatial pad (cheap glue on the
    # small network input only).
    x = jnp.transpose(x_nchw, (0, 2, 3, 1)).astype(jnp.float32)
    x = jnp.pad(x, ((0, 0), (1, 1), (1, 1), (0, CIN_P - C)))

    # Layer-1 im2col in (kh, kw, ci) order -- NO activation transpose; the
    # weight is permuted instead.
    patches = [x[:, kh:kh + 2 * Ho1:2, kw:kw + 2 * Wo1:2, :]
               for kh in range(4) for kw in range(4)]
    p1 = jnp.stack(patches, axis=3).reshape(B * Ho1 * Wo1, 16 * CIN_P)
    p1 = p1.astype(jnp.bfloat16)

    # Conv weights: bf16 for the MXU, biases stay f32.
    w1 = _pack_conv_weight(params["convs"][0]["w"], CIN_P, CP)
    w1 = w1.reshape(16 * CIN_P, CP).astype(jnp.bfloat16)
    b1 = _pack_bias(params["convs"][0]["b"], CP)
    wb = []
    for l in range(1, 4):
        wb.append(_pack_conv_weight(params["convs"][l]["w"], CP, CP)
                  .astype(jnp.bfloat16))
        wb.append(_pack_bias(params["convs"][l]["b"], CP))

    # FC weight: PyTorch flattens NCHW as (c, i, j); remap onto the kernel's
    # (i, j, padded-c) layout and pack FLAT so the kernel does a single GEMM.
    # Padded feature rows are zero.
    S = (H // 16) * (W // 16)
    fcw = jnp.zeros((S, CP, CP), jnp.float32)
    fcw = fcw.at[:, :8 * dim, 0].set(params["fc_w"].reshape(8 * dim, S).T)
    fcw = fcw.reshape(S * CP, CP).astype(jnp.bfloat16)
    fcb = jnp.zeros((1, CP), jnp.float32).at[0, 0].set(params["fc_b"][0])

    # Padded, row-parity-split scratch for conv layers 2..4.
    scratch = []
    for hi, wi in ((H // 2, W // 2), (H // 4, W // 4), (H // 8, W // 8)):
        shp = (B, hi // 2 + 1, wi + 2, CP)
        scratch += [pltpu.VMEM(shp, jnp.float32), pltpu.VMEM(shp, jnp.float32)]

    kernel = _make_fused_kernel(B, H, W, CP)
    out = pl.pallas_call(
        kernel,
        out_shape=jax.ShapeDtypeStruct((B, CP), jnp.float32),
        in_specs=[pl.BlockSpec(memory_space=pltpu.MemorySpace.VMEM)] * 11,
        out_specs=pl.BlockSpec(memory_space=pltpu.MemorySpace.VMEM),
        scratch_shapes=scratch,
    )(p1, w1, b1, *wb, fcw, fcb)

    return out[:, :1]            # column 0 holds the real probability


# ---------------------------------------------------------------------------
# Deterministic synthetic parameters (no checkpoint loading)
# ---------------------------------------------------------------------------
def init_discriminator_params(key, img_size, dim):
    h, w, c = img_size
    assert h % 16 == 0 and w % 16 == 0
    chans = [c, dim, 2 * dim, 4 * dim, 8 * dim]
    keys = jax.random.split(key, 5)
    convs = []
    for i in range(4):
        wk, bk = jax.random.split(keys[i])
        convs.append({
            "w": 0.05 * jax.random.normal(wk, (chans[i + 1], chans[i], 4, 4),
                                          jnp.float32),
            "b": 0.05 * jax.random.normal(bk, (chans[i + 1],), jnp.float32),
        })
    output_size = int(8 * dim * (h / 16) * (w / 16))
    wk, bk = jax.random.split(keys[4])
    return {
        "convs": convs,
        "fc_w": 0.05 * jax.random.normal(wk, (output_size, 1), jnp.float32),
        "fc_b": 0.05 * jax.random.normal(bk, (1,), jnp.float32),
    }


# ---------------------------------------------------------------------------
# Plain-JAX reference (used only for the correctness check)
# ---------------------------------------------------------------------------
def _reference_forward(params, x_nchw):
    x = x_nchw.astype(jnp.float32)
    for i, cp in enumerate(params["convs"]):
        x = jax.lax.conv_general_dilated(
            x, cp["w"], window_strides=(2, 2), padding=((1, 1), (1, 1)),
            dimension_numbers=("NCHW", "OIHW", "NCHW"))
        x = x + cp["b"][None, :, None, None]
        x = jnp.where(x > 0, x, 0.2 * x) if i < 3 else jax.nn.sigmoid(x)
    flat = x.reshape(x.shape[0], -1)
    return jax.nn.sigmoid(flat @ params["fc_w"] + params["fc_b"])


if __name__ == "__main__":
    key = jax.random.PRNGKey(0)
    img_size = (16, 16, 3)       # (H, W, C), powers of two
    dim = 8
    batch = 2

    pkey, xkey = jax.random.split(key)
    params = init_discriminator_params(pkey, img_size, dim)
    x = jax.random.normal(xkey, (batch, img_size[2], img_size[0], img_size[1]),
                          jnp.float32)

    fwd = jax.jit(discriminator_forward)
    out = jax.block_until_ready(fwd(params, x))

    assert out.shape == (batch, 1), out.shape
    assert bool(jnp.all(jnp.isfinite(out)))
    assert bool(jnp.all((out >= 0) & (out <= 1)))

    ref = _reference_forward(params, x)
    max_err = float(jnp.max(jnp.abs(out - ref)))
    assert max_err < 2e-2, f"mismatch vs plain-JAX reference: {max_err}"

    print("KERNEL_OK")
</pallas_src>

<mosaic_0001>
module attributes {stable_mosaic.version = 11 : i64} {
  func.func @kernel(%arg0: memref<128x128xbf16, #tpu.memory_space<vmem>>, %arg1: memref<128x128xbf16, #tpu.memory_space<vmem>>, %arg2: memref<1x128xf32, #tpu.memory_space<vmem>>, %arg3: memref<16x128x128xbf16, #tpu.memory_space<vmem>>, %arg4: memref<1x128xf32, #tpu.memory_space<vmem>>, %arg5: memref<16x128x128xbf16, #tpu.memory_space<vmem>>, %arg6: memref<1x128xf32, #tpu.memory_space<vmem>>, %arg7: memref<16x128x128xbf16, #tpu.memory_space<vmem>>, %arg8: memref<1x128xf32, #tpu.memory_space<vmem>>, %arg9: memref<128x128xbf16, #tpu.memory_space<vmem>>, %arg10: memref<1x128xf32, #tpu.memory_space<vmem>>, %arg11: memref<2x128xf32, #tpu.memory_space<vmem>>, %arg12: memref<2x5x10x128xf32, #tpu.memory_space<vmem>>, %arg13: memref<2x5x10x128xf32, #tpu.memory_space<vmem>>, %arg14: memref<2x3x6x128xf32, #tpu.memory_space<vmem>>, %arg15: memref<2x3x6x128xf32, #tpu.memory_space<vmem>>, %arg16: memref<2x2x4x128xf32, #tpu.memory_space<vmem>>, %arg17: memref<2x2x4x128xf32, #tpu.memory_space<vmem>>) attributes {dimension_semantics = [], scalar_prefetch = 0 : i64, scratch_operands = 6 : i64, tpu.core_type = #tpu.core_type<tc>} {
    %c0 = arith.constant 0 : index
    %c0_0 = arith.constant 0 : index
    %0 = vector.load %arg0[%c0, %c0_0] : memref<128x128xbf16, #tpu.memory_space<vmem>>, vector<128x128xbf16>
    %c0_1 = arith.constant 0 : index
    %c0_2 = arith.constant 0 : index
    %1 = vector.load %arg1[%c0_1, %c0_2] : memref<128x128xbf16, #tpu.memory_space<vmem>>, vector<128x128xbf16>
    %cst = arith.constant dense<0.000000e+00> : vector<128x128xf32>
    %2 = tpu.matmul %0, %1, %cst {dimension_numbers = #tpu.dot_dimension_numbers<[1], [0], [0], [1], [0, 0, 1, 1], [], []>} : vector<128x128xbf16>, vector<128x128xbf16>, vector<128x128xf32> -> vector<128x128xf32>
    %c0_3 = arith.constant 0 : index
    %c0_4 = arith.constant 0 : index
    %3 = vector.load %arg2[%c0_3, %c0_4] : memref<1x128xf32, #tpu.memory_space<vmem>>, vector<1x128xf32>
    %4 = vector.broadcast %3 : vector<1x128xf32> to vector<128x128xf32>
    %5 = arith.addf %2, %4 : vector<128x128xf32>
    %cst_5 = arith.constant 0.000000e+00 : f32
    %6 = vector.broadcast %cst_5 : f32 to vector<128x128xf32>
    %7 = arith.cmpf ogt, %5, %6 : vector<128x128xf32>
    %cst_6 = arith.constant 2.000000e-01 : f32
    %8 = vector.broadcast %cst_6 : f32 to vector<128x128xf32>
    %9 = arith.mulf %8, %5 : vector<128x128xf32>
    %10 = arith.select %7, %5, %9 : vector<128x128xi1>, vector<128x128xf32>
    %cst_7 = arith.constant 0.000000e+00 : f32
    %11 = vector.broadcast %cst_7 : f32 to vector<2x5x10x128xf32>
    %c0_8 = arith.constant 0 : index
    %c0_9 = arith.constant 0 : index
    %c0_10 = arith.constant 0 : index
    %c0_11 = arith.constant 0 : index
    %12 = vector.load %arg12[%c0_8, %c0_9, %c0_10, %c0_11] : memref<2x5x10x128xf32, #tpu.memory_space<vmem>>, vector<2x5x10x128xf32>
    tpu.vector_store %arg12[%c0_8, %c0_9, %c0_10, %c0_11], %11 {strides = array<i32>} : memref<2x5x10x128xf32, #tpu.memory_space<vmem>>, vector<2x5x10x128xf32>,
    %cst_12 = arith.constant 0.000000e+00 : f32
    %13 = vector.broadcast %cst_12 : f32 to vector<2x5x10x128xf32>
    %c0_13 = arith.constant 0 : index
    %c0_14 = arith.constant 0 : index
    %c0_15 = arith.constant 0 : index
    %c0_16 = arith.constant 0 : index
    %14 = vector.load %arg13[%c0_13, %c0_14, %c0_15, %c0_16] : memref<2x5x10x128xf32, #tpu.memory_space<vmem>>, vector<2x5x10x128xf32>
    tpu.vector_store %arg13[%c0_13, %c0_14, %c0_15, %c0_16], %13 {strides = array<i32>} : memref<2x5x10x128xf32, #tpu.memory_space<vmem>>, vector<2x5x10x128xf32>,
    %15 = vector.extract_strided_slice %10 {offsets = [0, 0], sizes = [8, 128], strides = [1, 1]} : vector<128x128xf32> to vector<8x128xf32>
    %c0_17 = arith.constant 0 : index
    %c0_18 = arith.constant 0 : index
    %c1 = arith.constant 1 : index
    %c0_19 = arith.constant 0 : index
    %16 = vector.load %arg13[%c0_17, %c0_18, %c1, %c0_19] : memref<2x5x10x128xf32, #tpu.memory_space<vmem>>, vector<1x1x8x128xf32>
    %17 = vector.shape_cast %16 : vector<1x1x8x128xf32> to vector<8x128xf32>
    %18 = vector.shape_cast %15 : vector<8x128xf32> to vector<1x1x8x128xf32>
    tpu.vector_store %arg13[%c0_17, %c0_18, %c1, %c0_19], %18 {strides = array<i32>} : memref<2x5x10x128xf32, #tpu.memory_space<vmem>>, vector<1x1x8x128xf32>,
    %19 = vector.extract_strided_slice %10 {offsets = [8, 0], sizes = [8, 128], strides = [1, 1]} : vector<128x128xf32> to vector<8x128xf32>
    %c0_20 = arith.constant 0 : index
    %c1_21 = arith.constant 1 : index
    %c1_22 = arith.constant 1 : index
    %c0_23 = arith.constant 0 : index
    %20 = vector.load %arg12[%c0_20, %c1_21, %c1_22, %c0_23] : memref<2x5x10x128xf32, #tpu.memory_space<vmem>>, vector<1x1x8x128xf32>
    %21 = vector.shape_cast %20 : vector<1x1x8x128xf32> to vector<8x128xf32>
    %22 = vector.shape_cast %19 : vector<8x128xf32> to vector<1x1x8x128xf32>
    tpu.vector_store %arg12[%c0_20, %c1_21, %c1_22, %c0_23], %22 {strides = array<i32>} : memref<2x5x10x128xf32, #tpu.memory_space<vmem>>, vector<1x1x8x128xf32>,
    %23 = vector.extract_strided_slice %10 {offsets = [16, 0], sizes = [8, 128], strides = [1, 1]} : vector<128x128xf32> to vector<8x128xf32>
    %c0_24 = arith.constant 0 : index
    %c1_25 = arith.constant 1 : index
    %c1_26 = arith.constant 1 : index
    %c0_27 = arith.constant 0 : index
    %24 = vector.load %arg13[%c0_24, %c1_25, %c1_26, %c0_27] : memref<2x5x10x128xf32, #tpu.memory_space<vmem>>, vector<1x1x8x128xf32>
    %25 = vector.shape_cast %24 : vector<1x1x8x128xf32> to vector<8x128xf32>
    %26 = vector.shape_cast %23 : vector<8x128xf32> to vector<1x1x8x128xf32>
    tpu.vector_store %arg13[%c0_24, %c1_25, %c1_26, %c0_27], %26 {strides = array<i32>} : memref<2x5x10x128xf32, #tpu.memory_space<vmem>>, vector<1x1x8x128xf32>,
    %27 = vector.extract_strided_slice %10 {offsets = [24, 0], sizes = [8, 128], strides = [1, 1]} : vector<128x128xf32> to vector<8x128xf32>
    %c0_28 = arith.constant 0 : index
    %c2 = arith.constant 2 : index
    %c1_29 = arith.constant 1 : index
    %c0_30 = arith.constant 0 : index
    %28 = vector.load %arg12[%c0_28, %c2, %c1_29, %c0_30] : memref<2x5x10x128xf32, #tpu.memory_space<vmem>>, vector<1x1x8x128xf32>
    %29 = vector.shape_cast %28 : vector<1x1x8x128xf32> to vector<8x128xf32>
    %30 = vector.shape_cast %27 : vector<8x128xf32> to vector<1x1x8x128xf32>
    tpu.vector_store %arg12[%c0_28, %c2, %c1_29, %c0_30], %30 {strides = array<i32>} : memref<2x5x10x128xf32, #tpu.memory_space<vmem>>, vector<1x1x8x128xf32>,
    %31 = vector.extract_strided_slice %10 {offsets = [32, 0], sizes = [8, 128], strides = [1, 1]} : vector<128x128xf32> to vector<8x128xf32>
    %c0_31 = arith.constant 0 : index
    %c2_32 = arith.constant 2 : index
    %c1_33 = arith.constant 1 : index
    %c0_34 = arith.constant 0 : index
    %32 = vector.load %arg13[%c0_31, %c2_32, %c1_33, %c0_34] : memref<2x5x10x128xf32, #tpu.memory_space<vmem>>, vector<1x1x8x128xf32>
    %33 = vector.shape_cast %32 : vector<1x1x8x128xf32> to vector<8x128xf32>
    %34 = vector.shape_cast %31 : vector<8x128xf32> to vector<1x1x8x128xf32>
    tpu.vector_store %arg13[%c0_31, %c2_32, %c1_33, %c0_34], %34 {strides = array<i32>} : memref<2x5x10x128xf32, #tpu.memory_space<vmem>>, vector<1x1x8x128xf32>,
    %35 = vector.extract_strided_slice %10 {offsets = [40, 0], sizes = [8, 128], strides = [1, 1]} : vector<128x128xf32> to vector<8x128xf32>
    %c0_35 = arith.constant 0 : index
    %c3 = arith.constant 3 : index
    %c1_36 = arith.constant 1 : index
    %c0_37 = arith.constant 0 : index
    %36 = vector.load %arg12[%c0_35, %c3, %c1_36, %c0_37] : memref<2x5x10x128xf32, #tpu.memory_space<vmem>>, vector<1x1x8x128xf32>
    %37 = vector.shape_cast %36 : vector<1x1x8x128xf32> to vector<8x128xf32>
    %38 = vector.shape_cast %35 : vector<8x128xf32> to vector<1x1x8x128xf32>
    tpu.vector_store %arg12[%c0_35, %c3, %c1_36, %c0_37], %38 {strides = array<i32>} : memref<2x5x10x128xf32, #tpu.memory_space<vmem>>, vector<1x1x8x128xf32>,
    %39 = vector.extract_strided_slice %10 {offsets = [48, 0], sizes = [8, 128], strides = [1, 1]} : vector<128x128xf32> to vector<8x128xf32>
    %c0_38 = arith.constant 0 : index
    %c3_39 = arith.constant 3 : index
    %c1_40 = arith.constant 1 : index
    %c0_41 = arith.constant 0 : index
    %40 = vector.load %arg13[%c0_38, %c3_39, %c1_40, %c0_41] : memref<2x5x10x128xf32, #tpu.memory_space<vmem>>, vector<1x1x8x128xf32>
    %41 = vector.shape_cast %40 : vector<1x1x8x128xf32> to vector<8x128xf32>
    %42 = vector.shape_cast %39 : vector<8x128xf32> to vector<1x1x8x128xf32>
    tpu.vector_store %arg13[%c0_38, %c3_39, %c1_40, %c0_41], %42 {strides = array<i32>} : memref<2x5x10x128xf32, #tpu.memory_space<vmem>>, vector<1x1x8x128xf32>,
    %43 = vector.extract_strided_slice %10 {offsets = [56, 0], sizes = [8, 128], strides = [1, 1]} : vector<128x128xf32> to vector<8x128xf32>
    %c0_42 = arith.constant 0 : index
    %c4 = arith.constant 4 : index
    %c1_43 = arith.constant 1 : index
    %c0_44 = arith.constant 0 : index
    %44 = vector.load %arg12[%c0_42, %c4, %c1_43, %c0_44] : memref<2x5x10x128xf32, #tpu.memory_space<vmem>>, vector<1x1x8x128xf32>
    %45 = vector.shape_cast %44 : vector<1x1x8x128xf32> to vector<8x128xf32>
    %46 = vector.shape_cast %43 : vector<8x128xf32> to vector<1x1x8x128xf32>
    tpu.vector_store %arg12[%c0_42, %c4, %c1_43, %c0_44], %46 {strides = array<i32>} : memref<2x5x10x128xf32, #tpu.memory_space<vmem>>, vector<1x1x8x128xf32>,
    %47 = vector.extract_strided_slice %10 {offsets = [64, 0], sizes = [8, 128], strides = [1, 1]} : vector<128x128xf32> to vector<8x128xf32>
    %c1_45 = arith.constant 1 : index
    %c0_46 = arith.constant 0 : index
    %c1_47 = arith.constant 1 : index
    %c0_48 = arith.constant 0 : index
    %48 = vector.load %arg13[%c1_45, %c0_46, %c1_47, %c0_48] : memref<2x5x10x128xf32, #tpu.memory_space<vmem>>, vector<1x1x8x128xf32>
    %49 = vector.shape_cast %48 : vector<1x1x8x128xf32> to vector<8x128xf32>
    %50 = vector.shape_cast %47 : vector<8x128xf32> to vector<1x1x8x128xf32>
    tpu.vector_store %arg13[%c1_45, %c0_46, %c1_47, %c0_48], %50 {strides = array<i32>} : memref<2x5x10x128xf32, #tpu.memory_space<vmem>>, vector<1x1x8x128xf32>,
    %51 = vector.extract_strided_slice %10 {offsets = [72, 0], sizes = [8, 128], strides = [1, 1]} : vector<128x128xf32> to vector<8x128xf32>
    %c1_49 = arith.constant 1 : index
    %c1_50 = arith.constant 1 : index
    %c1_51 = arith.constant 1 : index
    %c0_52 = arith.constant 0 : index
    %52 = vector.load %arg12[%c1_49, %c1_50, %c1_51, %c0_52] : memref<2x5x10x128xf32, #tpu.memory_space<vmem>>, vector<1x1x8x128xf32>
    %53 = vector.shape_cast %52 : vector<1x1x8x128xf32> to vector<8x128xf32>
    %54 = vector.shape_cast %51 : vector<8x128xf32> to vector<1x1x8x128xf32>
    tpu.vector_store %arg12[%c1_49, %c1_50, %c1_51, %c0_52], %54 {strides = array<i32>} : memref<2x5x10x128xf32, #tpu.memory_space<vmem>>, vector<1x1x8x128xf32>,
    %55 = vector.extract_strided_slice %10 {offsets = [80, 0], sizes = [8, 128], strides = [1, 1]} : vector<128x128xf32> to vector<8x128xf32>
    %c1_53 = arith.constant 1 : index
    %c1_54 = arith.constant 1 : index
    %c1_55 = arith.constant 1 : index
    %c0_56 = arith.constant 0 : index
    %56 = vector.load %arg13[%c1_53, %c1_54, %c1_55, %c0_56] : memref<2x5x10x128xf32, #tpu.memory_space<vmem>>, vector<1x1x8x128xf32>
    %57 = vector.shape_cast %56 : vector<1x1x8x128xf32> to vector<8x128xf32>
    %58 = vector.shape_cast %55 : vector<8x128xf32> to vector<1x1x8x128xf32>
    tpu.vector_store %arg13[%c1_53, %c1_54, %c1_55, %c0_56], %58 {strides = array<i32>} : memref<2x5x10x128xf32, #tpu.memory_space<vmem>>, vector<1x1x8x128xf32>,
    %59 = vector.extract_strided_slice %10 {offsets = [88, 0], sizes = [8, 128], strides = [1, 1]} : vector<128x128xf32> to vector<8x128xf32>
    %c1_57 = arith.constant 1 : index
    %c2_58 = arith.constant 2 : index
    %c1_59 = arith.constant 1 : index
    %c0_60 = arith.constant 0 : index
    %60 = vector.load %arg12[%c1_57, %c2_58, %c1_59, %c0_60] : memref<2x5x10x128xf32, #tpu.memory_space<vmem>>, vector<1x1x8x128xf32>
    %61 = vector.shape_cast %60 : vector<1x1x8x128xf32> to vector<8x128xf32>
    %62 = vector.shape_cast %59 : vector<8x128xf32> to vector<1x1x8x128xf32>
    tpu.vector_store %arg12[%c1_57, %c2_58, %c1_59, %c0_60], %62 {strides = array<i32>} : memref<2x5x10x128xf32, #tpu.memory_space<vmem>>, vector<1x1x8x128xf32>,
    %63 = vector.extract_strided_slice %10 {offsets = [96, 0], sizes = [8, 128], strides = [1, 1]} : vector<128x128xf32> to vector<8x128xf32>
    %c1_61 = arith.constant 1 : index
    %c2_62 = arith.constant 2 : index
    %c1_63 = arith.constant 1 : index
    %c0_64 = arith.constant 0 : index
    %64 = vector.load %arg13[%c1_61, %c2_62, %c1_63, %c0_64] : memref<2x5x10x128xf32, #tpu.memory_space<vmem>>, vector<1x1x8x128xf32>
    %65 = vector.shape_cast %64 : vector<1x1x8x128xf32> to vector<8x128xf32>
    %66 = vector.shape_cast %63 : vector<8x128xf32> to vector<1x1x8x128xf32>
    tpu.vector_store %arg13[%c1_61, %c2_62, %c1_63, %c0_64], %66 {strides = array<i32>} : memref<2x5x10x128xf32, #tpu.memory_space<vmem>>, vector<1x1x8x128xf32>,
    %67 = vector.extract_strided_slice %10 {offsets = [104, 0], sizes = [8, 128], strides = [1, 1]} : vector<128x128xf32> to vector<8x128xf32>
    %c1_65 = arith.constant 1 : index
    %c3_66 = arith.constant 3 : index
    %c1_67 = arith.constant 1 : index
    %c0_68 = arith.constant 0 : index
    %68 = vector.load %arg12[%c1_65, %c3_66, %c1_67, %c0_68] : memref<2x5x10x128xf32, #tpu.memory_space<vmem>>, vector<1x1x8x128xf32>
    %69 = vector.shape_cast %68 : vector<1x1x8x128xf32> to vector<8x128xf32>
    %70 = vector.shape_cast %67 : vector<8x128xf32> to vector<1x1x8x128xf32>
    tpu.vector_store %arg12[%c1_65, %c3_66, %c1_67, %c0_68], %70 {strides = array<i32>} : memref<2x5x10x128xf32, #tpu.memory_space<vmem>>, vector<1x1x8x128xf32>,
    %71 = vector.extract_strided_slice %10 {offsets = [112, 0], sizes = [8, 128], strides = [1, 1]} : vector<128x128xf32> to vector<8x128xf32>
    %c1_69 = arith.constant 1 : index
    %c3_70 = arith.constant 3 : index
    %c1_71 = arith.constant 1 : index
    %c0_72 = arith.constant 0 : index
    %72 = vector.load %arg13[%c1_69, %c3_70, %c1_71, %c0_72] : memref<2x5x10x128xf32, #tpu.memory_space<vmem>>, vector<1x1x8x128xf32>
    %73 = vector.shape_cast %72 : vector<1x1x8x128xf32> to vector<8x128xf32>
    %74 = vector.shape_cast %71 : vector<8x128xf32> to vector<1x1x8x128xf32>
    tpu.vector_store %arg13[%c1_69, %c3_70, %c1_71, %c0_72], %74 {strides = array<i32>} : memref<2x5x10x128xf32, #tpu.memory_space<vmem>>, vector<1x1x8x128xf32>,
    %75 = vector.extract_strided_slice %10 {offsets = [120, 0], sizes = [8, 128], strides = [1, 1]} : vector<128x128xf32> to vector<8x128xf32>
    %c1_73 = arith.constant 1 : index
    %c4_74 = arith.constant 4 : index
    %c1_75 = arith.constant 1 : index
    %c0_76 = arith.constant 0 : index
    %76 = vector.load %arg12[%c1_73, %c4_74, %c1_75, %c0_76] : memref<2x5x10x128xf32, #tpu.memory_space<vmem>>, vector<1x1x8x128xf32>
    %77 = vector.shape_cast %76 : vector<1x1x8x128xf32> to vector<8x128xf32>
    %78 = vector.shape_cast %75 : vector<8x128xf32> to vector<1x1x8x128xf32>
    tpu.vector_store %arg12[%c1_73, %c4_74, %c1_75, %c0_76], %78 {strides = array<i32>} : memref<2x5x10x128xf32, #tpu.memory_space<vmem>>, vector<1x1x8x128xf32>,
    %cst_77 = arith.constant 0.000000e+00 : f32
    %79 = vector.broadcast %cst_77 : f32 to vector<32x128xf32>
    %c0_78 = arith.constant 0 : index
    %c0_79 = arith.constant 0 : index
    %c0_80 = arith.constant 0 : index
    %c0_81 = arith.constant 0 : index
    %80 = tpu.strided_load %arg12[%c0_78, %c0_79, %c0_80, %c0_81] {strides = array<i32: 1, 1, 2, 1>} : memref<2x5x10x128xf32, #tpu.memory_space<vmem>>, vector<2x4x4x128xf32>
    %81 = vector.shape_cast %80 : vector<2x4x4x128xf32> to vector<32x128xf32>
    %82 = arith.truncf %81 : vector<32x128xf32> to vector<32x128xbf16>
    %c0_82 = arith.constant 0 : index
    %c0_83 = arith.constant 0 : index
    %c0_84 = arith.constant 0 : index
    %83 = vector.load %arg3[%c0_82, %c0_83, %c0_84] : memref<16x128x128xbf16, #tpu.memory_space<vmem>>, vector<1x128x128xbf16>
    %84 = vector.shape_cast %83 : vector<1x128x128xbf16> to vector<128x128xbf16>
    %cst_85 = arith.constant dense<0.000000e+00> : vector<32x128xf32>
    %85 = tpu.matmul %82, %84, %cst_85 {dimension_numbers = #tpu.dot_dimension_numbers<[1], [0], [0], [1], [0, 0, 1, 1], [], []>} : vector<32x128xbf16>, vector<128x128xbf16>, vector<32x128xf32> -> vector<32x128xf32>
    %86 = arith.addf %79, %85 : vector<32x128xf32>
    %c0_86 = arith.constant 0 : index
    %c0_87 = arith.constant 0 : index
    %c1_88 = arith.constant 1 : index
    %c0_89 = arith.constant 0 : index
    %87 = tpu.strided_load %arg12[%c0_86, %c0_87, %c1_88, %c0_89] {strides = array<i32: 1, 1, 2, 1>} : memref<2x5x10x128xf32, #tpu.memory_space<vmem>>, vector<2x4x4x128xf32>
    %88 = vector.shape_cast %87 : vector<2x4x4x128xf32> to vector<32x128xf32>
    %89 = arith.truncf %88 : vector<32x128xf32> to vector<32x128xbf16>
    %c1_90 = arith.constant 1 : index
    %c0_91 = arith.constant 0 : index
    %c0_92 = arith.constant 0 : index
    %90 = vector.load %arg3[%c1_90, %c0_91, %c0_92] : memref<16x128x128xbf16, #tpu.memory_space<vmem>>, vector<1x128x128xbf16>
    %91 = vector.shape_cast %90 : vector<1x128x128xbf16> to vector<128x128xbf16>
    %cst_93 = arith.constant dense<0.000000e+00> : vector<32x128xf32>
    %92 = tpu.matmul %89, %91, %cst_93 {dimension_numbers = #tpu.dot_dimension_numbers<[1], [0], [0], [1], [0, 0, 1, 1], [], []>} : vector<32x128xbf16>, vector<128x128xbf16>, vector<32x128xf32> -> vector<32x128xf32>
    %93 = arith.addf %86, %92 : vector<32x128xf32>
    %c0_94 = arith.constant 0 : index
    %c0_95 = arith.constant 0 : index
    %c2_96 = arith.constant 2 : index
    %c0_97 = arith.constant 0 : index
    %94 = tpu.strided_load %arg12[%c0_94, %c0_95, %c2_96, %c0_97] {strides = array<i32: 1, 1, 2, 1>} : memref<2x5x10x128xf32, #tpu.memory_space<vmem>>, vector<2x4x4x128xf32>
    %95 = vector.shape_cast %94 : vector<2x4x4x128xf32> to vector<32x128xf32>
    %96 = arith.truncf %95 : vector<32x128xf32> to vector<32x128xbf16>
    %c2_98 = arith.constant 2 : index
    %c0_99 = arith.constant 0 : index
    %c0_100 = arith.constant 0 : index
    %97 = vector.load %arg3[%c2_98, %c0_99, %c0_100] : memref<16x128x128xbf16, #tpu.memory_space<vmem>>, vector<1x128x128xbf16>
    %98 = vector.shape_cast %97 : vector<1x128x128xbf16> to vector<128x128xbf16>
    %cst_101 = arith.constant dense<0.000000e+00> : vector<32x128xf32>
    %99 = tpu.matmul %96, %98, %cst_101 {dimension_numbers = #tpu.dot_dimension_numbers<[1], [0], [0], [1], [0, 0, 1, 1], [], []>} : vector<32x128xbf16>, vector<128x128xbf16>, vector<32x128xf32> -> vector<32x128xf32>
    %100 = arith.addf %93, %99 : vector<32x128xf32>
    %c0_102 = arith.constant 0 : index
    %c0_103 = arith.constant 0 : index
    %c3_104 = arith.constant 3 : index
    %c0_105 = arith.constant 0 : index
    %101 = tpu.strided_load %arg12[%c0_102, %c0_103, %c3_104, %c0_105] {strides = array<i32: 1, 1, 2, 1>} : memref<2x5x10x128xf32, #tpu.memory_space<vmem>>, vector<2x4x4x128xf32>
    %102 = vector.shape_cast %101 : vector<2x4x4x128xf32> to vector<32x128xf32>
    %103 = arith.truncf %102 : vector<32x128xf32> to vector<32x128xbf16>
    %c3_106 = arith.constant 3 : index
    %c0_107 = arith.constant 0 : index
    %c0_108 = arith.constant 0 : index
    %104 = vector.load %arg3[%c3_106, %c0_107, %c0_108] : memref<16x128x128xbf16, #tpu.memory_space<vmem>>, vector<1x128x128xbf16>
    %105 = vector.shape_cast %104 : vector<1x128x128xbf16> to vector<128x128xbf16>
    %cst_109 = arith.constant dense<0.000000e+00> : vector<32x128xf32>
    %106 = tpu.matmul %103, %105, %cst_109 {dimension_numbers = #tpu.dot_dimension_numbers<[1], [0], [0], [1], [0, 0, 1, 1], [], []>} : vector<32x128xbf16>, vector<128x128xbf16>, vector<32x128xf32> -> vector<32x128xf32>
    %107 = arith.addf %100, %106 : vector<32x128xf32>
    %c0_110 = arith.constant 0 : index
    %c0_111 = arith.constant 0 : index
    %c0_112 = arith.constant 0 : index
    %c0_113 = arith.constant 0 : index
    %108 = tpu.strided_load %arg13[%c0_110, %c0_111, %c0_112, %c0_113] {strides = array<i32: 1, 1, 2, 1>} : memref<2x5x10x128xf32, #tpu.memory_space<vmem>>, vector<2x4x4x128xf32>
    %109 = vector.shape_cast %108 : vector<2x4x4x128xf32> to vector<32x128xf32>
    %110 = arith.truncf %109 : vector<32x128xf32> to vector<32x128xbf16>
    %c4_114 = arith.constant 4 : index
    %c0_115 = arith.constant 0 : index
    %c0_116 = arith.constant 0 : index
    %111 = vector.load %arg3[%c4_114, %c0_115, %c0_116] : memref<16x128x128xbf16, #tpu.memory_space<vmem>>, vector<1x128x128xbf16>
    %112 = vector.shape_cast %111 : vector<1x128x128xbf16> to vector<128x128xbf16>
    %cst_117 = arith.constant dense<0.000000e+00> : vector<32x128xf32>
    %113 = tpu.matmul %110, %112, %cst_117 {dimension_numbers = #tpu.dot_dimension_numbers<[1], [0], [0], [1], [0, 0, 1, 1], [], []>} : vector<32x128xbf16>, vector<128x128xbf16>, vector<32x128xf32> -> vector<32x128xf32>
    %114 = arith.addf %107, %113 : vector<32x128xf32>
    %c0_118 = arith.constant 0 : index
    %c0_119 = arith.constant 0 : index
    %c1_120 = arith.constant 1 : index
    %c0_121 = arith.constant 0 : index
    %115 = tpu.strided_load %arg13[%c0_118, %c0_119, %c1_120, %c0_121] {strides = array<i32: 1, 1, 2, 1>} : memref<2x5x10x128xf32, #tpu.memory_space<vmem>>, vector<2x4x4x128xf32>
    %116 = vector.shape_cast %115 : vector<2x4x4x128xf32> to vector<32x128xf32>
    %117 = arith.truncf %116 : vector<32x128xf32> to vector<32x128xbf16>
    %c5 = arith.constant 5 : index
    %c0_122 = arith.constant 0 : index
    %c0_123 = arith.constant 0 : index
    %118 = vector.load %arg3[%c5, %c0_122, %c0_123] : memref<16x128x128xbf16, #tpu.memory_space<vmem>>, vector<1x128x128xbf16>
    %119 = vector.shape_cast %118 : vector<1x128x128xbf16> to vector<128x128xbf16>
    %cst_124 = arith.constant dense<0.000000e+00> : vector<32x128xf32>
    %120 = tpu.matmul %117, %119, %cst_124 {dimension_numbers = #tpu.dot_dimension_numbers<[1], [0], [0], [1], [0, 0, 1, 1], [], []>} : vector<32x128xbf16>, vector<128x128xbf16>, vector<32x128xf32> -> vector<32x128xf32>
    %121 = arith.addf %114, %120 : vector<32x128xf32>
    %c0_125 = arith.constant 0 : index
    %c0_126 = arith.constant 0 : index
    %c2_127 = arith.constant 2 : index
    %c0_128 = arith.constant 0 : index
    %122 = tpu.strided_load %arg13[%c0_125, %c0_126, %c2_127, %c0_128] {strides = array<i32: 1, 1, 2, 1>} : memref<2x5x10x128xf32, #tpu.memory_space<vmem>>, vector<2x4x4x128xf32>
    %123 = vector.shape_cast %122 : vector<2x4x4x128xf32> to vector<32x128xf32>
    %124 = arith.truncf %123 : vector<32x128xf32> to vector<32x128xbf16>
    %c6 = arith.constant 6 : index
    %c0_129 = arith.constant 0 : index
    %c0_130 = arith.constant 0 : index
    %125 = vector.load %arg3[%c6, %c0_129, %c0_130] : memref<16x128x128xbf16, #tpu.memory_space<vmem>>, vector<1x128x128xbf16>
    %126 = vector.shape_cast %125 : vector<1x128x128xbf16> to vector<128x128xbf16>
    %cst_131 = arith.constant dense<0.000000e+00> : vector<32x128xf32>
    %127 = tpu.matmul %124, %126, %cst_131 {dimension_numbers = #tpu.dot_dimension_numbers<[1], [0], [0], [1], [0, 0, 1, 1], [], []>} : vector<32x128xbf16>, vector<128x128xbf16>, vector<32x128xf32> -> vector<32x128xf32>
    %128 = arith.addf %121, %127 : vector<32x128xf32>
    %c0_132 = arith.constant 0 : index
    %c0_133 = arith.constant 0 : index
    %c3_134 = arith.constant 3 : index
    %c0_135 = arith.constant 0 : index
    %129 = tpu.strided_load %arg13[%c0_132, %c0_133, %c3_134, %c0_135] {strides = array<i32: 1, 1, 2, 1>} : memref<2x5x10x128xf32, #tpu.memory_space<vmem>>, vector<2x4x4x128xf32>
    %130 = vector.shape_cast %129 : vector<2x4x4x128xf32> to vector<32x128xf32>
    %131 = arith.truncf %130 : vector<32x128xf32> to vector<32x128xbf16>
    %c7 = arith.constant 7 : index
    %c0_136 = arith.constant 0 : index
    %c0_137 = arith.constant 0 : index
    %132 = vector.load %arg3[%c7, %c0_136, %c0_137] : memref<16x128x128xbf16, #tpu.memory_space<vmem>>, vector<1x128x128xbf16>
    %133 = vector.shape_cast %132 : vector<1x128x128xbf16> to vector<128x128xbf16>
    %cst_138 = arith.constant dense<0.000000e+00> : vector<32x128xf32>
    %134 = tpu.matmul %131, %133, %cst_138 {dimension_numbers = #tpu.dot_dimension_numbers<[1], [0], [0], [1], [0, 0, 1, 1], [], []>} : vector<32x128xbf16>, vector<128x128xbf16>, vector<32x128xf32> -> vector<32x128xf32>
    %135 = arith.addf %128, %134 : vector<32x128xf32>
    %c0_139 = arith.constant 0 : index
    %c1_140 = arith.constant 1 : index
    %c0_141 = arith.constant 0 : index
    %c0_142 = arith.constant 0 : index
    %136 = tpu.strided_load %arg12[%c0_139, %c1_140, %c0_141, %c0_142] {strides = array<i32: 1, 1, 2, 1>} : memref<2x5x10x128xf32, #tpu.memory_space<vmem>>, vector<2x4x4x128xf32>
    %137 = vector.shape_cast %136 : vector<2x4x4x128xf32> to vector<32x128xf32>
    %138 = arith.truncf %137 : vector<32x128xf32> to vector<32x128xbf16>
    %c8 = arith.constant 8 : index
    %c0_143 = arith.constant 0 : index
    %c0_144 = arith.constant 0 : index
    %139 = vector.load %arg3[%c8, %c0_143, %c0_144] : memref<16x128x128xbf16, #tpu.memory_space<vmem>>, vector<1x128x128xbf16>
    %140 = vector.shape_cast %139 : vector<1x128x128xbf16> to vector<128x128xbf16>
    %cst_145 = arith.constant dense<0.000000e+00> : vector<32x128xf32>
    %141 = tpu.matmul %138, %140, %cst_145 {dimension_numbers = #tpu.dot_dimension_numbers<[1], [0], [0], [1], [0, 0, 1, 1], [], []>} : vector<32x128xbf16>, vector<128x128xbf16>, vector<32x128xf32> -> vector<32x128xf32>
    %142 = arith.addf %135, %141 : vector<32x128xf32>
    %c0_146 = arith.constant 0 : index
    %c1_147 = arith.constant 1 : index
    %c1_148 = arith.constant 1 : index
    %c0_149 = arith.constant 0 : index
    %143 = tpu.strided_load %arg12[%c0_146, %c1_147, %c1_148, %c0_149] {strides = array<i32: 1, 1, 2, 1>} : memref<2x5x10x128xf32, #tpu.memory_space<vmem>>, vector<2x4x4x128xf32>
    %144 = vector.shape_cast %143 : vector<2x4x4x128xf32> to vector<32x128xf32>
    %145 = arith.truncf %144 : vector<32x128xf32> to vector<32x128xbf16>
    %c9 = arith.constant 9 : index
    %c0_150 = arith.constant 0 : index
    %c0_151 = arith.constant 0 : index
    %146 = vector.load %arg3[%c9, %c0_150, %c0_151] : memref<16x128x128xbf16, #tpu.memory_space<vmem>>, vector<1x128x128xbf16>
    %147 = vector.shape_cast %146 : vector<1x128x128xbf16> to vector<128x128xbf16>
    %cst_152 = arith.constant dense<0.000000e+00> : vector<32x128xf32>
    %148 = tpu.matmul %145, %147, %cst_152 {dimension_numbers = #tpu.dot_dimension_numbers<[1], [0], [0], [1], [0, 0, 1, 1], [], []>} : vector<32x128xbf16>, vector<128x128xbf16>, vector<32x128xf32> -> vector<32x128xf32>
    %149 = arith.addf %142, %148 : vector<32x128xf32>
    %c0_153 = arith.constant 0 : index
    %c1_154 = arith.constant 1 : index
    %c2_155 = arith.constant 2 : index
    %c0_156 = arith.constant 0 : index
    %150 = tpu.strided_load %arg12[%c0_153, %c1_154, %c2_155, %c0_156] {strides = array<i32: 1, 1, 2, 1>} : memref<2x5x10x128xf32, #tpu.memory_space<vmem>>, vector<2x4x4x128xf32>
    %151 = vector.shape_cast %150 : vector<2x4x4x128xf32> to vector<32x128xf32>
    %152 = arith.truncf %151 : vector<32x128xf32> to vector<32x128xbf16>
    %c10 = arith.constant 10 : index
    %c0_157 = arith.constant 0 : index
    %c0_158 = arith.constant 0 : index
    %153 = vector.load %arg3[%c10, %c0_157, %c0_158] : memref<16x128x128xbf16, #tpu.memory_space<vmem>>, vector<1x128x128xbf16>
    %154 = vector.shape_cast %153 : vector<1x128x128xbf16> to vector<128x128xbf16>
    %cst_159 = arith.constant dense<0.000000e+00> : vector<32x128xf32>
    %155 = tpu.matmul %152, %154, %cst_159 {dimension_numbers = #tpu.dot_dimension_numbers<[1], [0], [0], [1], [0, 0, 1, 1], [], []>} : vector<32x128xbf16>, vector<128x128xbf16>, vector<32x128xf32> -> vector<32x128xf32>
    %156 = arith.addf %149, %155 : vector<32x128xf32>
    %c0_160 = arith.constant 0 : index
    %c1_161 = arith.constant 1 : index
    %c3_162 = arith.constant 3 : index
    %c0_163 = arith.constant 0 : index
    %157 = tpu.strided_load %arg12[%c0_160, %c1_161, %c3_162, %c0_163] {strides = array<i32: 1, 1, 2, 1>} : memref<2x5x10x128xf32, #tpu.memory_space<vmem>>, vector<2x4x4x128xf32>
    %158 = vector.shape_cast %157 : vector<2x4x4x128xf32> to vector<32x128xf32>
    %159 = arith.truncf %158 : vector<32x128xf32> to vector<32x128xbf16>
    %c11 = arith.constant 11 : index
    %c0_164 = arith.constant 0 : index
    %c0_165 = arith.constant 0 : index
    %160 = vector.load %arg3[%c11, %c0_164, %c0_165] : memref<16x128x128xbf16, #tpu.memory_space<vmem>>, vector<1x128x128xbf16>
    %161 = vector.shape_cast %160 : vector<1x128x128xbf16> to vector<128x128xbf16>
    %cst_166 = arith.constant dense<0.000000e+00> : vector<32x128xf32>
    %162 = tpu.matmul %159, %161, %cst_166 {dimension_numbers = #tpu.dot_dimension_numbers<[1], [0], [0], [1], [0, 0, 1, 1], [], []>} : vector<32x128xbf16>, vector<128x128xbf16>, vector<32x128xf32> -> vector<32x128xf32>
    %163 = arith.addf %156, %162 : vector<32x128xf32>
    %c0_167 = arith.constant 0 : index
    %c1_168 = arith.constant 1 : index
    %c0_169 = arith.constant 0 : index
    %c0_170 = arith.constant 0 : index
    %164 = tpu.strided_load %arg13[%c0_167, %c1_168, %c0_169, %c0_170] {strides = array<i32: 1, 1, 2, 1>} : memref<2x5x10x128xf32, #tpu.memory_space<vmem>>, vector<2x4x4x128xf32>
    %165 = vector.shape_cast %164 : vector<2x4x4x128xf32> to vector<32x128xf32>
    %166 = arith.truncf %165 : vector<32x128xf32> to vector<32x128xbf16>
    %c12 = arith.constant 12 : index
    %c0_171 = arith.constant 0 : index
    %c0_172 = arith.constant 0 : index
    %167 = vector.load %arg3[%c12, %c0_171, %c0_172] : memref<16x128x128xbf16, #tpu.memory_space<vmem>>, vector<1x128x128xbf16>
    %168 = vector.shape_cast %167 : vector<1x128x128xbf16> to vector<128x128xbf16>
    %cst_173 = arith.constant dense<0.000000e+00> : vector<32x128xf32>
    %169 = tpu.matmul %166, %168, %cst_173 {dimension_numbers = #tpu.dot_dimension_numbers<[1], [0], [0], [1], [0, 0, 1, 1], [], []>} : vector<32x128xbf16>, vector<128x128xbf16>, vector<32x128xf32> -> vector<32x128xf32>
    %170 = arith.addf %163, %169 : vector<32x128xf32>
    %c0_174 = arith.constant 0 : index
    %c1_175 = arith.constant 1 : index
    %c1_176 = arith.constant 1 : index
    %c0_177 = arith.constant 0 : index
    %171 = tpu.strided_load %arg13[%c0_174, %c1_175, %c1_176, %c0_177] {strides = array<i32: 1, 1, 2, 1>} : memref<2x5x10x128xf32, #tpu.memory_space<vmem>>, vector<2x4x4x128xf32>
    %172 = vector.shape_cast %171 : vector<2x4x4x128xf32> to vector<32x128xf32>
    %173 = arith.truncf %172 : vector<32x128xf32> to vector<32x128xbf16>
    %c13 = arith.constant 13 : index
    %c0_178 = arith.constant 0 : index
    %c0_179 = arith.constant 0 : index
    %174 = vector.load %arg3[%c13, %c0_178, %c0_179] : memref<16x128x128xbf16, #tpu.memory_space<vmem>>, vector<1x128x128xbf16>
    %175 = vector.shape_cast %174 : vector<1x128x128xbf16> to vector<128x128xbf16>
    %cst_180 = arith.constant dense<0.000000e+00> : vector<32x128xf32>
    %176 = tpu.matmul %173, %175, %cst_180 {dimension_numbers = #tpu.dot_dimension_numbers<[1], [0], [0], [1], [0, 0, 1, 1], [], []>} : vector<32x128xbf16>, vector<128x128xbf16>, vector<32x128xf32> -> vector<32x128xf32>
    %177 = arith.addf %170, %176 : vector<32x128xf32>
    %c0_181 = arith.constant 0 : index
    %c1_182 = arith.constant 1 : index
    %c2_183 = arith.constant 2 : index
    %c0_184 = arith.constant 0 : index
    %178 = tpu.strided_load %arg13[%c0_181, %c1_182, %c2_183, %c0_184] {strides = array<i32: 1, 1, 2, 1>} : memref<2x5x10x128xf32, #tpu.memory_space<vmem>>, vector<2x4x4x128xf32>
    %179 = vector.shape_cast %178 : vector<2x4x4x128xf32> to vector<32x128xf32>
    %180 = arith.truncf %179 : vector<32x128xf32> to vector<32x128xbf16>
    %c14 = arith.constant 14 : index
    %c0_185 = arith.constant 0 : index
    %c0_186 = arith.constant 0 : index
    %181 = vector.load %arg3[%c14, %c0_185, %c0_186] : memref<16x128x128xbf16, #tpu.memory_space<vmem>>, vector<1x128x128xbf16>
    %182 = vector.shape_cast %181 : vector<1x128x128xbf16> to vector<128x128xbf16>
    %cst_187 = arith.constant dense<0.000000e+00> : vector<32x128xf32>
    %183 = tpu.matmul %180, %182, %cst_187 {dimension_numbers = #tpu.dot_dimension_numbers<[1], [0], [0], [1], [0, 0, 1, 1], [], []>} : vector<32x128xbf16>, vector<128x128xbf16>, vector<32x128xf32> -> vector<32x128xf32>
    %184 = arith.addf %177, %183 : vector<32x128xf32>
    %c0_188 = arith.constant 0 : index
    %c1_189 = arith.constant 1 : index
    %c3_190 = arith.constant 3 : index
    %c0_191 = arith.constant 0 : index
    %185 = tpu.strided_load %arg13[%c0_188, %c1_189, %c3_190, %c0_191] {strides = array<i32: 1, 1, 2, 1>} : memref<2x5x10x128xf32, #tpu.memory_space<vmem>>, vector<2x4x4x128xf32>
    %186 = vector.shape_cast %185 : vector<2x4x4x128xf32> to vector<32x128xf32>
    %187 = arith.truncf %186 : vector<32x128xf32> to vector<32x128xbf16>
    %c15 = arith.constant 15 : index
    %c0_192 = arith.constant 0 : index
    %c0_193 = arith.constant 0 : index
    %188 = vector.load %arg3[%c15, %c0_192, %c0_193] : memref<16x128x128xbf16, #tpu.memory_space<vmem>>, vector<1x128x128xbf16>
    %189 = vector.shape_cast %188 : vector<1x128x128xbf16> to vector<128x128xbf16>
    %cst_194 = arith.constant dense<0.000000e+00> : vector<32x128xf32>
    %190 = tpu.matmul %187, %189, %cst_194 {dimension_numbers = #tpu.dot_dimension_numbers<[1], [0], [0], [1], [0, 0, 1, 1], [], []>} : vector<32x128xbf16>, vector<128x128xbf16>, vector<32x128xf32> -> vector<32x128xf32>
    %191 = arith.addf %184, %190 : vector<32x128xf32>
    %c0_195 = arith.constant 0 : index
    %c0_196 = arith.constant 0 : index
    %192 = vector.load %arg4[%c0_195, %c0_196] : memref<1x128xf32, #tpu.memory_space<vmem>>, vector<1x128xf32>
    %193 = vector.broadcast %192 : vector<1x128xf32> to vector<32x128xf32>
    %194 = arith.addf %191, %193 : vector<32x128xf32>
    %cst_197 = arith.constant 0.000000e+00 : f32
    %195 = vector.broadcast %cst_197 : f32 to vector<32x128xf32>
    %196 = arith.cmpf ogt, %194, %195 : vector<32x128xf32>
    %cst_198 = arith.constant 2.000000e-01 : f32
    %197 = vector.broadcast %cst_198 : f32 to vector<32x128xf32>
    %198 = arith.mulf %197, %194 : vector<32x128xf32>
    %199 = arith.select %196, %194, %198 : vector<32x128xi1>, vector<32x128xf32>
    %cst_199 = arith.constant 0.000000e+00 : f32
    %200 = vector.broadcast %cst_199 : f32 to vector<2x3x6x128xf32>
    %c0_200 = arith.constant 0 : index
    %c0_201 = arith.constant 0 : index
    %c0_202 = arith.constant 0 : index
    %c0_203 = arith.constant 0 : index
    %201 = vector.load %arg14[%c0_200, %c0_201, %c0_202, %c0_203] : memref<2x3x6x128xf32, #tpu.memory_space<vmem>>, vector<2x3x6x128xf32>
    tpu.vector_store %arg14[%c0_200, %c0_201, %c0_202, %c0_203], %200 {strides = array<i32>} : memref<2x3x6x128xf32, #tpu.memory_space<vmem>>, vector<2x3x6x128xf32>,
    %cst_204 = arith.constant 0.000000e+00 : f32
    %202 = vector.broadcast %cst_204 : f32 to vector<2x3x6x128xf32>
    %c0_205 = arith.constant 0 : index
    %c0_206 = arith.constant 0 : index
    %c0_207 = arith.constant 0 : index
    %c0_208 = arith.constant 0 : index
    %203 = vector.load %arg15[%c0_205, %c0_206, %c0_207, %c0_208] : memref<2x3x6x128xf32, #tpu.memory_space<vmem>>, vector<2x3x6x128xf32>
    tpu.vector_store %arg15[%c0_205, %c0_206, %c0_207, %c0_208], %202 {strides = array<i32>} : memref<2x3x6x128xf32, #tpu.memory_space<vmem>>, vector<2x3x6x128xf32>,
    %204 = vector.extract_strided_slice %199 {offsets = [0, 0], sizes = [4, 128], strides = [1, 1]} : vector<32x128xf32> to vector<4x128xf32>
    %c0_209 = arith.constant 0 : index
    %c0_210 = arith.constant 0 : index
    %c1_211 = arith.constant 1 : index
    %c0_212 = arith.constant 0 : index
    %205 = vector.load %arg15[%c0_209, %c0_210, %c1_211, %c0_212] : memref<2x3x6x128xf32, #tpu.memory_space<vmem>>, vector<1x1x4x128xf32>
    %206 = vector.shape_cast %205 : vector<1x1x4x128xf32> to vector<4x128xf32>
    %207 = vector.shape_cast %204 : vector<4x128xf32> to vector<1x1x4x128xf32>
    tpu.vector_store %arg15[%c0_209, %c0_210, %c1_211, %c0_212], %207 {strides = array<i32>} : memref<2x3x6x128xf32, #tpu.memory_space<vmem>>, vector<1x1x4x128xf32>,
    %208 = vector.extract_strided_slice %199 {offsets = [4, 0], sizes = [4, 128], strides = [1, 1]} : vector<32x128xf32> to vector<4x128xf32>
    %c0_213 = arith.constant 0 : index
    %c1_214 = arith.constant 1 : index
    %c1_215 = arith.constant 1 : index
    %c0_216 = arith.constant 0 : index
    %209 = vector.load %arg14[%c0_213, %c1_214, %c1_215, %c0_216] : memref<2x3x6x128xf32, #tpu.memory_space<vmem>>, vector<1x1x4x128xf32>
    %210 = vector.shape_cast %209 : vector<1x1x4x128xf32> to vector<4x128xf32>
    %211 = vector.shape_cast %208 : vector<4x128xf32> to vector<1x1x4x128xf32>
    tpu.vector_store %arg14[%c0_213, %c1_214, %c1_215, %c0_216], %211 {strides = array<i32>} : memref<2x3x6x128xf32, #tpu.memory_space<vmem>>, vector<1x1x4x128xf32>,
    %212 = vector.extract_strided_slice %199 {offsets = [8, 0], sizes = [4, 128], strides = [1, 1]} : vector<32x128xf32> to vector<4x128xf32>
    %c0_217 = arith.constant 0 : index
    %c1_218 = arith.constant 1 : index
    %c1_219 = arith.constant 1 : index
    %c0_220 = arith.constant 0 : index
    %213 = vector.load %arg15[%c0_217, %c1_218, %c1_219, %c0_220] : memref<2x3x6x128xf32, #tpu.memory_space<vmem>>, vector<1x1x4x128xf32>
    %214 = vector.shape_cast %213 : vector<1x1x4x128xf32> to vector<4x128xf32>
    %215 = vector.shape_cast %212 : vector<4x128xf32> to vector<1x1x4x128xf32>
    tpu.vector_store %arg15[%c0_217, %c1_218, %c1_219, %c0_220], %215 {strides = array<i32>} : memref<2x3x6x128xf32, #tpu.memory_space<vmem>>, vector<1x1x4x128xf32>,
    %216 = vector.extract_strided_slice %199 {offsets = [12, 0], sizes = [4, 128], strides = [1, 1]} : vector<32x128xf32> to vector<4x128xf32>
    %c0_221 = arith.constant 0 : index
    %c2_222 = arith.constant 2 : index
    %c1_223 = arith.constant 1 : index
    %c0_224 = arith.constant 0 : index
    %217 = vector.load %arg14[%c0_221, %c2_222, %c1_223, %c0_224] : memref<2x3x6x128xf32, #tpu.memory_space<vmem>>, vector<1x1x4x128xf32>
    %218 = vector.shape_cast %217 : vector<1x1x4x128xf32> to vector<4x128xf32>
    %219 = vector.shape_cast %216 : vector<4x128xf32> to vector<1x1x4x128xf32>
    tpu.vector_store %arg14[%c0_221, %c2_222, %c1_223, %c0_224], %219 {strides = array<i32>} : memref<2x3x6x128xf32, #tpu.memory_space<vmem>>, vector<1x1x4x128xf32>,
    %220 = vector.extract_strided_slice %199 {offsets = [16, 0], sizes = [4, 128], strides = [1, 1]} : vector<32x128xf32> to vector<4x128xf32>
    %c1_225 = arith.constant 1 : index
    %c0_226 = arith.constant 0 : index
    %c1_227 = arith.constant 1 : index
    %c0_228 = arith.constant 0 : index
    %221 = vector.load %arg15[%c1_225, %c0_226, %c1_227, %c0_228] : memref<2x3x6x128xf32, #tpu.memory_space<vmem>>, vector<1x1x4x128xf32>
    %222 = vector.shape_cast %221 : vector<1x1x4x128xf32> to vector<4x128xf32>
    %223 = vector.shape_cast %220 : vector<4x128xf32> to vector<1x1x4x128xf32>
    tpu.vector_store %arg15[%c1_225, %c0_226, %c1_227, %c0_228], %223 {strides = array<i32>} : memref<2x3x6x128xf32, #tpu.memory_space<vmem>>, vector<1x1x4x128xf32>,
    %224 = vector.extract_strided_slice %199 {offsets = [20, 0], sizes = [4, 128], strides = [1, 1]} : vector<32x128xf32> to vector<4x128xf32>
    %c1_229 = arith.constant 1 : index
    %c1_230 = arith.constant 1 : index
    %c1_231 = arith.constant 1 : index
    %c0_232 = arith.constant 0 : index
    %225 = vector.load %arg14[%c1_229, %c1_230, %c1_231, %c0_232] : memref<2x3x6x128xf32, #tpu.memory_space<vmem>>, vector<1x1x4x128xf32>
    %226 = vector.shape_cast %225 : vector<1x1x4x128xf32> to vector<4x128xf32>
    %227 = vector.shape_cast %224 : vector<4x128xf32> to vector<1x1x4x128xf32>
    tpu.vector_store %arg14[%c1_229, %c1_230, %c1_231, %c0_232], %227 {strides = array<i32>} : memref<2x3x6x128xf32, #tpu.memory_space<vmem>>, vector<1x1x4x128xf32>,
    %228 = vector.extract_strided_slice %199 {offsets = [24, 0], sizes = [4, 128], strides = [1, 1]} : vector<32x128xf32> to vector<4x128xf32>
    %c1_233 = arith.constant 1 : index
    %c1_234 = arith.constant 1 : index
    %c1_235 = arith.constant 1 : index
    %c0_236 = arith.constant 0 : index
    %229 = vector.load %arg15[%c1_233, %c1_234, %c1_235, %c0_236] : memref<2x3x6x128xf32, #tpu.memory_space<vmem>>, vector<1x1x4x128xf32>
    %230 = vector.shape_cast %229 : vector<1x1x4x128xf32> to vector<4x128xf32>
    %231 = vector.shape_cast %228 : vector<4x128xf32> to vector<1x1x4x128xf32>
    tpu.vector_store %arg15[%c1_233, %c1_234, %c1_235, %c0_236], %231 {strides = array<i32>} : memref<2x3x6x128xf32, #tpu.memory_space<vmem>>, vector<1x1x4x128xf32>,
    %232 = vector.extract_strided_slice %199 {offsets = [28, 0], sizes = [4, 128], strides = [1, 1]} : vector<32x128xf32> to vector<4x128xf32>
    %c1_237 = arith.constant 1 : index
    %c2_238 = arith.constant 2 : index
    %c1_239 = arith.constant 1 : index
    %c0_240 = arith.constant 0 : index
    %233 = vector.load %arg14[%c1_237, %c2_238, %c1_239, %c0_240] : memref<2x3x6x128xf32, #tpu.memory_space<vmem>>, vector<1x1x4x128xf32>
    %234 = vector.shape_cast %233 : vector<1x1x4x128xf32> to vector<4x128xf32>
    %235 = vector.shape_cast %232 : vector<4x128xf32> to vector<1x1x4x128xf32>
    tpu.vector_store %arg14[%c1_237, %c2_238, %c1_239, %c0_240], %235 {strides = array<i32>} : memref<2x3x6x128xf32, #tpu.memory_space<vmem>>, vector<1x1x4x128xf32>,
    %cst_241 = arith.constant 0.000000e+00 : f32
    %236 = vector.broadcast %cst_241 : f32 to vector<8x128xf32>
    %c0_242 = arith.constant 0 : index
    %c0_243 = arith.constant 0 : index
    %c0_244 = arith.constant 0 : index
    %c0_245 = arith.constant 0 : index
    %237 = tpu.strided_load %arg14[%c0_242, %c0_243, %c0_244, %c0_245] {strides = array<i32: 1, 1, 2, 1>} : memref<2x3x6x128xf32, #tpu.memory_space<vmem>>, vector<2x2x2x128xf32>
    %238 = vector.shape_cast %237 : vector<2x2x2x128xf32> to vector<8x128xf32>
    %239 = arith.truncf %238 : vector<8x128xf32> to vector<8x128xbf16>
    %c0_246 = arith.constant 0 : index
    %c0_247 = arith.constant 0 : index
    %c0_248 = arith.constant 0 : index
    %240 = vector.load %arg5[%c0_246, %c0_247, %c0_248] : memref<16x128x128xbf16, #tpu.memory_space<vmem>>, vector<1x128x128xbf16>
    %241 = vector.shape_cast %240 : vector<1x128x128xbf16> to vector<128x128xbf16>
    %cst_249 = arith.constant dense<0.000000e+00> : vector<8x128xf32>
    %242 = tpu.matmul %239, %241, %cst_249 {dimension_numbers = #tpu.dot_dimension_numbers<[1], [0], [0], [1], [0, 0, 1, 1], [], []>} : vector<8x128xbf16>, vector<128x128xbf16>, vector<8x128xf32> -> vector<8x128xf32>
    %243 = arith.addf %236, %242 : vector<8x128xf32>
    %c0_250 = arith.constant 0 : index
    %c0_251 = arith.constant 0 : index
    %c1_252 = arith.constant 1 : index
    %c0_253 = arith.constant 0 : index
    %244 = tpu.strided_load %arg14[%c0_250, %c0_251, %c1_252, %c0_253] {strides = array<i32: 1, 1, 2, 1>} : memref<2x3x6x128xf32, #tpu.memory_space<vmem>>, vector<2x2x2x128xf32>
    %245 = vector.shape_cast %244 : vector<2x2x2x128xf32> to vector<8x128xf32>
    %246 = arith.truncf %245 : vector<8x128xf32> to vector<8x128xbf16>
    %c1_254 = arith.constant 1 : index
    %c0_255 = arith.constant 0 : index
    %c0_256 = arith.constant 0 : index
    %247 = vector.load %arg5[%c1_254, %c0_255, %c0_256] : memref<16x128x128xbf16, #tpu.memory_space<vmem>>, vector<1x128x128xbf16>
    %248 = vector.shape_cast %247 : vector<1x128x128xbf16> to vector<128x128xbf16>
    %cst_257 = arith.constant dense<0.000000e+00> : vector<8x128xf32>
    %249 = tpu.matmul %246, %248, %cst_257 {dimension_numbers = #tpu.dot_dimension_numbers<[1], [0], [0], [1], [0, 0, 1, 1], [], []>} : vector<8x128xbf16>, vector<128x128xbf16>, vector<8x128xf32> -> vector<8x128xf32>
    %250 = arith.addf %243, %249 : vector<8x128xf32>
    %c0_258 = arith.constant 0 : index
    %c0_259 = arith.constant 0 : index
    %c2_260 = arith.constant 2 : index
    %c0_261 = arith.constant 0 : index
    %251 = tpu.strided_load %arg14[%c0_258, %c0_259, %c2_260, %c0_261] {strides = array<i32: 1, 1, 2, 1>} : memref<2x3x6x128xf32, #tpu.memory_space<vmem>>, vector<2x2x2x128xf32>
    %252 = vector.shape_cast %251 : vector<2x2x2x128xf32> to vector<8x128xf32>
    %253 = arith.truncf %252 : vector<8x128xf32> to vector<8x128xbf16>
    %c2_262 = arith.constant 2 : index
    %c0_263 = arith.constant 0 : index
    %c0_264 = arith.constant 0 : index
    %254 = vector.load %arg5[%c2_262, %c0_263, %c0_264] : memref<16x128x128xbf16, #tpu.memory_space<vmem>>, vector<1x128x128xbf16>
    %255 = vector.shape_cast %254 : vector<1x128x128xbf16> to vector<128x128xbf16>
    %cst_265 = arith.constant dense<0.000000e+00> : vector<8x128xf32>
    %256 = tpu.matmul %253, %255, %cst_265 {dimension_numbers = #tpu.dot_dimension_numbers<[1], [0], [0], [1], [0, 0, 1, 1], [], []>} : vector<8x128xbf16>, vector<128x128xbf16>, vector<8x128xf32> -> vector<8x128xf32>
    %257 = arith.addf %250, %256 : vector<8x128xf32>
    %c0_266 = arith.constant 0 : index
    %c0_267 = arith.constant 0 : index
    %c3_268 = arith.constant 3 : index
    %c0_269 = arith.constant 0 : index
    %258 = tpu.strided_load %arg14[%c0_266, %c0_267, %c3_268, %c0_269] {strides = array<i32: 1, 1, 2, 1>} : memref<2x3x6x128xf32, #tpu.memory_space<vmem>>, vector<2x2x2x128xf32>
    %259 = vector.shape_cast %258 : vector<2x2x2x128xf32> to vector<8x128xf32>
    %260 = arith.truncf %259 : vector<8x128xf32> to vector<8x128xbf16>
    %c3_270 = arith.constant 3 : index
    %c0_271 = arith.constant 0 : index
    %c0_272 = arith.constant 0 : index
    %261 = vector.load %arg5[%c3_270, %c0_271, %c0_272] : memref<16x128x128xbf16, #tpu.memory_space<vmem>>, vector<1x128x128xbf16>
    %262 = vector.shape_cast %261 : vector<1x128x128xbf16> to vector<128x128xbf16>
    %cst_273 = arith.constant dense<0.000000e+00> : vector<8x128xf32>
    %263 = tpu.matmul %260, %262, %cst_273 {dimension_numbers = #tpu.dot_dimension_numbers<[1], [0], [0], [1], [0, 0, 1, 1], [], []>} : vector<8x128xbf16>, vector<128x128xbf16>, vector<8x128xf32> -> vector<8x128xf32>
    %264 = arith.addf %257, %263 : vector<8x128xf32>
    %c0_274 = arith.constant 0 : index
    %c0_275 = arith.constant 0 : index
    %c0_276 = arith.constant 0 : index
    %c0_277 = arith.constant 0 : index
    %265 = tpu.strided_load %arg15[%c0_274, %c0_275, %c0_276, %c0_277] {strides = array<i32: 1, 1, 2, 1>} : memref<2x3x6x128xf32, #tpu.memory_space<vmem>>, vector<2x2x2x128xf32>
    %266 = vector.shape_cast %265 : vector<2x2x2x128xf32> to vector<8x128xf32>
    %267 = arith.truncf %266 : vector<8x128xf32> to vector<8x128xbf16>
    %c4_278 = arith.constant 4 : index
    %c0_279 = arith.constant 0 : index
    %c0_280 = arith.constant 0 : index
    %268 = vector.load %arg5[%c4_278, %c0_279, %c0_280] : memref<16x128x128xbf16, #tpu.memory_space<vmem>>, vector<1x128x128xbf16>
    %269 = vector.shape_cast %268 : vector<1x128x128xbf16> to vector<128x128xbf16>
    %cst_281 = arith.constant dense<0.000000e+00> : vector<8x128xf32>
    %270 = tpu.matmul %267, %269, %cst_281 {dimension_numbers = #tpu.dot_dimension_numbers<[1], [0], [0], [1], [0, 0, 1, 1], [], []>} : vector<8x128xbf16>, vector<128x128xbf16>, vector<8x128xf32> -> vector<8x128xf32>
    %271 = arith.addf %264, %270 : vector<8x128xf32>
    %c0_282 = arith.constant 0 : index
    %c0_283 = arith.constant 0 : index
    %c1_284 = arith.constant 1 : index
    %c0_285 = arith.constant 0 : index
    %272 = tpu.strided_load %arg15[%c0_282, %c0_283, %c1_284, %c0_285] {strides = array<i32: 1, 1, 2, 1>} : memref<2x3x6x128xf32, #tpu.memory_space<vmem>>, vector<2x2x2x128xf32>
    %273 = vector.shape_cast %272 : vector<2x2x2x128xf32> to vector<8x128xf32>
    %274 = arith.truncf %273 : vector<8x128xf32> to vector<8x128xbf16>
    %c5_286 = arith.constant 5 : index
    %c0_287 = arith.constant 0 : index
    %c0_288 = arith.constant 0 : index
    %275 = vector.load %arg5[%c5_286, %c0_287, %c0_288] : memref<16x128x128xbf16, #tpu.memory_space<vmem>>, vector<1x128x128xbf16>
    %276 = vector.shape_cast %275 : vector<1x128x128xbf16> to vector<128x128xbf16>
    %cst_289 = arith.constant dense<0.000000e+00> : vector<8x128xf32>
    %277 = tpu.matmul %274, %276, %cst_289 {dimension_numbers = #tpu.dot_dimension_numbers<[1], [0], [0], [1], [0, 0, 1, 1], [], []>} : vector<8x128xbf16>, vector<128x128xbf16>, vector<8x128xf32> -> vector<8x128xf32>
    %278 = arith.addf %271, %277 : vector<8x128xf32>
    %c0_290 = arith.constant 0 : index
    %c0_291 = arith.constant 0 : index
    %c2_292 = arith.constant 2 : index
    %c0_293 = arith.constant 0 : index
    %279 = tpu.strided_load %arg15[%c0_290, %c0_291, %c2_292, %c0_293] {strides = array<i32: 1, 1, 2, 1>} : memref<2x3x6x128xf32, #tpu.memory_space<vmem>>, vector<2x2x2x128xf32>
    %280 = vector.shape_cast %279 : vector<2x2x2x128xf32> to vector<8x128xf32>
    %281 = arith.truncf %280 : vector<8x128xf32> to vector<8x128xbf16>
    %c6_294 = arith.constant 6 : index
    %c0_295 = arith.constant 0 : index
    %c0_296 = arith.constant 0 : index
    %282 = vector.load %arg5[%c6_294, %c0_295, %c0_296] : memref<16x128x128xbf16, #tpu.memory_space<vmem>>, vector<1x128x128xbf16>
    %283 = vector.shape_cast %282 : vector<1x128x128xbf16> to vector<128x128xbf16>
    %cst_297 = arith.constant dense<0.000000e+00> : vector<8x128xf32>
    %284 = tpu.matmul %281, %283, %cst_297 {dimension_numbers = #tpu.dot_dimension_numbers<[1], [0], [0], [1], [0, 0, 1, 1], [], []>} : vector<8x128xbf16>, vector<128x128xbf16>, vector<8x128xf32> -> vector<8x128xf32>
    %285 = arith.addf %278, %284 : vector<8x128xf32>
    %c0_298 = arith.constant 0 : index
    %c0_299 = arith.constant 0 : index
    %c3_300 = arith.constant 3 : index
    %c0_301 = arith.constant 0 : index
    %286 = tpu.strided_load %arg15[%c0_298, %c0_299, %c3_300, %c0_301] {strides = array<i32: 1, 1, 2, 1>} : memref<2x3x6x128xf32, #tpu.memory_space<vmem>>, vector<2x2x2x128xf32>
    %287 = vector.shape_cast %286 : vector<2x2x2x128xf32> to vector<8x128xf32>
    %288 = arith.truncf %287 : vector<8x128xf32> to vector<8x128xbf16>
    %c7_302 = arith.constant 7 : index
    %c0_303 = arith.constant 0 : index
    %c0_304 = arith.constant 0 : index
    %289 = vector.load %arg5[%c7_302, %c0_303, %c0_304] : memref<16x128x128xbf16, #tpu.memory_space<vmem>>, vector<1x128x128xbf16>
    %290 = vector.shape_cast %289 : vector<1x128x128xbf16> to vector<128x128xbf16>
    %cst_305 = arith.constant dense<0.000000e+00> : vector<8x128xf32>
    %291 = tpu.matmul %288, %290, %cst_305 {dimension_numbers = #tpu.dot_dimension_numbers<[1], [0], [0], [1], [0, 0, 1, 1], [], []>} : vector<8x128xbf16>, vector<128x128xbf16>, vector<8x128xf32> -> vector<8x128xf32>
    %292 = arith.addf %285, %291 : vector<8x128xf32>
    %c0_306 = arith.constant 0 : index
    %c1_307 = arith.constant 1 : index
    %c0_308 = arith.constant 0 : index
    %c0_309 = arith.constant 0 : index
    %293 = tpu.strided_load %arg14[%c0_306, %c1_307, %c0_308, %c0_309] {strides = array<i32: 1, 1, 2, 1>} : memref<2x3x6x128xf32, #tpu.memory_space<vmem>>, vector<2x2x2x128xf32>
    %294 = vector.shape_cast %293 : vector<2x2x2x128xf32> to vector<8x128xf32>
    %295 = arith.truncf %294 : vector<8x128xf32> to vector<8x128xbf16>
    %c8_310 = arith.constant 8 : index
    %c0_311 = arith.constant 0 : index
    %c0_312 = arith.constant 0 : index
    %296 = vector.load %arg5[%c8_310, %c0_311, %c0_312] : memref<16x128x128xbf16, #tpu.memory_space<vmem>>, vector<1x128x128xbf16>
    %297 = vector.shape_cast %296 : vector<1x128x128xbf16> to vector<128x128xbf16>
    %cst_313 = arith.constant dense<0.000000e+00> : vector<8x128xf32>
    %298 = tpu.matmul %295, %297, %cst_313 {dimension_numbers = #tpu.dot_dimension_numbers<[1], [0], [0], [1], [0, 0, 1, 1], [], []>} : vector<8x128xbf16>, vector<128x128xbf16>, vector<8x128xf32> -> vector<8x128xf32>
    %299 = arith.addf %292, %298 : vector<8x128xf32>
    %c0_314 = arith.constant 0 : index
    %c1_315 = arith.constant 1 : index
    %c1_316 = arith.constant 1 : index
    %c0_317 = arith.constant 0 : index
    %300 = tpu.strided_load %arg14[%c0_314, %c1_315, %c1_316, %c0_317] {strides = array<i32: 1, 1, 2, 1>} : memref<2x3x6x128xf32, #tpu.memory_space<vmem>>, vector<2x2x2x128xf32>
    %301 = vector.shape_cast %300 : vector<2x2x2x128xf32> to vector<8x128xf32>
    %302 = arith.truncf %301 : vector<8x128xf32> to vector<8x128xbf16>
    %c9_318 = arith.constant 9 : index
    %c0_319 = arith.constant 0 : index
    %c0_320 = arith.constant 0 : index
    %303 = vector.load %arg5[%c9_318, %c0_319, %c0_320] : memref<16x128x128xbf16, #tpu.memory_space<vmem>>, vector<1x128x128xbf16>
    %304 = vector.shape_cast %303 : vector<1x128x128xbf16> to vector<128x128xbf16>
    %cst_321 = arith.constant dense<0.000000e+00> : vector<8x128xf32>
    %305 = tpu.matmul %302, %304, %cst_321 {dimension_numbers = #tpu.dot_dimension_numbers<[1], [0], [0], [1], [0, 0, 1, 1], [], []>} : vector<8x128xbf16>, vector<128x128xbf16>, vector<8x128xf32> -> vector<8x128xf32>
    %306 = arith.addf %299, %305 : vector<8x128xf32>
    %c0_322 = arith.constant 0 : index
    %c1_323 = arith.constant 1 : index
    %c2_324 = arith.constant 2 : index
    %c0_325 = arith.constant 0 : index
    %307 = tpu.strided_load %arg14[%c0_322, %c1_323, %c2_324, %c0_325] {strides = array<i32: 1, 1, 2, 1>} : memref<2x3x6x128xf32, #tpu.memory_space<vmem>>, vector<2x2x2x128xf32>
    %308 = vector.shape_cast %307 : vector<2x2x2x128xf32> to vector<8x128xf32>
    %309 = arith.truncf %308 : vector<8x128xf32> to vector<8x128xbf16>
    %c10_326 = arith.constant 10 : index
    %c0_327 = arith.constant 0 : index
    %c0_328 = arith.constant 0 : index
    %310 = vector.load %arg5[%c10_326, %c0_327, %c0_328] : memref<16x128x128xbf16, #tpu.memory_space<vmem>>, vector<1x128x128xbf16>
    %311 = vector.shape_cast %310 : vector<1x128x128xbf16> to vector<128x128xbf16>
    %cst_329 = arith.constant dense<0.000000e+00> : vector<8x128xf32>
    %312 = tpu.matmul %309, %311, %cst_329 {dimension_numbers = #tpu.dot_dimension_numbers<[1], [0], [0], [1], [0, 0, 1, 1], [], []>} : vector<8x128xbf16>, vector<128x128xbf16>, vector<8x128xf32> -> vector<8x128xf32>
    %313 = arith.addf %306, %312 : vector<8x128xf32>
    %c0_330 = arith.constant 0 : index
    %c1_331 = arith.constant 1 : index
    %c3_332 = arith.constant 3 : index
    %c0_333 = arith.constant 0 : index
    %314 = tpu.strided_load %arg14[%c0_330, %c1_331, %c3_332, %c0_333] {strides = array<i32: 1, 1, 2, 1>} : memref<2x3x6x128xf32, #tpu.memory_space<vmem>>, vector<2x2x2x128xf32>
    %315 = vector.shape_cast %314 : vector<2x2x2x128xf32> to vector<8x128xf32>
    %316 = arith.truncf %315 : vector<8x128xf32> to vector<8x128xbf16>
    %c11_334 = arith.constant 11 : index
    %c0_335 = arith.constant 0 : index
    %c0_336 = arith.constant 0 : index
    %317 = vector.load %arg5[%c11_334, %c0_335, %c0_336] : memref<16x128x128xbf16, #tpu.memory_space<vmem>>, vector<1x128x128xbf16>
    %318 = vector.shape_cast %317 : vector<1x128x128xbf16> to vector<128x128xbf16>
    %cst_337 = arith.constant dense<0.000000e+00> : vector<8x128xf32>
    %319 = tpu.matmul %316, %318, %cst_337 {dimension_numbers = #tpu.dot_dimension_numbers<[1], [0], [0], [1], [0, 0, 1, 1], [], []>} : vector<8x128xbf16>, vector<128x128xbf16>, vector<8x128xf32> -> vector<8x128xf32>
    %320 = arith.addf %313, %319 : vector<8x128xf32>
    %c0_338 = arith.constant 0 : index
    %c1_339 = arith.constant 1 : index
    %c0_340 = arith.constant 0 : index
    %c0_341 = arith.constant 0 : index
    %321 = tpu.strided_load %arg15[%c0_338, %c1_339, %c0_340, %c0_341] {strides = array<i32: 1, 1, 2, 1>} : memref<2x3x6x128xf32, #tpu.memory_space<vmem>>, vector<2x2x2x128xf32>
    %322 = vector.shape_cast %321 : vector<2x2x2x128xf32> to vector<8x128xf32>
    %323 = arith.truncf %322 : vector<8x128xf32> to vector<8x128xbf16>
    %c12_342 = arith.constant 12 : index
    %c0_343 = arith.constant 0 : index
    %c0_344 = arith.constant 0 : index
    %324 = vector.load %arg5[%c12_342, %c0_343, %c0_344] : memref<16x128x128xbf16, #tpu.memory_space<vmem>>, vector<1x128x128xbf16>
    %325 = vector.shape_cast %324 : vector<1x128x128xbf16> to vector<128x128xbf16>
    %cst_345 = arith.constant dense<0.000000e+00> : vector<8x128xf32>
    %326 = tpu.matmul %323, %325, %cst_345 {dimension_numbers = #tpu.dot_dimension_numbers<[1], [0], [0], [1], [0, 0, 1, 1], [], []>} : vector<8x128xbf16>, vector<128x128xbf16>, vector<8x128xf32> -> vector<8x128xf32>
    %327 = arith.addf %320, %326 : vector<8x128xf32>
    %c0_346 = arith.constant 0 : index
    %c1_347 = arith.constant 1 : index
    %c1_348 = arith.constant 1 : index
    %c0_349 = arith.constant 0 : index
    %328 = tpu.strided_load %arg15[%c0_346, %c1_347, %c1_348, %c0_349] {strides = array<i32: 1, 1, 2, 1>} : memref<2x3x6x128xf32, #tpu.memory_space<vmem>>, vector<2x2x2x128xf32>
    %329 = vector.shape_cast %328 : vector<2x2x2x128xf32> to vector<8x128xf32>
    %330 = arith.truncf %329 : vector<8x128xf32> to vector<8x128xbf16>
    %c13_350 = arith.constant 13 : index
    %c0_351 = arith.constant 0 : index
    %c0_352 = arith.constant 0 : index
    %331 = vector.load %arg5[%c13_350, %c0_351, %c0_352] : memref<16x128x128xbf16, #tpu.memory_space<vmem>>, vector<1x128x128xbf16>
    %332 = vector.shape_cast %331 : vector<1x128x128xbf16> to vector<128x128xbf16>
    %cst_353 = arith.constant dense<0.000000e+00> : vector<8x128xf32>
    %333 = tpu.matmul %330, %332, %cst_353 {dimension_numbers = #tpu.dot_dimension_numbers<[1], [0], [0], [1], [0, 0, 1, 1], [], []>} : vector<8x128xbf16>, vector<128x128xbf16>, vector<8x128xf32> -> vector<8x128xf32>
    %334 = arith.addf %327, %333 : vector<8x128xf32>
    %c0_354 = arith.constant 0 : index
    %c1_355 = arith.constant 1 : index
    %c2_356 = arith.constant 2 : index
    %c0_357 = arith.constant 0 : index
    %335 = tpu.strided_load %arg15[%c0_354, %c1_355, %c2_356, %c0_357] {strides = array<i32: 1, 1, 2, 1>} : memref<2x3x6x128xf32, #tpu.memory_space<vmem>>, vector<2x2x2x128xf32>
    %336 = vector.shape_cast %335 : vector<2x2x2x128xf32> to vector<8x128xf32>
    %337 = arith.truncf %336 : vector<8x128xf32> to vector<8x128xbf16>
    %c14_358 = arith.constant 14 : index
    %c0_359 = arith.constant 0 : index
    %c0_360 = arith.constant 0 : index
    %338 = vector.load %arg5[%c14_358, %c0_359, %c0_360] : memref<16x128x128xbf16, #tpu.memory_space<vmem>>, vector<1x128x128xbf16>
    %339 = vector.shape_cast %338 : vector<1x128x128xbf16> to vector<128x128xbf16>
    %cst_361 = arith.constant dense<0.000000e+00> : vector<8x128xf32>
    %340 = tpu.matmul %337, %339, %cst_361 {dimension_numbers = #tpu.dot_dimension_numbers<[1], [0], [0], [1], [0, 0, 1, 1], [], []>} : vector<8x128xbf16>, vector<128x128xbf16>, vector<8x128xf32> -> vector<8x128xf32>
    %341 = arith.addf %334, %340 : vector<8x128xf32>
    %c0_362 = arith.constant 0 : index
    %c1_363 = arith.constant 1 : index
    %c3_364 = arith.constant 3 : index
    %c0_365 = arith.constant 0 : index
    %342 = tpu.strided_load %arg15[%c0_362, %c1_363, %c3_364, %c0_365] {strides = array<i32: 1, 1, 2, 1>} : memref<2x3x6x128xf32, #tpu.memory_space<vmem>>, vector<2x2x2x128xf32>
    %343 = vector.shape_cast %342 : vector<2x2x2x128xf32> to vector<8x128xf32>
    %344 = arith.truncf %343 : vector<8x128xf32> to vector<8x128xbf16>
    %c15_366 = arith.constant 15 : index
    %c0_367 = arith.constant 0 : index
    %c0_368 = arith.constant 0 : index
    %345 = vector.load %arg5[%c15_366, %c0_367, %c0_368] : memref<16x128x128xbf16, #tpu.memory_space<vmem>>, vector<1x128x128xbf16>
    %346 = vector.shape_cast %345 : vector<1x128x128xbf16> to vector<128x128xbf16>
    %cst_369 = arith.constant dense<0.000000e+00> : vector<8x128xf32>
    %347 = tpu.matmul %344, %346, %cst_369 {dimension_numbers = #tpu.dot_dimension_numbers<[1], [0], [0], [1], [0, 0, 1, 1], [], []>} : vector<8x128xbf16>, vector<128x128xbf16>, vector<8x128xf32> -> vector<8x128xf32>
    %348 = arith.addf %341, %347 : vector<8x128xf32>
    %c0_370 = arith.constant 0 : index
    %c0_371 = arith.constant 0 : index
    %349 = vector.load %arg6[%c0_370, %c0_371] : memref<1x128xf32, #tpu.memory_space<vmem>>, vector<1x128xf32>
    %350 = vector.broadcast %349 : vector<1x128xf32> to vector<8x128xf32>
    %351 = arith.addf %348, %350 : vector<8x128xf32>
    %cst_372 = arith.constant 0.000000e+00 : f32
    %352 = vector.broadcast %cst_372 : f32 to vector<8x128xf32>
    %353 = arith.cmpf ogt, %351, %352 : vector<8x128xf32>
    %cst_373 = arith.constant 2.000000e-01 : f32
    %354 = vector.broadcast %cst_373 : f32 to vector<8x128xf32>
    %355 = arith.mulf %354, %351 : vector<8x128xf32>
    %356 = arith.select %353, %351, %355 : vector<8x128xi1>, vector<8x128xf32>
    %cst_374 = arith.constant 0.000000e+00 : f32
    %357 = vector.broadcast %cst_374 : f32 to vector<2x2x4x128xf32>
    %c0_375 = arith.constant 0 : index
    %c0_376 = arith.constant 0 : index
    %c0_377 = arith.constant 0 : index
    %c0_378 = arith.constant 0 : index
    %358 = vector.load %arg16[%c0_375, %c0_376, %c0_377, %c0_378] : memref<2x2x4x128xf32, #tpu.memory_space<vmem>>, vector<2x2x4x128xf32>
    tpu.vector_store %arg16[%c0_375, %c0_376, %c0_377, %c0_378], %357 {strides = array<i32>} : memref<2x2x4x128xf32, #tpu.memory_space<vmem>>, vector<2x2x4x128xf32>,
    %cst_379 = arith.constant 0.000000e+00 : f32
    %359 = vector.broadcast %cst_379 : f32 to vector<2x2x4x128xf32>
    %c0_380 = arith.constant 0 : index
    %c0_381 = arith.constant 0 : index
    %c0_382 = arith.constant 0 : index
    %c0_383 = arith.constant 0 : index
    %360 = vector.load %arg17[%c0_380, %c0_381, %c0_382, %c0_383] : memref<2x2x4x128xf32, #tpu.memory_space<vmem>>, vector<2x2x4x128xf32>
    tpu.vector_store %arg17[%c0_380, %c0_381, %c0_382, %c0_383], %359 {strides = array<i32>} : memref<2x2x4x128xf32, #tpu.memory_space<vmem>>, vector<2x2x4x128xf32>,
    %361 = vector.extract_strided_slice %356 {offsets = [0, 0], sizes = [2, 128], strides = [1, 1]} : vector<8x128xf32> to vector<2x128xf32>
    %c0_384 = arith.constant 0 : index
    %c0_385 = arith.constant 0 : index
    %c1_386 = arith.constant 1 : index
    %c0_387 = arith.constant 0 : index
    %362 = vector.load %arg17[%c0_384, %c0_385, %c1_386, %c0_387] : memref<2x2x4x128xf32, #tpu.memory_space<vmem>>, vector<1x1x2x128xf32>
    %363 = vector.shape_cast %362 : vector<1x1x2x128xf32> to vector<2x128xf32>
    %364 = vector.shape_cast %361 : vector<2x128xf32> to vector<1x1x2x128xf32>
    tpu.vector_store %arg17[%c0_384, %c0_385, %c1_386, %c0_387], %364 {strides = array<i32>} : memref<2x2x4x128xf32, #tpu.memory_space<vmem>>, vector<1x1x2x128xf32>,
    %365 = vector.extract_strided_slice %356 {offsets = [2, 0], sizes = [2, 128], strides = [1, 1]} : vector<8x128xf32> to vector<2x128xf32>
    %c0_388 = arith.constant 0 : index
    %c1_389 = arith.constant 1 : index
    %c1_390 = arith.constant 1 : index
    %c0_391 = arith.constant 0 : index
    %366 = vector.load %arg16[%c0_388, %c1_389, %c1_390, %c0_391] : memref<2x2x4x128xf32, #tpu.memory_space<vmem>>, vector<1x1x2x128xf32>
    %367 = vector.shape_cast %366 : vector<1x1x2x128xf32> to vector<2x128xf32>
    %368 = vector.shape_cast %365 : vector<2x128xf32> to vector<1x1x2x128xf32>
    tpu.vector_store %arg16[%c0_388, %c1_389, %c1_390, %c0_391], %368 {strides = array<i32>} : memref<2x2x4x128xf32, #tpu.memory_space<vmem>>, vector<1x1x2x128xf32>,
    %369 = vector.extract_strided_slice %356 {offsets = [4, 0], sizes = [2, 128], strides = [1, 1]} : vector<8x128xf32> to vector<2x128xf32>
    %c1_392 = arith.constant 1 : index
    %c0_393 = arith.constant 0 : index
    %c1_394 = arith.constant 1 : index
    %c0_395 = arith.constant 0 : index
    %370 = vector.load %arg17[%c1_392, %c0_393, %c1_394, %c0_395] : memref<2x2x4x128xf32, #tpu.memory_space<vmem>>, vector<1x1x2x128xf32>
    %371 = vector.shape_cast %370 : vector<1x1x2x128xf32> to vector<2x128xf32>
    %372 = vector.shape_cast %369 : vector<2x128xf32> to vector<1x1x2x128xf32>
    tpu.vector_store %arg17[%c1_392, %c0_393, %c1_394, %c0_395], %372 {strides = array<i32>} : memref<2x2x4x128xf32, #tpu.memory_space<vmem>>, vector<1x1x2x128xf32>,
    %373 = vector.extract_strided_slice %356 {offsets = [6, 0], sizes = [2, 128], strides = [1, 1]} : vector<8x128xf32> to vector<2x128xf32>
    %c1_396 = arith.constant 1 : index
    %c1_397 = arith.constant 1 : index
    %c1_398 = arith.constant 1 : index
    %c0_399 = arith.constant 0 : index
    %374 = vector.load %arg16[%c1_396, %c1_397, %c1_398, %c0_399] : memref<2x2x4x128xf32, #tpu.memory_space<vmem>>, vector<1x1x2x128xf32>
    %375 = vector.shape_cast %374 : vector<1x1x2x128xf32> to vector<2x128xf32>
    %376 = vector.shape_cast %373 : vector<2x128xf32> to vector<1x1x2x128xf32>
    tpu.vector_store %arg16[%c1_396, %c1_397, %c1_398, %c0_399], %376 {strides = array<i32>} : memref<2x2x4x128xf32, #tpu.memory_space<vmem>>, vector<1x1x2x128xf32>,
    %cst_400 = arith.constant 0.000000e+00 : f32
    %377 = vector.broadcast %cst_400 : f32 to vector<2x128xf32>
    %c0_401 = arith.constant 0 : index
    %c0_402 = arith.constant 0 : index
    %c0_403 = arith.constant 0 : index
    %c0_404 = arith.constant 0 : index
    %378 = tpu.strided_load %arg16[%c0_401, %c0_402, %c0_403, %c0_404] {strides = array<i32: 1, 1, 2, 1>} : memref<2x2x4x128xf32, #tpu.memory_space<vmem>>, vector<2x1x1x128xf32>
    %379 = vector.shape_cast %378 : vector<2x1x1x128xf32> to vector<2x128xf32>
    %380 = arith.truncf %379 : vector<2x128xf32> to vector<2x128xbf16>
    %c0_405 = arith.constant 0 : index
    %c0_406 = arith.constant 0 : index
    %c0_407 = arith.constant 0 : index
    %381 = vector.load %arg7[%c0_405, %c0_406, %c0_407] : memref<16x128x128xbf16, #tpu.memory_space<vmem>>, vector<1x128x128xbf16>
    %382 = vector.shape_cast %381 : vector<1x128x128xbf16> to vector<128x128xbf16>
    %cst_408 = arith.constant dense<0.000000e+00> : vector<2x128xf32>
    %383 = tpu.matmul %380, %382, %cst_408 {dimension_numbers = #tpu.dot_dimension_numbers<[1], [0], [0], [1], [0, 0, 1, 1], [], []>} : vector<2x128xbf16>, vector<128x128xbf16>, vector<2x128xf32> -> vector<2x128xf32>
    %384 = arith.addf %377, %383 : vector<2x128xf32>
    %c0_409 = arith.constant 0 : index
    %c0_410 = arith.constant 0 : index
    %c1_411 = arith.constant 1 : index
    %c0_412 = arith.constant 0 : index
    %385 = tpu.strided_load %arg16[%c0_409, %c0_410, %c1_411, %c0_412] {strides = array<i32: 1, 1, 2, 1>} : memref<2x2x4x128xf32, #tpu.memory_space<vmem>>, vector<2x1x1x128xf32>
    %386 = vector.shape_cast %385 : vector<2x1x1x128xf32> to vector<2x128xf32>
    %387 = arith.truncf %386 : vector<2x128xf32> to vector<2x128xbf16>
    %c1_413 = arith.constant 1 : index
    %c0_414 = arith.constant 0 : index
    %c0_415 = arith.constant 0 : index
    %388 = vector.load %arg7[%c1_413, %c0_414, %c0_415] : memref<16x128x128xbf16, #tpu.memory_space<vmem>>, vector<1x128x128xbf16>
    %389 = vector.shape_cast %388 : vector<1x128x128xbf16> to vector<128x128xbf16>
    %cst_416 = arith.constant dense<0.000000e+00> : vector<2x128xf32>
    %390 = tpu.matmul %387, %389, %cst_416 {dimension_numbers = #tpu.dot_dimension_numbers<[1], [0], [0], [1], [0, 0, 1, 1], [], []>} : vector<2x128xbf16>, vector<128x128xbf16>, vector<2x128xf32> -> vector<2x128xf32>
    %391 = arith.addf %384, %390 : vector<2x128xf32>
    %c0_417 = arith.constant 0 : index
    %c0_418 = arith.constant 0 : index
    %c2_419 = arith.constant 2 : index
    %c0_420 = arith.constant 0 : index
    %392 = tpu.strided_load %arg16[%c0_417, %c0_418, %c2_419, %c0_420] {strides = array<i32: 1, 1, 2, 1>} : memref<2x2x4x128xf32, #tpu.memory_space<vmem>>, vector<2x1x1x128xf32>
    %393 = vector.shape_cast %392 : vector<2x1x1x128xf32> to vector<2x128xf32>
    %394 = arith.truncf %393 : vector<2x128xf32> to vector<2x128xbf16>
    %c2_421 = arith.constant 2 : index
    %c0_422 = arith.constant 0 : index
    %c0_423 = arith.constant 0 : index
    %395 = vector.load %arg7[%c2_421, %c0_422, %c0_423] : memref<16x128x128xbf16, #tpu.memory_space<vmem>>, vector<1x128x128xbf16>
    %396 = vector.shape_cast %395 : vector<1x128x128xbf16> to vector<128x128xbf16>
    %cst_424 = arith.constant dense<0.000000e+00> : vector<2x128xf32>
    %397 = tpu.matmul %394, %396, %cst_424 {dimension_numbers = #tpu.dot_dimension_numbers<[1], [0], [0], [1], [0, 0, 1, 1], [], []>} : vector<2x128xbf16>, vector<128x128xbf16>, vector<2x128xf32> -> vector<2x128xf32>
    %398 = arith.addf %391, %397 : vector<2x128xf32>
    %c0_425 = arith.constant 0 : index
    %c0_426 = arith.constant 0 : index
    %c3_427 = arith.constant 3 : index
    %c0_428 = arith.constant 0 : index
    %399 = tpu.strided_load %arg16[%c0_425, %c0_426, %c3_427, %c0_428] {strides = array<i32: 1, 1, 2, 1>} : memref<2x2x4x128xf32, #tpu.memory_space<vmem>>, vector<2x1x1x128xf32>
    %400 = vector.shape_cast %399 : vector<2x1x1x128xf32> to vector<2x128xf32>
    %401 = arith.truncf %400 : vector<2x128xf32> to vector<2x128xbf16>
    %c3_429 = arith.constant 3 : index
    %c0_430 = arith.constant 0 : index
    %c0_431 = arith.constant 0 : index
    %402 = vector.load %arg7[%c3_429, %c0_430, %c0_431] : memref<16x128x128xbf16, #tpu.memory_space<vmem>>, vector<1x128x128xbf16>
    %403 = vector.shape_cast %402 : vector<1x128x128xbf16> to vector<128x128xbf16>
    %cst_432 = arith.constant dense<0.000000e+00> : vector<2x128xf32>
    %404 = tpu.matmul %401, %403, %cst_432 {dimension_numbers = #tpu.dot_dimension_numbers<[1], [0], [0], [1], [0, 0, 1, 1], [], []>} : vector<2x128xbf16>, vector<128x128xbf16>, vector<2x128xf32> -> vector<2x128xf32>
    %405 = arith.addf %398, %404 : vector<2x128xf32>
    %c0_433 = arith.constant 0 : index
    %c0_434 = arith.constant 0 : index
    %c0_435 = arith.constant 0 : index
    %c0_436 = arith.constant 0 : index
    %406 = tpu.strided_load %arg17[%c0_433, %c0_434, %c0_435, %c0_436] {strides = array<i32: 1, 1, 2, 1>} : memref<2x2x4x128xf32, #tpu.memory_space<vmem>>, vector<2x1x1x128xf32>
    %407 = vector.shape_cast %406 : vector<2x1x1x128xf32> to vector<2x128xf32>
    %408 = arith.truncf %407 : vector<2x128xf32> to vector<2x128xbf16>
    %c4_437 = arith.constant 4 : index
    %c0_438 = arith.constant 0 : index
    %c0_439 = arith.constant 0 : index
    %409 = vector.load %arg7[%c4_437, %c0_438, %c0_439] : memref<16x128x128xbf16, #tpu.memory_space<vmem>>, vector<1x128x128xbf16>
    %410 = vector.shape_cast %409 : vector<1x128x128xbf16> to vector<128x128xbf16>
    %cst_440 = arith.constant dense<0.000000e+00> : vector<2x128xf32>
    %411 = tpu.matmul %408, %410, %cst_440 {dimension_numbers = #tpu.dot_dimension_numbers<[1], [0], [0], [1], [0, 0, 1, 1], [], []>} : vector<2x128xbf16>, vector<128x128xbf16>, vector<2x128xf32> -> vector<2x128xf32>
    %412 = arith.addf %405, %411 : vector<2x128xf32>
    %c0_441 = arith.constant 0 : index
    %c0_442 = arith.constant 0 : index
    %c1_443 = arith.constant 1 : index
    %c0_444 = arith.constant 0 : index
    %413 = tpu.strided_load %arg17[%c0_441, %c0_442, %c1_443, %c0_444] {strides = array<i32: 1, 1, 2, 1>} : memref<2x2x4x128xf32, #tpu.memory_space<vmem>>, vector<2x1x1x128xf32>
    %414 = vector.shape_cast %413 : vector<2x1x1x128xf32> to vector<2x128xf32>
    %415 = arith.truncf %414 : vector<2x128xf32> to vector<2x128xbf16>
    %c5_445 = arith.constant 5 : index
    %c0_446 = arith.constant 0 : index
    %c0_447 = arith.constant 0 : index
    %416 = vector.load %arg7[%c5_445, %c0_446, %c0_447] : memref<16x128x128xbf16, #tpu.memory_space<vmem>>, vector<1x128x128xbf16>
    %417 = vector.shape_cast %416 : vector<1x128x128xbf16> to vector<128x128xbf16>
    %cst_448 = arith.constant dense<0.000000e+00> : vector<2x128xf32>
    %418 = tpu.matmul %415, %417, %cst_448 {dimension_numbers = #tpu.dot_dimension_numbers<[1], [0], [0], [1], [0, 0, 1, 1], [], []>} : vector<2x128xbf16>, vector<128x128xbf16>, vector<2x128xf32> -> vector<2x128xf32>
    %419 = arith.addf %412, %418 : vector<2x128xf32>
    %c0_449 = arith.constant 0 : index
    %c0_450 = arith.constant 0 : index
    %c2_451 = arith.constant 2 : index
    %c0_452 = arith.constant 0 : index
    %420 = tpu.strided_load %arg17[%c0_449, %c0_450, %c2_451, %c0_452] {strides = array<i32: 1, 1, 2, 1>} : memref<2x2x4x128xf32, #tpu.memory_space<vmem>>, vector<2x1x1x128xf32>
    %421 = vector.shape_cast %420 : vector<2x1x1x128xf32> to vector<2x128xf32>
    %422 = arith.truncf %421 : vector<2x128xf32> to vector<2x128xbf16>
    %c6_453 = arith.constant 6 : index
    %c0_454 = arith.constant 0 : index
    %c0_455 = arith.constant 0 : index
    %423 = vector.load %arg7[%c6_453, %c0_454, %c0_455] : memref<16x128x128xbf16, #tpu.memory_space<vmem>>, vector<1x128x128xbf16>
    %424 = vector.shape_cast %423 : vector<1x128x128xbf16> to vector<128x128xbf16>
    %cst_456 = arith.constant dense<0.000000e+00> : vector<2x128xf32>
    %425 = tpu.matmul %422, %424, %cst_456 {dimension_numbers = #tpu.dot_dimension_numbers<[1], [0], [0], [1], [0, 0, 1, 1], [], []>} : vector<2x128xbf16>, vector<128x128xbf16>, vector<2x128xf32> -> vector<2x128xf32>
    %426 = arith.addf %419, %425 : vector<2x128xf32>
    %c0_457 = arith.constant 0 : index
    %c0_458 = arith.constant 0 : index
    %c3_459 = arith.constant 3 : index
    %c0_460 = arith.constant 0 : index
    %427 = tpu.strided_load %arg17[%c0_457, %c0_458, %c3_459, %c0_460] {strides = array<i32: 1, 1, 2, 1>} : memref<2x2x4x128xf32, #tpu.memory_space<vmem>>, vector<2x1x1x128xf32>
    %428 = vector.shape_cast %427 : vector<2x1x1x128xf32> to vector<2x128xf32>
    %429 = arith.truncf %428 : vector<2x128xf32> to vector<2x128xbf16>
    %c7_461 = arith.constant 7 : index
    %c0_462 = arith.constant 0 : index
    %c0_463 = arith.constant 0 : index
    %430 = vector.load %arg7[%c7_461, %c0_462, %c0_463] : memref<16x128x128xbf16, #tpu.memory_space<vmem>>, vector<1x128x128xbf16>
    %431 = vector.shape_cast %430 : vector<1x128x128xbf16> to vector<128x128xbf16>
    %cst_464 = arith.constant dense<0.000000e+00> : vector<2x128xf32>
    %432 = tpu.matmul %429, %431, %cst_464 {dimension_numbers = #tpu.dot_dimension_numbers<[1], [0], [0], [1], [0, 0, 1, 1], [], []>} : vector<2x128xbf16>, vector<128x128xbf16>, vector<2x128xf32> -> vector<2x128xf32>
    %433 = arith.addf %426, %432 : vector<2x128xf32>
    %c0_465 = arith.constant 0 : index
    %c1_466 = arith.constant 1 : index
    %c0_467 = arith.constant 0 : index
    %c0_468 = arith.constant 0 : index
    %434 = tpu.strided_load %arg16[%c0_465, %c1_466, %c0_467, %c0_468] {strides = array<i32: 1, 1, 2, 1>} : memref<2x2x4x128xf32, #tpu.memory_space<vmem>>, vector<2x1x1x128xf32>
    %435 = vector.shape_cast %434 : vector<2x1x1x128xf32> to vector<2x128xf32>
    %436 = arith.truncf %435 : vector<2x128xf32> to vector<2x128xbf16>
    %c8_469 = arith.constant 8 : index
    %c0_470 = arith.constant 0 : index
    %c0_471 = arith.constant 0 : index
    %437 = vector.load %arg7[%c8_469, %c0_470, %c0_471] : memref<16x128x128xbf16, #tpu.memory_space<vmem>>, vector<1x128x128xbf16>
    %438 = vector.shape_cast %437 : vector<1x128x128xbf16> to vector<128x128xbf16>
    %cst_472 = arith.constant dense<0.000000e+00> : vector<2x128xf32>
    %439 = tpu.matmul %436, %438, %cst_472 {dimension_numbers = #tpu.dot_dimension_numbers<[1], [0], [0], [1], [0, 0, 1, 1], [], []>} : vector<2x128xbf16>, vector<128x128xbf16>, vector<2x128xf32> -> vector<2x128xf32>
    %440 = arith.addf %433, %439 : vector<2x128xf32>
    %c0_473 = arith.constant 0 : index
    %c1_474 = arith.constant 1 : index
    %c1_475 = arith.constant 1 : index
    %c0_476 = arith.constant 0 : index
    %441 = tpu.strided_load %arg16[%c0_473, %c1_474, %c1_475, %c0_476] {strides = array<i32: 1, 1, 2, 1>} : memref<2x2x4x128xf32, #tpu.memory_space<vmem>>, vector<2x1x1x128xf32>
    %442 = vector.shape_cast %441 : vector<2x1x1x128xf32> to vector<2x128xf32>
    %443 = arith.truncf %442 : vector<2x128xf32> to vector<2x128xbf16>
    %c9_477 = arith.constant 9 : index
    %c0_478 = arith.constant 0 : index
    %c0_479 = arith.constant 0 : index
    %444 = vector.load %arg7[%c9_477, %c0_478, %c0_479] : memref<16x128x128xbf16, #tpu.memory_space<vmem>>, vector<1x128x128xbf16>
    %445 = vector.shape_cast %444 : vector<1x128x128xbf16> to vector<128x128xbf16>
    %cst_480 = arith.constant dense<0.000000e+00> : vector<2x128xf32>
    %446 = tpu.matmul %443, %445, %cst_480 {dimension_numbers = #tpu.dot_dimension_numbers<[1], [0], [0], [1], [0, 0, 1, 1], [], []>} : vector<2x128xbf16>, vector<128x128xbf16>, vector<2x128xf32> -> vector<2x128xf32>
    %447 = arith.addf %440, %446 : vector<2x128xf32>
    %c0_481 = arith.constant 0 : index
    %c1_482 = arith.constant 1 : index
    %c2_483 = arith.constant 2 : index
    %c0_484 = arith.constant 0 : index
    %448 = tpu.strided_load %arg16[%c0_481, %c1_482, %c2_483, %c0_484] {strides = array<i32: 1, 1, 2, 1>} : memref<2x2x4x128xf32, #tpu.memory_space<vmem>>, vector<2x1x1x128xf32>
    %449 = vector.shape_cast %448 : vector<2x1x1x128xf32> to vector<2x128xf32>
    %450 = arith.truncf %449 : vector<2x128xf32> to vector<2x128xbf16>
    %c10_485 = arith.constant 10 : index
    %c0_486 = arith.constant 0 : index
    %c0_487 = arith.constant 0 : index
    %451 = vector.load %arg7[%c10_485, %c0_486, %c0_487] : memref<16x128x128xbf16, #tpu.memory_space<vmem>>, vector<1x128x128xbf16>
    %452 = vector.shape_cast %451 : vector<1x128x128xbf16> to vector<128x128xbf16>
    %cst_488 = arith.constant dense<0.000000e+00> : vector<2x128xf32>
    %453 = tpu.matmul %450, %452, %cst_488 {dimension_numbers = #tpu.dot_dimension_numbers<[1], [0], [0], [1], [0, 0, 1, 1], [], []>} : vector<2x128xbf16>, vector<128x128xbf16>, vector<2x128xf32> -> vector<2x128xf32>
    %454 = arith.addf %447, %453 : vector<2x128xf32>
    %c0_489 = arith.constant 0 : index
    %c1_490 = arith.constant 1 : index
    %c3_491 = arith.constant 3 : index
    %c0_492 = arith.constant 0 : index
    %455 = tpu.strided_load %arg16[%c0_489, %c1_490, %c3_491, %c0_492] {strides = array<i32: 1, 1, 2, 1>} : memref<2x2x4x128xf32, #tpu.memory_space<vmem>>, vector<2x1x1x128xf32>
    %456 = vector.shape_cast %455 : vector<2x1x1x128xf32> to vector<2x128xf32>
    %457 = arith.truncf %456 : vector<2x128xf32> to vector<2x128xbf16>
    %c11_493 = arith.constant 11 : index
    %c0_494 = arith.constant 0 : index
    %c0_495 = arith.constant 0 : index
    %458 = vector.load %arg7[%c11_493, %c0_494, %c0_495] : memref<16x128x128xbf16, #tpu.memory_space<vmem>>, vector<1x128x128xbf16>
    %459 = vector.shape_cast %458 : vector<1x128x128xbf16> to vector<128x128xbf16>
    %cst_496 = arith.constant dense<0.000000e+00> : vector<2x128xf32>
    %460 = tpu.matmul %457, %459, %cst_496 {dimension_numbers = #tpu.dot_dimension_numbers<[1], [0], [0], [1], [0, 0, 1, 1], [], []>} : vector<2x128xbf16>, vector<128x128xbf16>, vector<2x128xf32> -> vector<2x128xf32>
    %461 = arith.addf %454, %460 : vector<2x128xf32>
    %c0_497 = arith.constant 0 : index
    %c1_498 = arith.constant 1 : index
    %c0_499 = arith.constant 0 : index
    %c0_500 = arith.constant 0 : index
    %462 = tpu.strided_load %arg17[%c0_497, %c1_498, %c0_499, %c0_500] {strides = array<i32: 1, 1, 2, 1>} : memref<2x2x4x128xf32, #tpu.memory_space<vmem>>, vector<2x1x1x128xf32>
    %463 = vector.shape_cast %462 : vector<2x1x1x128xf32> to vector<2x128xf32>
    %464 = arith.truncf %463 : vector<2x128xf32> to vector<2x128xbf16>
    %c12_501 = arith.constant 12 : index
    %c0_502 = arith.constant 0 : index
    %c0_503 = arith.constant 0 : index
    %465 = vector.load %arg7[%c12_501, %c0_502, %c0_503] : memref<16x128x128xbf16, #tpu.memory_space<vmem>>, vector<1x128x128xbf16>
    %466 = vector.shape_cast %465 : vector<1x128x128xbf16> to vector<128x128xbf16>
    %cst_504 = arith.constant dense<0.000000e+00> : vector<2x128xf32>
    %467 = tpu.matmul %464, %466, %cst_504 {dimension_numbers = #tpu.dot_dimension_numbers<[1], [0], [0], [1], [0, 0, 1, 1], [], []>} : vector<2x128xbf16>, vector<128x128xbf16>, vector<2x128xf32> -> vector<2x128xf32>
    %468 = arith.addf %461, %467 : vector<2x128xf32>
    %c0_505 = arith.constant 0 : index
    %c1_506 = arith.constant 1 : index
    %c1_507 = arith.constant 1 : index
    %c0_508 = arith.constant 0 : index
    %469 = tpu.strided_load %arg17[%c0_505, %c1_506, %c1_507, %c0_508] {strides = array<i32: 1, 1, 2, 1>} : memref<2x2x4x128xf32, #tpu.memory_space<vmem>>, vector<2x1x1x128xf32>
    %470 = vector.shape_cast %469 : vector<2x1x1x128xf32> to vector<2x128xf32>
    %471 = arith.truncf %470 : vector<2x128xf32> to vector<2x128xbf16>
    %c13_509 = arith.constant 13 : index
    %c0_510 = arith.constant 0 : index
    %c0_511 = arith.constant 0 : index
    %472 = vector.load %arg7[%c13_509, %c0_510, %c0_511] : memref<16x128x128xbf16, #tpu.memory_space<vmem>>, vector<1x128x128xbf16>
    %473 = vector.shape_cast %472 : vector<1x128x128xbf16> to vector<128x128xbf16>
    %cst_512 = arith.constant dense<0.000000e+00> : vector<2x128xf32>
    %474 = tpu.matmul %471, %473, %cst_512 {dimension_numbers = #tpu.dot_dimension_numbers<[1], [0], [0], [1], [0, 0, 1, 1], [], []>} : vector<2x128xbf16>, vector<128x128xbf16>, vector<2x128xf32> -> vector<2x128xf32>
    %475 = arith.addf %468, %474 : vector<2x128xf32>
    %c0_513 = arith.constant 0 : index
    %c1_514 = arith.constant 1 : index
    %c2_515 = arith.constant 2 : index
    %c0_516 = arith.constant 0 : index
    %476 = tpu.strided_load %arg17[%c0_513, %c1_514, %c2_515, %c0_516] {strides = array<i32: 1, 1, 2, 1>} : memref<2x2x4x128xf32, #tpu.memory_space<vmem>>, vector<2x1x1x128xf32>
    %477 = vector.shape_cast %476 : vector<2x1x1x128xf32> to vector<2x128xf32>
    %478 = arith.truncf %477 : vector<2x128xf32> to vector<2x128xbf16>
    %c14_517 = arith.constant 14 : index
    %c0_518 = arith.constant 0 : index
    %c0_519 = arith.constant 0 : index
    %479 = vector.load %arg7[%c14_517, %c0_518, %c0_519] : memref<16x128x128xbf16, #tpu.memory_space<vmem>>, vector<1x128x128xbf16>
    %480 = vector.shape_cast %479 : vector<1x128x128xbf16> to vector<128x128xbf16>
    %cst_520 = arith.constant dense<0.000000e+00> : vector<2x128xf32>
    %481 = tpu.matmul %478, %480, %cst_520 {dimension_numbers = #tpu.dot_dimension_numbers<[1], [0], [0], [1], [0, 0, 1, 1], [], []>} : vector<2x128xbf16>, vector<128x128xbf16>, vector<2x128xf32> -> vector<2x128xf32>
    %482 = arith.addf %475, %481 : vector<2x128xf32>
    %c0_521 = arith.constant 0 : index
    %c1_522 = arith.constant 1 : index
    %c3_523 = arith.constant 3 : index
    %c0_524 = arith.constant 0 : index
    %483 = tpu.strided_load %arg17[%c0_521, %c1_522, %c3_523, %c0_524] {strides = array<i32: 1, 1, 2, 1>} : memref<2x2x4x128xf32, #tpu.memory_space<vmem>>, vector<2x1x1x128xf32>
    %484 = vector.shape_cast %483 : vector<2x1x1x128xf32> to vector<2x128xf32>
    %485 = arith.truncf %484 : vector<2x128xf32> to vector<2x128xbf16>
    %c15_525 = arith.constant 15 : index
    %c0_526 = arith.constant 0 : index
    %c0_527 = arith.constant 0 : index
    %486 = vector.load %arg7[%c15_525, %c0_526, %c0_527] : memref<16x128x128xbf16, #tpu.memory_space<vmem>>, vector<1x128x128xbf16>
    %487 = vector.shape_cast %486 : vector<1x128x128xbf16> to vector<128x128xbf16>
    %cst_528 = arith.constant dense<0.000000e+00> : vector<2x128xf32>
    %488 = tpu.matmul %485, %487, %cst_528 {dimension_numbers = #tpu.dot_dimension_numbers<[1], [0], [0], [1], [0, 0, 1, 1], [], []>} : vector<2x128xbf16>, vector<128x128xbf16>, vector<2x128xf32> -> vector<2x128xf32>
    %489 = arith.addf %482, %488 : vector<2x128xf32>
    %c0_529 = arith.constant 0 : index
    %c0_530 = arith.constant 0 : index
    %490 = vector.load %arg8[%c0_529, %c0_530] : memref<1x128xf32, #tpu.memory_space<vmem>>, vector<1x128xf32>
    %491 = vector.broadcast %490 : vector<1x128xf32> to vector<2x128xf32>
    %492 = arith.addf %489, %491 : vector<2x128xf32>
    %493 = arith.negf %492 : vector<2x128xf32>
    %494 = math.exp %493 : vector<2x128xf32>
    %cst_531 = arith.constant 1.000000e+00 : f32
    %495 = vector.broadcast %cst_531 : f32 to vector<2x128xf32>
    %496 = arith.addf %495, %494 : vector<2x128xf32>
    %497 = arith.divf %495, %496 : vector<2x128xf32>
    %498 = arith.truncf %497 : vector<2x128xf32> to vector<2x128xbf16>
    %c0_532 = arith.constant 0 : index
    %c0_533 = arith.constant 0 : index
    %499 = vector.load %arg9[%c0_532, %c0_533] : memref<128x128xbf16, #tpu.memory_space<vmem>>, vector<128x128xbf16>
    %cst_534 = arith.constant dense<0.000000e+00> : vector<2x128xf32>
    %500 = tpu.matmul %498, %499, %cst_534 {dimension_numbers = #tpu.dot_dimension_numbers<[1], [0], [0], [1], [0, 0, 1, 1], [], []>} : vector<2x128xbf16>, vector<128x128xbf16>, vector<2x128xf32> -> vector<2x128xf32>
    %c0_535 = arith.constant 0 : index
    %c0_536 = arith.constant 0 : index
    %501 = vector.load %arg10[%c0_535, %c0_536] : memref<1x128xf32, #tpu.memory_space<vmem>>, vector<1x128xf32>
    %502 = vector.broadcast %501 : vector<1x128xf32> to vector<2x128xf32>
    %503 = arith.addf %500, %502 : vector<2x128xf32>
    %504 = arith.negf %503 : vector<2x128xf32>
    %505 = math.exp %504 : vector<2x128xf32>
    %cst_537 = arith.constant 1.000000e+00 : f32
    %506 = vector.broadcast %cst_537 : f32 to vector<2x128xf32>
    %507 = arith.addf %506, %505 : vector<2x128xf32>
    %508 = arith.divf %506, %507 : vector<2x128xf32>
    %c0_538 = arith.constant 0 : index
    %c0_539 = arith.constant 0 : index
    %509 = vector.load %arg11[%c0_538, %c0_539] : memref<2x128xf32, #tpu.memory_space<vmem>>, vector<2x128xf32>
    tpu.vector_store %arg11[%c0_538, %c0_539], %508 {strides = array<i32>} : memref<2x128xf32, #tpu.memory_space<vmem>>, vector<2x128xf32>,
    return
  }
}

</mosaic_0001>

<bundles_post_ra>
// kernel: discriminator_forward.1
= control target key start
LH: loop header
LB: loop body
LE: loop exit
PB: predicated region body
PF: predicated region fallthrough
CT: control target
= control target key end

     0   :  { %v10331_v16 = vmov 0.0   ;;  %s12057_s1 = inlined_call_operand.vmem [shape: bf16[128,128], index: 1, kind: input, shape index: {}]   ;;  %s12058_s0 = inlined_call_operand.vmem [shape: bf16[128,128], index: 0, kind: input, shape index: {}]   ;;  %s12059_s3 = inlined_call_operand.vmem [shape: bf16[16,128,128], index: 3, kind: input, shape index: {}]   ;;  %s12060_s2 = inlined_call_operand.vmem [shape: f32[1,128], index: 2, kind: input, shape index: {}]   ;;  %s12061_s5 = inlined_call_operand.vmem [shape: bf16[16,128,128], index: 5, kind: input, shape index: {}]   ;;  %s12062_s4 = inlined_call_operand.vmem [shape: f32[1,128], index: 4, kind: input, shape index: {}]   ;;  %s12063_s7 = inlined_call_operand.vmem [shape: bf16[16,128,128], index: 7, kind: input, shape index: {}]   ;;  %s12064_s6 = inlined_call_operand.vmem [shape: f32[1,128], index: 6, kind: input, shape index: {}]   ;;  %s12065_s9 = inlined_call_operand.vmem [shape: bf16[128,128], index: 9, kind: input, shape index: {}]   ;;  %s12066_s8 = inlined_call_operand.vmem [shape: f32[1,128], index: 8, kind: input, shape index: {}]   ;;  %s12067_s10 = inlined_call_operand.vmem [shape: f32[1,128], index: 10, kind: input, shape index: {}]   ;;  %s12068_s11 = inlined_call_operand.vmem [shape: f32[2,128], index: 11, kind: output, shape index: {}]  }
   0x1   :  { %v9911_v0 = vld [vmem:[%s12057_s1] sm:$0xff]   ;;  %v9912_v1 = vld [vmem:[%s12057_s1 + $0x8] sm:$0xff]   ;;  %v9913_v2 = vld [vmem:[%s12057_s1 + $0x10] sm:$0xff]   ;;  %341 = vst [vmem:[#allocation3 + $0x10] sm:$0xff] %v10331_v16 }
   0x2   :  { %8836 = vmatprep.subr.bf16.mxu0 %v9911_v0  ;;  %v9914_v3 = vld [vmem:[%s12057_s1 + $0x18] sm:$0xff]   ;;  %v9919_v4 = vld [vmem:[%s12058_s0] sm:$0xff]   ;;  %v9916_v6 = vld [vmem:[%s12057_s1 + $0x28] sm:$0xff]   ;;  %342 = vst [vmem:[#allocation3 + $0x18] sm:$0x3] %v10331_v16 }
   0x3   :  { %8837 = vmatpush3.bf16.msra.mxu0 %v9911_v0  ;;  %8852 = vmatprep.mubr.bf16.mxu0 %v9919_v4  ;;  %v9915_v5 = vld [vmem:[%s12057_s1 + $0x20] sm:$0xff]   ;;  %v9917_v7 = vld [vmem:[%s12057_s1 + $0x30] sm:$0xff]   ;;  %v9918_v8 = vld [vmem:[%s12057_s1 + $0x38] sm:$0xff]   ;;  %319 = vst [vmem:[#allocation2] sm:$0xff] %v10331_v16 }
   0x4   :  { %8838 = vmatprep.subr.bf16.mxu0 %v9912_v1  ;;  %v9920_v9 = vld [vmem:[%s12058_s0 + $0x8] sm:$0xff]   ;;  %v9921_v10 = vld [vmem:[%s12058_s0 + $0x10] sm:$0xff]   ;;  %v9922_v11 = vld [vmem:[%s12058_s0 + $0x18] sm:$0xff]   ;;  %320 = vst [vmem:[#allocation2 + $0x8] sm:$0x3] %v10331_v16 }
   0x5   :  { %v9923_v12 = vld [vmem:[%s12058_s0 + $0x20] sm:$0xff]   ;;  %v9924_v13 = vld [vmem:[%s12058_s0 + $0x28] sm:$0xff]   ;;  %v9925_v14 = vld [vmem:[%s12058_s0 + $0x30] sm:$0xff]   ;;  %321 = vst [vmem:[#allocation2 + $0x10] sm:$0xff] %v10331_v16 }
   0x6   :  { %v9926_v15 = vld [vmem:[%s12058_s0 + $0x38] sm:$0xff]   ;;  %322 = vst [vmem:[#allocation2 + $0x18] sm:$0x3] %v10331_v16  ;;  %323 = vst [vmem:[#allocation2 + $0x20] sm:$0xff] %v10331_v16  ;;  %v9927_v17 = vld [vmem:[%s12059_s3 + $0x40] sm:$0xff]  }
   0x7   :  { %8839 = vmatpush3.bf16.msra.mxu0 %v9912_v1  ;;  %324 = vst [vmem:[#allocation2 + $0x28] sm:$0x3] %v10331_v16  ;;  %325 = vst [vmem:[#allocation2 + $0x30] sm:$0xff] %v10331_v16  ;;  %8868 = vmatprep.subr.bf16.mxu1 %v9927_v17  ;;  %v9928_v18 = vld [vmem:[%s12059_s3 + $0x48] sm:$0xff]   ;;  %v9929_v19 = vld [vmem:[%s12059_s3 + $0x50] sm:$0xff]  }
   0x8   :  { %8840 = vmatprep.subr.bf16.mxu0 %v9913_v2  ;;  %326 = vst [vmem:[#allocation2 + $0x38] sm:$0x3] %v10331_v16  ;;  %327 = vst [vmem:[#allocation2 + $0x40] sm:$0xff] %v10331_v16  ;;  %8869 = vmatpush3.bf16.msra.mxu1 %v9927_v17  ;;  %v9930_v20 = vld [vmem:[%s12059_s3 + $0x58] sm:$0xff]   ;;  %v9931_v21 = vld [vmem:[%s12059_s3 + $0x60] sm:$0xff]  }
   0x9   :  { %328 = vst [vmem:[#allocation2 + $0x48] sm:$0x3] %v10331_v16  ;;  %329 = vst [vmem:[#allocation2 + $0x50] sm:$0xff] %v10331_v16  ;;  %8870 = vmatprep.subr.bf16.mxu1 %v9928_v18  ;;  %v9932_v22 = vld [vmem:[%s12059_s3 + $0x68] sm:$0xff]   ;;  %v9933_v23 = vld [vmem:[%s12059_s3 + $0x70] sm:$0xff]  }
   0xa   :  { %330 = vst [vmem:[#allocation2 + $0x58] sm:$0x3] %v10331_v16  ;;  %331 = vst [vmem:[#allocation2 + $0x60] sm:$0xff] %v10331_v16  ;;  %v9934_v24 = vld [vmem:[%s12059_s3 + $0x78] sm:$0xff]   ;;  %v10469_v25 = vld [vmem:[%s12059_s3] sm:$0xff]  }
   0xb   :  { %8841 = vmatpush3.bf16.msra.mxu0 %v9913_v2  ;;  %332 = vst [vmem:[#allocation2 + $0x68] sm:$0x3] %v10331_v16  ;;  %333 = vst [vmem:[#allocation2 + $0x70] sm:$0xff] %v10331_v16  ;;  %v10475_v26 = vld [vmem:[%s12060_s2] ss:$0 sm:$0xff] }
   0xc   :  { %8842 = vmatprep.subr.bf16.mxu0 %v9914_v3  ;;  %334 = vst [vmem:[#allocation2 + $0x78] sm:$0x3] %v10331_v16  ;;  %335 = vst [vmem:[#allocation2 + $0x80] sm:$0xff] %v10331_v16  ;;  %8871 = vmatpush3.bf16.msra.mxu1 %v9928_v18 }
   0xd   :  { %336 = vst [vmem:[#allocation2 + $0x88] sm:$0x3] %v10331_v16  ;;  %337 = vst [vmem:[#allocation2 + $0x90] sm:$0xff] %v10331_v16  ;;  %8872 = vmatprep.subr.bf16.mxu1 %v9929_v19 }
   0xe   :  { %338 = vst [vmem:[#allocation2 + $0x98] sm:$0x3] %v10331_v16  ;;  %339 = vst [vmem:[#allocation3] sm:$0xff] %v10331_v16 }
   0xf   :  { %8843 = vmatpush3.bf16.msra.mxu0 %v9914_v3  ;;  %340 = vst [vmem:[#allocation3 + $0x8] sm:$0x3] %v10331_v16  ;;  %343 = vst [vmem:[#allocation3 + $0x20] sm:$0xff] %v10331_v16 }
  0x10   :  { %8844 = vmatprep.subr.bf16.mxu0 %v9915_v5  ;;  %344 = vst [vmem:[#allocation3 + $0x28] sm:$0x3] %v10331_v16  ;;  %345 = vst [vmem:[#allocation3 + $0x30] sm:$0xff] %v10331_v16  ;;  %8873 = vmatpush3.bf16.msra.mxu1 %v9929_v19 }
  0x11   :  { %346 = vst [vmem:[#allocation3 + $0x38] sm:$0x3] %v10331_v16  ;;  %347 = vst [vmem:[#allocation3 + $0x40] sm:$0xff] %v10331_v16  ;;  %8874 = vmatprep.subr.bf16.mxu1 %v9930_v20 }
  0x12   :  { %348 = vst [vmem:[#allocation3 + $0x48] sm:$0x3] %v10331_v16  ;;  %349 = vst [vmem:[#allocation3 + $0x50] sm:$0xff] %v10331_v16 }
  0x13   :  { %8845 = vmatpush3.bf16.msra.mxu0 %v9915_v5  ;;  %350 = vst [vmem:[#allocation3 + $0x58] sm:$0x3] %v10331_v16  ;;  %351 = vst [vmem:[#allocation3 + $0x60] sm:$0xff] %v10331_v16 }
  0x14   :  { %8846 = vmatprep.subr.bf16.mxu0 %v9916_v6  ;;  %352 = vst [vmem:[#allocation3 + $0x68] sm:$0x3] %v10331_v16  ;;  %353 = vst [vmem:[#allocation3 + $0x70] sm:$0xff] %v10331_v16  ;;  %8875 = vmatpush3.bf16.msra.mxu1 %v9930_v20 }
  0x15   :  { %354 = vst [vmem:[#allocation3 + $0x78] sm:$0x3] %v10331_v16  ;;  %355 = vst [vmem:[#allocation3 + $0x80] sm:$0xff] %v10331_v16  ;;  %8876 = vmatprep.subr.bf16.mxu1 %v9931_v21 }
  0x16   :  { %356 = vst [vmem:[#allocation3 + $0x88] sm:$0x3] %v10331_v16  ;;  %357 = vst [vmem:[#allocation3 + $0x90] sm:$0xff] %v10331_v16 }
  0x17   :  { %8847 = vmatpush3.bf16.msra.mxu0 %v9916_v6  ;;  %358 = vst [vmem:[#allocation3 + $0x98] sm:$0x3] %v10331_v16  ;;  %2832 = vst [vmem:[#allocation4] sm:$0x3f] %v10331_v16 }
  0x18   :  { %8848 = vmatprep.subr.bf16.mxu0 %v9917_v7  ;;  %2833 = vst [vmem:[#allocation4 + $0x8] sm:$0x3f] %v10331_v16  ;;  %2834 = vst [vmem:[#allocation4 + $0x10] sm:$0x3f] %v10331_v16  ;;  %8877 = vmatpush3.bf16.msra.mxu1 %v9931_v21 }
  0x19   :  { %2835 = vst [vmem:[#allocation4 + $0x18] sm:$0x3f] %v10331_v16  ;;  %2836 = vst [vmem:[#allocation4 + $0x20] sm:$0x3f] %v10331_v16  ;;  %8878 = vmatprep.subr.bf16.mxu1 %v9932_v22 }
  0x1a   :  { %2837 = vst [vmem:[#allocation4 + $0x28] sm:$0x3f] %v10331_v16  ;;  %2838 = vst [vmem:[#allocation5] sm:$0x3f] %v10331_v16 }
  0x1b   :  { %8849 = vmatpush3.bf16.msra.mxu0 %v9917_v7  ;;  %2839 = vst [vmem:[#allocation5 + $0x8] sm:$0x3f] %v10331_v16  ;;  %2840 = vst [vmem:[#allocation5 + $0x10] sm:$0x3f] %v10331_v16 }
  0x1c   :  { %8850 = vmatprep.subr.bf16.mxu0 %v9918_v8  ;;  %2841 = vst [vmem:[#allocation5 + $0x18] sm:$0x3f] %v10331_v16  ;;  %2842 = vst [vmem:[#allocation5 + $0x20] sm:$0x3f] %v10331_v16  ;;  %8879 = vmatpush3.bf16.msra.mxu1 %v9932_v22 }
  0x1d   :  { %2843 = vst [vmem:[#allocation5 + $0x28] sm:$0x3f] %v10331_v16  ;;  %5055 = vst [vmem:[#allocation6] sm:$0xf] %v10331_v16  ;;  %8880 = vmatprep.subr.bf16.mxu1 %v9933_v23 }
  0x1e   :  { %5056 = vst [vmem:[#allocation6 + $0x4] sm:$0xf] %v10331_v16  ;;  %5057 = vst [vmem:[#allocation6 + $0x8] sm:$0xf] %v10331_v16 }
  0x1f   :  { %8851 = vmatpush3.bf16.msra.mxu0 %v9918_v8  ;;  %5058 = vst [vmem:[#allocation6 + $0xc] sm:$0xf] %v10331_v16  ;;  %5059 = vst [vmem:[#allocation7] sm:$0xf] %v10331_v16 }
  0x20   :  { %5060 = vst [vmem:[#allocation7 + $0x4] sm:$0xf] %v10331_v16  ;;  %5061 = vst [vmem:[#allocation7 + $0x8] sm:$0xf] %v10331_v16  ;;  %9188 = vmatprep.subr.bf16.mxu0 %v10331_v16  ;;  %8881 = vmatpush3.bf16.msra.mxu1 %v9933_v23 }
  0x21   :  { %5062 = vst [vmem:[#allocation7 + $0xc] sm:$0xf] %v10331_v16  ;;  %8882 = vmatprep.subr.bf16.mxu1 %v9934_v24  ;;  %v440_v7 = vld [vmem:[#allocation2 + $0x1] ss:$2 sm:$0xf] }
  0x22   :  { %8853 = vmatmul.mubr.bf16.vlgmr.msra.gmra.mrb[0].mxu0 %v9920_v9 }
  0x23   :  { %8856 = vmatprep.mubr.bf16.mxu0 %v9921_v10 }
  0x24   :  { %8883 = vmatpush3.bf16.msra.mxu1 %v9934_v24 }
  0x25   :  { %8888 = vmatprep.subr.bf16.mxu1 %v10469_v25 }
  0x2a   :  { %8857 = vmatmul.mubr.bf16.gmra.mrb[4].mxu0 %v9922_v11 }
  0x2b   :  { %8860 = vmatprep.mubr.bf16.mxu0 %v9923_v12 }
  0x32   :  { %8861 = vmatmul.mubr.bf16.gmra.mrb[8].mxu0 %v9924_v13 }
  0x33   :  { %8864 = vmatprep.mubr.bf16.mxu0 %v9925_v14 }
  0x3a   :  { %8865 = vmatmul.mubr.bf16.gmra.mrb[12].mxu0 %v9926_v15 }
  0xf5   :  { %v8854_v27 = vpop.f32.mrb[0].mxu0 }
  0xf6   :  { %v217_v28 = vadd.f32 %v8854_v27, %v10475_v26  ;;  %v208_v29 = vpop.f32.mrb[1].mxu0 }
  0xf7   :  { %v209_v30 = vadd.f32 %v10475_v26, %v208_v29  ;;  %v8855_v31 = vpop.f32.mrb[2].mxu0 }
  0xf8   :  { %vm273_vm0 = vcmp.gt.f32.partialorder %v217_v28, 0.0  ;;  %v289_v32 = vmul.f32 0.2, %v217_v28  ;;  %v220_v33 = vadd.f32 %v8855_v31, %v10475_v26  ;;  %v211_v34 = vpop.f32.mrb[3].mxu0 }
  0xf9   :  { %vm271_vm1 = vcmp.gt.f32.partialorder %v209_v30, 0.0  ;;  %v287_v35 = vmul.f32 0.2, %v209_v30  ;;  %v212_v36 = vadd.f32 %v10475_v26, %v211_v34 }
  0xfa   :  { %v305_v37 = vsel %vm273_vm0, %v217_v28, %v289_v32  ;;  %vm274_vm2 = vcmp.gt.f32.partialorder %v220_v33, 0.0  ;;  %v290_v38 = vmul.f32 0.2, %v220_v33  ;;  %vm10332_vm0 = vmmov 0  }
  0xfb   :  { %363 = vst [vmem:[#allocation3 + $0x11] sm:$0xff] %v305_v37  ;;  %v303_v39 = vsel %vm271_vm1, %v209_v30, %v287_v35  ;;  %vm272_vm3 = vcmp.gt.f32.partialorder %v212_v36, 0.0  ;;  %v288_v40 = vmul.f32 0.2, %v212_v36 }
  0xfc   :  { %359 = vst [vmem:[#allocation3 + $0x1] sm:$0xff] %v303_v39  ;;  %v306_v41 = vsel %vm274_vm2, %v220_v33, %v290_v38  ;;  %v448_v38 = vld [vmem:[#allocation2 + $0x51] ss:$2 sm:$0xf] }
  0xfd   :  { %365 = vst [vmem:[#allocation2 + $0x21] sm:$0xff] %v306_v41  ;;  %v304_v42 = vsel %vm272_vm3, %v212_v36, %v288_v40  ;;  %v8858_v43 = vpop.f32.mrb[4].mxu0  ;;  %v390_v36 = vld [vmem:[#allocation2] ss:$2 sm:$0xf] }
  0xfe   :  { %361 = vst [vmem:[#allocation2 + $0x11] sm:$0xff] %v304_v42  ;;  %v233_v44 = vadd.f32 %v8858_v43, %v10475_v26  ;;  %v224_v45 = vpop.f32.mrb[5].mxu0 }
  0xff   :  { %v225_v46 = vadd.f32 %v10475_v26, %v224_v45  ;;  %v8859_v47 = vpop.f32.mrb[6].mxu0 }
 0x100   :  { %vm277_vm4 = vcmp.gt.f32.partialorder %v233_v44, 0.0  ;;  %v293_v48 = vmul.f32 0.2, %v233_v44  ;;  %v236_v49 = vadd.f32 %v8859_v47, %v10475_v26  ;;  %v227_v50 = vpop.f32.mrb[7].mxu0 }
 0x101   :  { %vm275_vm5 = vcmp.gt.f32.partialorder %v225_v46, 0.0  ;;  %v291_v51 = vmul.f32 0.2, %v225_v46  ;;  %v228_v52 = vadd.f32 %v10475_v26, %v227_v50  ;;  %v9937_v50 = vld [vmem:[%s12059_s3 + $0x10] sm:$0xff]  }
 0x102   :  { %v309_v53 = vsel %vm277_vm4, %v233_v44, %v293_v48  ;;  %vm278_vm6 = vcmp.gt.f32.partialorder %v236_v49, 0.0  ;;  %v294_v54 = vmul.f32 0.2, %v236_v49  ;;  %v9936_v48 = vld [vmem:[%s12059_s3 + $0x8] sm:$0xff]  }
 0x103   :  { %371 = vst [vmem:[#allocation3 + $0x31] sm:$0xff] %v309_v53  ;;  %v307_v55 = vsel %vm275_vm5, %v225_v46, %v291_v51  ;;  %vm276_vm7 = vcmp.gt.f32.partialorder %v228_v52, 0.0  ;;  %v292_v56 = vmul.f32 0.2, %v228_v52  ;;  %v9938_v51 = vld [vmem:[%s12059_s3 + $0x18] sm:$0xff]   ;;  %v9941_v53 = vld [vmem:[%s12059_s3 + $0x30] sm:$0xff]  }
 0x104   :  { %367 = vst [vmem:[#allocation3 + $0x21] sm:$0xff] %v307_v55  ;;  %v310_v57 = vsel %vm278_vm6, %v236_v49, %v294_v54  ;;  %v444_v12 = vld [vmem:[#allocation2 + $0x21] ss:$2 sm:$0xf]  ;;  %v9942_v54 = vld [vmem:[%s12059_s3 + $0x38] sm:$0xff]   ;;  %vm5119_vm5 = vcmask 1041409  }
 0x105   :  { %373 = vst [vmem:[#allocation2 + $0x41] sm:$0xff] %v310_v57  ;;  %v308_v58 = vsel %vm276_vm7, %v228_v52, %v292_v56  ;;  %v8862_v59 = vpop.f32.mrb[8].mxu0  ;;  %v442_v10 = vld [vmem:[#allocation2 + $0x11] ss:$2 sm:$0xf]  ;;  %v9939_v52 = vld [vmem:[%s12059_s3 + $0x20] sm:$0xff]  }
 0x106   :  { %369 = vst [vmem:[#allocation2 + $0x31] sm:$0xff] %v308_v58  ;;  %v249_v60 = vadd.f32 %v8862_v59, %v10475_v26  ;;  %v240_v61 = vpop.f32.mrb[9].mxu0  ;;  %v463_v18 = vcombine.low %v440_v7, %v442_v10  ;;  %v392_v40 = vld [vmem:[#allocation2 + $0x10] ss:$2 sm:$0xf]  ;;  %v9943_v57 = vld [vmem:[%s12059_s3 + $0x80] sm:$0xff]  }
 0x107   :  { %v241_v62 = vadd.f32 %v10475_v26, %v240_v61  ;;  %v8863_v63 = vpop.f32.mrb[10].mxu0  ;;  %v394_v41 = vld [vmem:[#allocation2 + $0x20] ss:$2 sm:$0xf]  ;;  %v413_v46 = vcombine.low %v390_v36, %v392_v40  ;;  %v9945_v7 = vld [vmem:[%s12059_s3 + $0x90] sm:$0xff]   ;;  %v9948_v10 = vld [vmem:[%s12059_s3 + $0xa8] sm:$0xff]  }
 0x108   :  { %vm281_vm8 = vcmp.gt.f32.partialorder %v249_v60, 0.0  ;;  %v297_v0 = vmul.f32 0.2, %v249_v60  ;;  %v252_v1 = vadd.f32 %v8863_v63, %v10475_v26  ;;  %v243_v2 = vpop.f32.mrb[11].mxu0  ;;  %v9958_v36 = vld [vmem:[%s12059_s3 + $0xf8] sm:$0xff]  }
 0x109   :  { %vm279_vm9 = vcmp.gt.f32.partialorder %v241_v62, 0.0  ;;  %v295_v3 = vmul.f32 0.2, %v241_v62  ;;  %v244_v4 = vadd.f32 %v10475_v26, %v243_v2  ;;  %v398_v55 = vld [vmem:[#allocation2 + $0x50] ss:$2 sm:$0xf] }
 0x10a   :  { %v313_v5 = vsel %vm281_vm8, %v249_v60, %v297_v0  ;;  %vm282_vm10 = vcmp.gt.f32.partialorder %v252_v1, 0.0  ;;  %v298_v6 = vmul.f32 0.2, %v252_v1  ;;  %v685_v58 = vld [vmem:[#allocation2 + $0x2] ss:$2 sm:$0xf] }
 0x10b   :  { %379 = vst [vmem:[#allocation3 + $0x61] sm:$0xff] %v313_v5  ;;  %v311_v8 = vsel %vm279_vm9, %v241_v62, %v295_v3  ;;  %vm280_vm11 = vcmp.gt.f32.partialorder %v244_v4, 0.0  ;;  %v296_v9 = vmul.f32 0.2, %v244_v4  ;;  %v9944_v5 = vld [vmem:[%s12059_s3 + $0x88] sm:$0xff]  }
 0x10c   :  { %375 = vst [vmem:[#allocation3 + $0x51] sm:$0xff] %v311_v8  ;;  %v314_v11 = vsel %vm282_vm10, %v252_v1, %v298_v6  ;;  %v687_v63 = vld [vmem:[#allocation2 + $0x12] ss:$2 sm:$0xf] }
 0x10d   :  { %381 = vst [vmem:[#allocation2 + $0x71] sm:$0xff] %v314_v11  ;;  %v312_v13 = vsel %vm280_vm11, %v244_v4, %v296_v9  ;;  %v8866_v14 = vpop.f32.mrb[12].mxu0  ;;  %v446_v15 = vld [vmem:[#allocation2 + $0x31] ss:$2 sm:$0xf]  ;;  %v708_v3 = vcombine.low %v685_v58, %v687_v63  ;;  %v9946_v8 = vld [vmem:[%s12059_s3 + $0x98] sm:$0xff]  }
 0x10e   :  { %377 = vst [vmem:[#allocation2 + $0x61] sm:$0xff] %v312_v13  ;;  %v265_v16 = vadd.f32 %v8866_v14, %v10475_v26  ;;  %v256_v17 = vpop.f32.mrb[13].mxu0  ;;  %v464_v19 = vcombine.low %v444_v12, %v446_v15  ;;  %v396_v37 = vld [vmem:[#allocation2 + $0x30] ss:$2 sm:$0xf]  ;;  %v9947_v9 = vld [vmem:[%s12059_s3 + $0xa0] sm:$0xff]  }
 0x10f   :  { %v257_v20 = vadd.f32 %v10475_v26, %v256_v17  ;;  %v8867_v21 = vpop.f32.mrb[14].mxu0  ;;  %v414_v43 = vcombine.low %v394_v41, %v396_v37  ;;  %v691_v59 = vld [vmem:[#allocation2 + $0x32] ss:$2 sm:$0xf]  ;;  %v9951_v15 = vld [vmem:[%s12059_s3 + $0xc0] sm:$0xff]  }
 0x110   :  { %vm285_vm12 = vcmp.gt.f32.partialorder %v265_v16, 0.0  ;;  %v301_v22 = vmul.f32 0.2, %v265_v16  ;;  %v268_v23 = vadd.f32 %v8867_v21, %v10475_v26  ;;  %v259_v24 = vpop.f32.mrb[15].mxu0  ;;  %v471_v27 = vpack.c.bf16 %v464_v19, %v463_v18  ;;  %v9949_v11 = vld [vmem:[%s12059_s3 + $0xb0] sm:$0xff]   ;;  %v9950_v12 = vld [vmem:[%s12059_s3 + $0xb8] sm:$0xff]  }
 0x111   :  { %vm283_vm13 = vcmp.gt.f32.partialorder %v257_v20, 0.0  ;;  %v299_v28 = vmul.f32 0.2, %v257_v20  ;;  %v260_v29 = vadd.f32 %v10475_v26, %v259_v24  ;;  %v421_v49 = vpack.c.bf16 %v414_v43, %v413_v46  ;;  %v689_v0 = vld [vmem:[#allocation2 + $0x22] ss:$2 sm:$0xf] }
 0x112   :  { %v317_v30 = vsel %vm285_vm12, %v265_v16, %v301_v22  ;;  %vm286_vm14 = vcmp.gt.f32.partialorder %v268_v23, 0.0  ;;  %v302_v31 = vmul.f32 0.2, %v268_v23  ;;  %8884 = vmatprep.mubr.bf16.mxu1 %v471_v27  ;;  %v709_v1 = vcombine.low %v689_v0, %v691_v59  ;;  %v693_v13 = vld [vmem:[#allocation2 + $0x52] ss:$2 sm:$0xf] }
 0x113   :  { %387 = vst [vmem:[#allocation3 + $0x81] sm:$0xff] %v317_v30  ;;  %v315_v32 = vsel %vm283_vm13, %v257_v20, %v299_v28  ;;  %vm284_vm15 = vcmp.gt.f32.partialorder %v260_v29, 0.0  ;;  %v300_v33 = vmul.f32 0.2, %v260_v29 }
 0x114   :  { %383 = vst [vmem:[#allocation3 + $0x71] sm:$0xff] %v315_v32  ;;  %v318_v34 = vsel %vm286_vm14, %v268_v23, %v302_v31  ;;  %v452_v26 = vld [vmem:[#allocation2 + $0x71] ss:$2 sm:$0xf]  ;;  %v716_v6 = vpack.c.bf16 %v709_v1, %v708_v3  ;;  %v9954_v32 = vld [vmem:[%s12059_s3 + $0xd8] sm:$0xff]   ;;  %v9967_v1 = vld [vmem:[%s12059_s3 + $0x140] sm:$0xff]  }
 0x115   :  { %389 = vst [vmem:[#allocation2 + $0x91] sm:$0xff] %v318_v34  ;;  %v316_v35 = vsel %vm284_vm15, %v260_v29, %v300_v33  ;;  %v450_v39 = vld [vmem:[#allocation2 + $0x61] ss:$2 sm:$0xf]  ;;  %v9952_v29 = vld [vmem:[%s12059_s3 + $0xc8] sm:$0xff]   ;;  %v9953_v31 = vld [vmem:[%s12059_s3 + $0xd0] sm:$0xff]  }
 0x116   :  { %385 = vst [vmem:[#allocation2 + $0x81] sm:$0xff] %v316_v35  ;;  %v465_v44 = vcombine.low %v448_v38, %v450_v39  ;;  %v400_v60 = vld [vmem:[#allocation2 + $0x60] ss:$2 sm:$0xf]  ;;  %v9956_v34 = vld [vmem:[%s12059_s3 + $0xe8] sm:$0xff]   ;;  %v9957_v35 = vld [vmem:[%s12059_s3 + $0xf0] sm:$0xff]  }
 0x117   :  { %v402_v61 = vld [vmem:[#allocation2 + $0x70] ss:$2 sm:$0xf]  ;;  %v415_v2 = vcombine.low %v398_v55, %v400_v60  ;;  %v837_v16 = vld [vmem:[#allocation2 + $0x3] ss:$2 sm:$0xf] }
 0x118   :  { %v843_v17 = vld [vmem:[#allocation2 + $0x33] ss:$2 sm:$0xf]  ;;  %v695_v18 = vld [vmem:[#allocation2 + $0x62] ss:$2 sm:$0xf] }
 0x119   :  { %v697_v19 = vld [vmem:[#allocation2 + $0x72] ss:$2 sm:$0xf]  ;;  %v839_v21 = vld [vmem:[#allocation2 + $0x13] ss:$2 sm:$0xf]  ;;  %v710_v24 = vcombine.low %v693_v13, %v695_v18 }
 0x11a   :  { %v841_v22 = vld [vmem:[#allocation2 + $0x23] ss:$2 sm:$0xf]  ;;  %v860_v27 = vcombine.low %v837_v16, %v839_v21  ;;  %v845_v37 = vld [vmem:[#allocation2 + $0x53] ss:$2 sm:$0xf] }
 0x11b   :  { %v861_v23 = vcombine.low %v841_v22, %v843_v17  ;;  %v9955_v33 = vld [vmem:[%s12059_s3 + $0xe0] sm:$0xff]   ;;  %v994_v41 = vld [vmem:[#allocation3 + $0x30] ss:$2 sm:$0xf] }
 0x11c   :  { %v9959_v39 = vld [vmem:[%s12059_s3 + $0x100] sm:$0xff]   ;;  %v9965_v55 = vld [vmem:[%s12059_s3 + $0x130] sm:$0xff]  }
 0x11d   :  { %v454_v42 = vld [vmem:[#allocation2 + $0x81] ss:$2 sm:$0xf]  ;;  %v404_v56 = vld [vmem:[#allocation2 + $0x80] ss:$2 sm:$0xf]  ;;  %v868_v30 = vpack.c.bf16 %v861_v23, %v860_v27 }
 0x11e   :  { %v466_v45 = vcombine.low %v452_v26, %v454_v42  ;;  %v416_v62 = vcombine.low %v402_v61, %v404_v56  ;;  %v699_v14 = vld [vmem:[#allocation2 + $0x82] ss:$2 sm:$0xf]  ;;  %v851_v38 = vld [vmem:[#allocation2 + $0x83] ss:$2 sm:$0xf] }
 0x11f   :  { %v711_v20 = vcombine.low %v697_v19, %v699_v14  ;;  %v992_v40 = vld [vmem:[#allocation3 + $0x20] ss:$2 sm:$0xf]  ;;  %v847_v26 = vld [vmem:[#allocation2 + $0x63] ss:$2 sm:$0xf] }
 0x120   :  { %v472_v47 = vpack.c.bf16 %v466_v45, %v465_v44  ;;  %v422_v4 = vpack.c.bf16 %v416_v62, %v415_v2  ;;  %v849_v42 = vld [vmem:[#allocation2 + $0x73] ss:$2 sm:$0xf]  ;;  %v988_v44 = vld [vmem:[#allocation3] ss:$2 sm:$0xf]  ;;  %v1012_v46 = vcombine.low %v992_v40, %v994_v41 }
 0x121   :  { %v717_v28 = vpack.c.bf16 %v711_v20, %v710_v24  ;;  %v863_v43 = vcombine.low %v849_v42, %v851_v38  ;;  %v990_v45 = vld [vmem:[#allocation3 + $0x10] ss:$2 sm:$0xf]  ;;  %v9966_v56 = vld [vmem:[%s12059_s3 + $0x138] sm:$0xff]   ;;  %v9975_v23 = vld [vmem:[%s12059_s3 + $0x180] sm:$0xff]  }
 0x122   :  { %8885 = vmatmul.mubr.bf16.vlgmr.msra.gmra.mrb[0].mxu1 %v472_v47  ;;  %v862_v47 = vcombine.low %v845_v37, %v847_v26  ;;  %v1000_v58 = vld [vmem:[#allocation3 + $0x70] ss:$2 sm:$0xf]  ;;  %v1002_v59 = vld [vmem:[#allocation3 + $0x80] ss:$2 sm:$0xf] }
 0x123   :  { %8889 = vmatpush3.bf16.msra.mxu1 %v10469_v25  ;;  %8904 = vmatprep.mubr.bf16.mxu1 %v421_v49  ;;  %v9940_v25 = vld [vmem:[%s12059_s3 + $0x28] sm:$0xff]   ;;  %v1144_v60 = vld [vmem:[#allocation3 + $0x21] ss:$2 sm:$0xf]  ;;  %v1014_v0 = vcombine.low %v1000_v58, %v1002_v59  ;;  %v9973_v13 = vld [vmem:[%s12059_s3 + $0x170] sm:$0xff]  }
 0x124   :  { %8890 = vmatprep.subr.bf16.mxu1 %v9936_v48  ;;  %v869_v49 = vpack.c.bf16 %v863_v43, %v862_v47  ;;  %v1146_v61 = vld [vmem:[#allocation3 + $0x31] ss:$2 sm:$0xf]  ;;  %v998_v62 = vld [vmem:[#allocation3 + $0x60] ss:$2 sm:$0xf] }
 0x125   :  { %v1140_v63 = vld [vmem:[#allocation3 + $0x1] ss:$2 sm:$0xf]  ;;  %v1142_v2 = vld [vmem:[#allocation3 + $0x11] ss:$2 sm:$0xf]  ;;  %v1164_v3 = vcombine.low %v1144_v60, %v1146_v61 }
 0x126   :  { %v9974_v14 = vld [vmem:[%s12059_s3 + $0x178] sm:$0xff]   ;;  %v1152_v16 = vld [vmem:[#allocation3 + $0x71] ss:$2 sm:$0xf] }
 0x127   :  { %8891 = vmatpush3.bf16.msra.mxu1 %v9936_v48  ;;  %v1011_v48 = vcombine.low %v988_v44, %v990_v45  ;;  %v1154_v17 = vld [vmem:[#allocation3 + $0x81] ss:$2 sm:$0xf]  ;;  %v1296_v18 = vld [vmem:[#allocation3 + $0x22] ss:$2 sm:$0xf] }
 0x128   :  { %8892 = vmatprep.subr.bf16.mxu1 %v9937_v50  ;;  %v1298_v19 = vld [vmem:[#allocation3 + $0x32] ss:$2 sm:$0xf]  ;;  %v1150_v20 = vld [vmem:[#allocation3 + $0x61] ss:$2 sm:$0xf]  ;;  %v1166_v22 = vcombine.low %v1152_v16, %v1154_v17 }
 0x129   :  { %v1292_v21 = vld [vmem:[#allocation3 + $0x2] ss:$2 sm:$0xf]  ;;  %v1294_v24 = vld [vmem:[#allocation3 + $0x12] ss:$2 sm:$0xf]  ;;  %v1316_v27 = vcombine.low %v1296_v18, %v1298_v19 }
 0x12a   :  { %v9981_v37 = vld [vmem:[%s12059_s3 + $0x1b0] sm:$0xff]   ;;  %v9982_v38 = vld [vmem:[%s12059_s3 + $0x1b8] sm:$0xff]   ;;  %v1306_v41 = vld [vmem:[#allocation3 + $0x82] ss:$2 sm:$0xf] }
 0x12b   :  { %8893 = vmatpush3.bf16.msra.mxu1 %v9937_v50  ;;  %v9960_v50 = vld [vmem:[%s12059_s3 + $0x108] sm:$0xff]   ;;  %v1304_v40 = vld [vmem:[#allocation3 + $0x72] ss:$2 sm:$0xf] }
 0x12c   :  { %8894 = vmatprep.subr.bf16.mxu1 %v9938_v51  ;;  %v1448_v26 = vld [vmem:[#allocation3 + $0x23] ss:$2 sm:$0xf]  ;;  %v1450_v42 = vld [vmem:[#allocation3 + $0x33] ss:$2 sm:$0xf]  ;;  %v1318_v45 = vcombine.low %v1304_v40, %v1306_v41 }
 0x12d   :  { %v1302_v43 = vld [vmem:[#allocation3 + $0x62] ss:$2 sm:$0xf]  ;;  %v1444_v44 = vld [vmem:[#allocation3 + $0x3] ss:$2 sm:$0xf] }
 0x12e   :  { %v1446_v47 = vld [vmem:[#allocation3 + $0x13] ss:$2 sm:$0xf]  ;;  %v1458_v61 = vld [vmem:[#allocation3 + $0x83] ss:$2 sm:$0xf] }
 0x12f   :  { %8895 = vmatpush3.bf16.msra.mxu1 %v9938_v51  ;;  %v1019_v51 = vpack.c.bf16 %v1012_v46, %v1011_v48  ;;  %v9983_v46 = vld [vmem:[%s12059_s3 + $0x1c0] sm:$0xff]   ;;  %v1468_v48 = vcombine.low %v1448_v26, %v1450_v42  ;;  %v9990_v58 = vld [vmem:[%s12059_s3 + $0x1f8] sm:$0xff]   ;;  %v1609_v19 = vld [vmem:[#allocation2 + $0x90] ss:$2 sm:$0xf] }
 0x130   :  { %8896 = vmatprep.subr.bf16.mxu1 %v9939_v52  ;;  %v1452_v59 = vld [vmem:[#allocation3 + $0x53] ss:$2 sm:$0xf]  ;;  %v1603_v17 = vld [vmem:[#allocation2 + $0x60] ss:$2 sm:$0xf] }
 0x131   :  { %v1456_v60 = vld [vmem:[#allocation3 + $0x73] ss:$2 sm:$0xf]  ;;  %v1607_v18 = vld [vmem:[#allocation2 + $0x80] ss:$2 sm:$0xf] }
 0x132   :  { %v9998_v16 = vld [vmem:[%s12059_s3 + $0x238] sm:$0xff]   ;;  %v1755_v41 = vld [vmem:[#allocation2 + $0x61] ss:$2 sm:$0xf] }
 0x133   :  { %8897 = vmatpush3.bf16.msra.mxu1 %v9939_v52  ;;  %v9961_v52 = vld [vmem:[%s12059_s3 + $0x110] sm:$0xff]   ;;  %v10006_v40 = vld [vmem:[%s12059_s3 + $0x278] sm:$0xff]   ;;  %v1759_v26 = vld [vmem:[#allocation2 + $0x81] ss:$2 sm:$0xf] }
 0x134   :  { %8898 = vmatprep.subr.bf16.mxu1 %v9940_v25  ;;  %v1761_v42 = vld [vmem:[#allocation2 + $0x91] ss:$2 sm:$0xf] }
 0x137   :  { %8899 = vmatpush3.bf16.msra.mxu1 %v9940_v25  ;;  %v9962_v25 = vld [vmem:[%s12059_s3 + $0x118] sm:$0xff]  }
 0x138   :  { %8900 = vmatprep.subr.bf16.mxu1 %v9941_v53 }
 0x13b   :  { %8901 = vmatpush3.bf16.msra.mxu1 %v9941_v53  ;;  %v9963_v53 = vld [vmem:[%s12059_s3 + $0x120] sm:$0xff]  }
 0x13c   :  { %8902 = vmatprep.subr.bf16.mxu1 %v9942_v54 }
 0x13f   :  { %8903 = vmatpush3.bf16.msra.mxu1 %v9942_v54  ;;  %v9964_v54 = vld [vmem:[%s12059_s3 + $0x128] sm:$0xff]  }
 0x140   :  { %8908 = vmatprep.subr.bf16.mxu1 %v9943_v57 }
 0x142   :  { %8905 = vmatmul.mubr.bf16.vlgmr.msra.gmra.mrb[0].mxu1 %v422_v4 }
 0x143   :  { %8909 = vmatpush3.bf16.msra.mxu1 %v9943_v57  ;;  %8924 = vmatprep.mubr.bf16.mxu1 %v716_v6  ;;  %v996_v57 = vld [vmem:[#allocation3 + $0x50] ss:$2 sm:$0xf] }
 0x144   :  { %8910 = vmatprep.subr.bf16.mxu1 %v9944_v5  ;;  %v1013_v4 = vcombine.low %v996_v57, %v998_v62  ;;  %v9989_v57 = vld [vmem:[%s12059_s3 + $0x1f0] sm:$0xff]  }
 0x145   :  { %v1599_v62 = vld [vmem:[#allocation2 + $0x30] ss:$2 sm:$0xf] }
 0x146   :  { %v1020_v6 = vpack.c.bf16 %v1014_v0, %v1013_v4  ;;  %v1454_v0 = vld [vmem:[#allocation3 + $0x63] ss:$2 sm:$0xf]  ;;  %v1597_v4 = vld [vmem:[#allocation2 + $0x20] ss:$2 sm:$0xf] }
 0x147   :  { %8911 = vmatpush3.bf16.msra.mxu1 %v9944_v5  ;;  %v1163_v5 = vcombine.low %v1140_v63, %v1142_v2  ;;  %v1601_v63 = vld [vmem:[#allocation2 + $0x40] ss:$2 sm:$0xf]  ;;  %v1470_v2 = vcombine.low %v1456_v60, %v1458_v61  ;;  %v10014_v60 = vld [vmem:[%s12059_s3 + $0x2b8] sm:$0xff]  }
 0x148   :  { %8912 = vmatprep.subr.bf16.mxu1 %v9945_v7  ;;  %v1907_v61 = vld [vmem:[#allocation2 + $0x62] ss:$2 sm:$0xf] }
 0x14b   :  { %8913 = vmatpush3.bf16.msra.mxu1 %v9945_v7  ;;  %v9968_v7 = vld [vmem:[%s12059_s3 + $0x148] sm:$0xff]  }
 0x14c   :  { %8914 = vmatprep.subr.bf16.mxu1 %v9946_v8 }
 0x14f   :  { %8915 = vmatpush3.bf16.msra.mxu1 %v9946_v8  ;;  %v1171_v8 = vpack.c.bf16 %v1164_v3, %v1163_v5  ;;  %v9991_v3 = vld [vmem:[%s12059_s3 + $0x200] sm:$0xff]   ;;  %v1619_v5 = vcombine.low %v1599_v62, %v1601_v63  ;;  %v1913_v63 = vld [vmem:[#allocation2 + $0x92] ss:$2 sm:$0xf] }
 0x150   :  { %8916 = vmatprep.subr.bf16.mxu1 %v9947_v9  ;;  %v1911_v62 = vld [vmem:[#allocation2 + $0x82] ss:$2 sm:$0xf] }
 0x153   :  { %8917 = vmatpush3.bf16.msra.mxu1 %v9947_v9  ;;  %v9969_v9 = vld [vmem:[%s12059_s3 + $0x150] sm:$0xff]  }
 0x154   :  { %8918 = vmatprep.subr.bf16.mxu1 %v9948_v10 }
 0x157   :  { %8919 = vmatpush3.bf16.msra.mxu1 %v9948_v10  ;;  %v9970_v10 = vld [vmem:[%s12059_s3 + $0x158] sm:$0xff]  }
 0x158   :  { %8920 = vmatprep.subr.bf16.mxu1 %v9949_v11 }
 0x15b   :  { %8921 = vmatpush3.bf16.msra.mxu1 %v9949_v11  ;;  %v9971_v11 = vld [vmem:[%s12059_s3 + $0x160] sm:$0xff]  }
 0x15c   :  { %8922 = vmatprep.subr.bf16.mxu1 %v9950_v12 }
 0x15f   :  { %8923 = vmatpush3.bf16.msra.mxu1 %v9950_v12  ;;  %v9972_v12 = vld [vmem:[%s12059_s3 + $0x168] sm:$0xff]  }
 0x160   :  { %8928 = vmatprep.subr.bf16.mxu1 %v9951_v15 }
 0x162   :  { %8925 = vmatmul.mubr.bf16.vlgmr.msra.gmra.mrb[0].mxu1 %v717_v28 }
 0x163   :  { %8929 = vmatpush3.bf16.msra.mxu1 %v9951_v15  ;;  %8944 = vmatprep.mubr.bf16.mxu1 %v868_v30  ;;  %v1148_v15 = vld [vmem:[#allocation3 + $0x51] ss:$2 sm:$0xf] }
 0x164   :  { %8930 = vmatprep.subr.bf16.mxu1 %v9952_v29  ;;  %v1165_v28 = vcombine.low %v1148_v15, %v1150_v20  ;;  %v9997_v15 = vld [vmem:[%s12059_s3 + $0x230] sm:$0xff]  }
 0x165   :  { %v1751_v20 = vld [vmem:[#allocation2 + $0x31] ss:$2 sm:$0xf] }
 0x166   :  { %v1172_v30 = vpack.c.bf16 %v1166_v22, %v1165_v28  ;;  %v1605_v22 = vld [vmem:[#allocation2 + $0x70] ss:$2 sm:$0xf]  ;;  %v1749_v28 = vld [vmem:[#allocation2 + $0x21] ss:$2 sm:$0xf] }
 0x167   :  { %8931 = vmatpush3.bf16.msra.mxu1 %v9952_v29  ;;  %v1315_v29 = vcombine.low %v1292_v21, %v1294_v24  ;;  %v1753_v21 = vld [vmem:[#allocation2 + $0x41] ss:$2 sm:$0xf]  ;;  %v1621_v24 = vcombine.low %v1607_v18, %v1609_v19  ;;  %v10022_v18 = vld [vmem:[%s12059_s3 + $0x2f8] sm:$0xff]  }
 0x168   :  { %8932 = vmatprep.subr.bf16.mxu1 %v9953_v31  ;;  %v2208_v19 = vld [vmem:[#allocation3 + $0x40] ss:$2 sm:$0xf] }
 0x16b   :  { %8933 = vmatpush3.bf16.msra.mxu1 %v9953_v31  ;;  %v9976_v31 = vld [vmem:[%s12059_s3 + $0x188] sm:$0xff]  }
 0x16c   :  { %8934 = vmatprep.subr.bf16.mxu1 %v9954_v32 }
 0x16f   :  { %8935 = vmatpush3.bf16.msra.mxu1 %v9954_v32  ;;  %v1323_v32 = vpack.c.bf16 %v1316_v27, %v1315_v29  ;;  %v9999_v27 = vld [vmem:[%s12059_s3 + $0x240] sm:$0xff]   ;;  %v1771_v29 = vcombine.low %v1751_v20, %v1753_v21  ;;  %v2065_v21 = vld [vmem:[#allocation2 + $0x93] ss:$2 sm:$0xf] }
 0x170   :  { %8936 = vmatprep.subr.bf16.mxu1 %v9955_v33  ;;  %v2063_v20 = vld [vmem:[#allocation2 + $0x83] ss:$2 sm:$0xf] }
 0x173   :  { %8937 = vmatpush3.bf16.msra.mxu1 %v9955_v33  ;;  %v9977_v33 = vld [vmem:[%s12059_s3 + $0x190] sm:$0xff]  }
 0x174   :  { %8938 = vmatprep.subr.bf16.mxu1 %v9956_v34 }
 0x177   :  { %8939 = vmatpush3.bf16.msra.mxu1 %v9956_v34  ;;  %v9978_v34 = vld [vmem:[%s12059_s3 + $0x198] sm:$0xff]  }
 0x178   :  { %8940 = vmatprep.subr.bf16.mxu1 %v9957_v35 }
 0x17b   :  { %8941 = vmatpush3.bf16.msra.mxu1 %v9957_v35  ;;  %v9979_v35 = vld [vmem:[%s12059_s3 + $0x1a0] sm:$0xff]  }
 0x17c   :  { %8942 = vmatprep.subr.bf16.mxu1 %v9958_v36 }
 0x17f   :  { %8943 = vmatpush3.bf16.msra.mxu1 %v9958_v36  ;;  %v9980_v36 = vld [vmem:[%s12059_s3 + $0x1a8] sm:$0xff]  }
 0x180   :  { %8948 = vmatprep.subr.bf16.mxu1 %v9959_v39 }
 0x182   :  { %8945 = vmatmul.mubr.bf16.vlgmr.msra.gmra.mrb[0].mxu1 %v869_v49 }
 0x183   :  { %8949 = vmatpush3.bf16.msra.mxu1 %v9959_v39  ;;  %8964 = vmatprep.mubr.bf16.mxu1 %v1019_v51  ;;  %v1300_v39 = vld [vmem:[#allocation3 + $0x52] ss:$2 sm:$0xf] }
 0x184   :  { %8950 = vmatprep.subr.bf16.mxu1 %v9960_v50  ;;  %v1317_v49 = vcombine.low %v1300_v39, %v1302_v43  ;;  %v10005_v39 = vld [vmem:[%s12059_s3 + $0x270] sm:$0xff]  }
 0x185   :  { %v1903_v43 = vld [vmem:[#allocation2 + $0x32] ss:$2 sm:$0xf] }
 0x186   :  { %v1324_v51 = vpack.c.bf16 %v1318_v45, %v1317_v49  ;;  %v1757_v45 = vld [vmem:[#allocation2 + $0x71] ss:$2 sm:$0xf]  ;;  %v1901_v49 = vld [vmem:[#allocation2 + $0x22] ss:$2 sm:$0xf] }
 0x187   :  { %8951 = vmatpush3.bf16.msra.mxu1 %v9960_v50  ;;  %v1467_v50 = vcombine.low %v1444_v44, %v1446_v47  ;;  %v1905_v44 = vld [vmem:[#allocation2 + $0x42] ss:$2 sm:$0xf]  ;;  %v1773_v47 = vcombine.low %v1759_v26, %v1761_v42  ;;  %v10057_v26 = vld [vmem:[%s12061_s5 + $0x50] sm:$0xff]  }
 0x188   :  { %8952 = vmatprep.subr.bf16.mxu1 %v9961_v52  ;;  %v10027_v42 = vld [vmem:[%s12059_s3 + $0x320] sm:$0xff]  }
 0x18b   :  { %8953 = vmatpush3.bf16.msra.mxu1 %v9961_v52  ;;  %v9984_v52 = vld [vmem:[%s12059_s3 + $0x1c8] sm:$0xff]  }
 0x18c   :  { %8954 = vmatprep.subr.bf16.mxu1 %v9962_v25 }
 0x18f   :  { %8955 = vmatpush3.bf16.msra.mxu1 %v9962_v25  ;;  %v1475_v25 = vpack.c.bf16 %v1468_v48, %v1467_v50  ;;  %v10007_v48 = vld [vmem:[%s12059_s3 + $0x280] sm:$0xff]   ;;  %v1923_v50 = vcombine.low %v1903_v43, %v1905_v44  ;;  %v10028_v43 = vld [vmem:[%s12059_s3 + $0x328] sm:$0xff]   ;;  %v10029_v44 = vld [vmem:[%s12059_s3 + $0x330] sm:$0xff]  }
 0x190   :  { %8956 = vmatprep.subr.bf16.mxu1 %v9963_v53 }
 0x193   :  { %8957 = vmatpush3.bf16.msra.mxu1 %v9963_v53  ;;  %v9985_v53 = vld [vmem:[%s12059_s3 + $0x1d0] sm:$0xff]  }
 0x194   :  { %8958 = vmatprep.subr.bf16.mxu1 %v9964_v54 }
 0x197   :  { %8959 = vmatpush3.bf16.msra.mxu1 %v9964_v54  ;;  %v9986_v54 = vld [vmem:[%s12059_s3 + $0x1d8] sm:$0xff]  }
 0x198   :  { %8960 = vmatprep.subr.bf16.mxu1 %v9965_v55 }
 0x19b   :  { %8961 = vmatpush3.bf16.msra.mxu1 %v9965_v55  ;;  %v9987_v55 = vld [vmem:[%s12059_s3 + $0x1e0] sm:$0xff]  }
 0x19c   :  { %8962 = vmatprep.subr.bf16.mxu1 %v9966_v56 }
 0x19f   :  { %8963 = vmatpush3.bf16.msra.mxu1 %v9966_v56  ;;  %v9988_v56 = vld [vmem:[%s12059_s3 + $0x1e8] sm:$0xff]  }
 0x1a0   :  { %8968 = vmatprep.subr.bf16.mxu1 %v9967_v1 }
 0x1a2   :  { %8965 = vmatmul.mubr.bf16.vlgmr.msra.gmra.mrb[0].mxu1 %v1020_v6  ;;  %v1469_v6 = vcombine.low %v1452_v59, %v1454_v0  ;;  %v10013_v59 = vld [vmem:[%s12059_s3 + $0x2b0] sm:$0xff]  }
 0x1a3   :  { %8969 = vmatpush3.bf16.msra.mxu1 %v9967_v1  ;;  %8984 = vmatprep.mubr.bf16.mxu1 %v1171_v8  ;;  %v1595_v1 = vld [vmem:[#allocation2 + $0x10] ss:$2 sm:$0xf]  ;;  %v2055_v0 = vld [vmem:[#allocation2 + $0x33] ss:$2 sm:$0xf] }
 0x1a4   :  { %8970 = vmatprep.subr.bf16.mxu1 %v9968_v7  ;;  %v1476_v8 = vpack.c.bf16 %v1470_v2, %v1469_v6  ;;  %v1909_v2 = vld [vmem:[#allocation2 + $0x72] ss:$2 sm:$0xf]  ;;  %v2053_v6 = vld [vmem:[#allocation2 + $0x23] ss:$2 sm:$0xf] }
 0x1a7   :  { %8971 = vmatpush3.bf16.msra.mxu1 %v9968_v7  ;;  %v1618_v7 = vcombine.low %v1595_v1, %v1597_v4  ;;  %v2057_v1 = vld [vmem:[#allocation2 + $0x43] ss:$2 sm:$0xf]  ;;  %v1925_v4 = vcombine.low %v1911_v62, %v1913_v63  ;;  %v10034_v62 = vld [vmem:[%s12059_s3 + $0x358] sm:$0xff]  }
 0x1a8   :  { %8972 = vmatprep.subr.bf16.mxu1 %v9969_v9  ;;  %v10035_v63 = vld [vmem:[%s12059_s3 + $0x360] sm:$0xff]  }
 0x1ab   :  { %8973 = vmatpush3.bf16.msra.mxu1 %v9969_v9  ;;  %v9992_v9 = vld [vmem:[%s12059_s3 + $0x208] sm:$0xff]  }
 0x1ac   :  { %8974 = vmatprep.subr.bf16.mxu1 %v9970_v10 }
 0x1af   :  { %8975 = vmatpush3.bf16.msra.mxu1 %v9970_v10  ;;  %v1626_v10 = vpack.c.bf16 %v1619_v5, %v1618_v7  ;;  %v10015_v5 = vld [vmem:[%s12059_s3 + $0x2c0] sm:$0xff]   ;;  %v2075_v7 = vcombine.low %v2055_v0, %v2057_v1  ;;  %v10036_v0 = vld [vmem:[%s12059_s3 + $0x368] sm:$0xff]   ;;  %v10037_v1 = vld [vmem:[%s12059_s3 + $0x370] sm:$0xff]  }
 0x1b0   :  { %8976 = vmatprep.subr.bf16.mxu1 %v9971_v11 }
 0x1b3   :  { %8977 = vmatpush3.bf16.msra.mxu1 %v9971_v11  ;;  %v9993_v11 = vld [vmem:[%s12059_s3 + $0x210] sm:$0xff]  }
 0x1b4   :  { %8978 = vmatprep.subr.bf16.mxu1 %v9972_v12 }
 0x1b7   :  { %8979 = vmatpush3.bf16.msra.mxu1 %v9972_v12  ;;  %v9994_v12 = vld [vmem:[%s12059_s3 + $0x218] sm:$0xff]  }
 0x1b8   :  { %8980 = vmatprep.subr.bf16.mxu1 %v9973_v13 }
 0x1bb   :  { %8981 = vmatpush3.bf16.msra.mxu1 %v9973_v13  ;;  %v9995_v13 = vld [vmem:[%s12059_s3 + $0x220] sm:$0xff]  }
 0x1bc   :  { %8982 = vmatprep.subr.bf16.mxu1 %v9974_v14 }
 0x1bf   :  { %8983 = vmatpush3.bf16.msra.mxu1 %v9974_v14  ;;  %v9996_v14 = vld [vmem:[%s12059_s3 + $0x228] sm:$0xff]  }
 0x1c0   :  { %8988 = vmatprep.subr.bf16.mxu1 %v9975_v23 }
 0x1c2   :  { %8985 = vmatmul.mubr.bf16.vlgmr.msra.gmra.mrb[0].mxu1 %v1172_v30  ;;  %v1620_v30 = vcombine.low %v1603_v17, %v1605_v22  ;;  %v10021_v17 = vld [vmem:[%s12059_s3 + $0x2f0] sm:$0xff]   ;;  %v2204_v22 = vld [vmem:[#allocation3 + $0x20] ss:$2 sm:$0xf] }
 0x1c3   :  { %8989 = vmatpush3.bf16.msra.mxu1 %v9975_v23  ;;  %9004 = vmatprep.mubr.bf16.mxu1 %v1323_v32  ;;  %v1747_v23 = vld [vmem:[#allocation2 + $0x11] ss:$2 sm:$0xf] }
 0x1c4   :  { %8990 = vmatprep.subr.bf16.mxu1 %v9976_v31  ;;  %v1627_v32 = vpack.c.bf16 %v1621_v24, %v1620_v30  ;;  %v2059_v24 = vld [vmem:[#allocation2 + $0x63] ss:$2 sm:$0xf]  ;;  %v2202_v30 = vld [vmem:[#allocation3 + $0x10] ss:$2 sm:$0xf] }
 0x1c7   :  { %8991 = vmatpush3.bf16.msra.mxu1 %v9976_v31  ;;  %v1770_v31 = vcombine.low %v1747_v23, %v1749_v28  ;;  %v2206_v23 = vld [vmem:[#allocation3 + $0x30] ss:$2 sm:$0xf]  ;;  %v2077_v28 = vcombine.low %v2063_v20, %v2065_v21  ;;  %v10042_v20 = vld [vmem:[%s12059_s3 + $0x398] sm:$0xff]   ;;  %v10043_v21 = vld [vmem:[%s12059_s3 + $0x3a0] sm:$0xff]  }
 0x1c8   :  { %8992 = vmatprep.subr.bf16.mxu1 %v9977_v33 }
 0x1cb   :  { %8993 = vmatpush3.bf16.msra.mxu1 %v9977_v33  ;;  %v10000_v33 = vld [vmem:[%s12059_s3 + $0x248] sm:$0xff]  }
 0x1cc   :  { %8994 = vmatprep.subr.bf16.mxu1 %v9978_v34 }
 0x1cf   :  { %8995 = vmatpush3.bf16.msra.mxu1 %v9978_v34  ;;  %v1778_v34 = vpack.c.bf16 %v1771_v29, %v1770_v31  ;;  %v10023_v29 = vld [vmem:[%s12059_s3 + $0x300] sm:$0xff]   ;;  %v2225_v31 = vcombine.low %v2202_v30, %v2204_v22  ;;  %v10044_v22 = vld [vmem:[%s12059_s3 + $0x3a8] sm:$0xff]  }
 0x1d0   :  { %8996 = vmatprep.subr.bf16.mxu1 %v9979_v35  ;;  %v2518_v30 = vld [vmem:[#allocation3 + $0x82] ss:$2 sm:$0xf] }
 0x1d3   :  { %8997 = vmatpush3.bf16.msra.mxu1 %v9979_v35  ;;  %v10001_v35 = vld [vmem:[%s12059_s3 + $0x250] sm:$0xff]  }
 0x1d4   :  { %8998 = vmatprep.subr.bf16.mxu1 %v9980_v36 }
 0x1d7   :  { %8999 = vmatpush3.bf16.msra.mxu1 %v9980_v36  ;;  %v10002_v36 = vld [vmem:[%s12059_s3 + $0x258] sm:$0xff]  }
 0x1d8   :  { %9000 = vmatprep.subr.bf16.mxu1 %v9981_v37 }
 0x1db   :  { %9001 = vmatpush3.bf16.msra.mxu1 %v9981_v37  ;;  %v10003_v37 = vld [vmem:[%s12059_s3 + $0x260] sm:$0xff]  }
 0x1dc   :  { %9002 = vmatprep.subr.bf16.mxu1 %v9982_v38 }
 0x1df   :  { %9003 = vmatpush3.bf16.msra.mxu1 %v9982_v38  ;;  %v10004_v38 = vld [vmem:[%s12059_s3 + $0x268] sm:$0xff]  }
 0x1e0   :  { %9008 = vmatprep.subr.bf16.mxu1 %v9983_v46 }
 0x1e2   :  { %9005 = vmatmul.mubr.bf16.vlgmr.msra.gmra.mrb[0].mxu1 %v1324_v51  ;;  %v1772_v51 = vcombine.low %v1755_v41, %v1757_v45  ;;  %v10773_v41 = vld [vmem:[#allocation2] sm:$0xff]  ;;  %v10030_v45 = vld [vmem:[%s12059_s3 + $0x338] sm:$0xff]  }
 0x1e3   :  { %9009 = vmatpush3.bf16.msra.mxu1 %v9983_v46  ;;  %9024 = vmatprep.mubr.bf16.mxu1 %v1475_v25  ;;  %v1899_v46 = vld [vmem:[#allocation2 + $0x12] ss:$2 sm:$0xf] }
 0x1e4   :  { %9010 = vmatprep.subr.bf16.mxu1 %v9984_v52  ;;  %v1779_v25 = vpack.c.bf16 %v1773_v47, %v1772_v51  ;;  %v2214_v47 = vld [vmem:[#allocation3 + $0x80] ss:$2 sm:$0xf]  ;;  %v2360_v51 = vld [vmem:[#allocation3 + $0x41] ss:$2 sm:$0xf]  ;;  %9204 = vmatprep.mubr.msk.bf16.mxu0 %vm10332_vm0, %v10773_v41 }
 0x1e7   :  { %9011 = vmatpush3.bf16.msra.mxu1 %v9984_v52  ;;  %v1922_v52 = vcombine.low %v1899_v46, %v1901_v49  ;;  %v2212_v46 = vld [vmem:[#allocation3 + $0x70] ss:$2 sm:$0xf]  ;;  %v2356_v49 = vld [vmem:[#allocation3 + $0x21] ss:$2 sm:$0xf] }
 0x1e8   :  { %9012 = vmatprep.subr.bf16.mxu1 %v9985_v53 }
 0x1eb   :  { %9013 = vmatpush3.bf16.msra.mxu1 %v9985_v53  ;;  %v10008_v53 = vld [vmem:[%s12059_s3 + $0x288] sm:$0xff]  }
 0x1ec   :  { %9014 = vmatprep.subr.bf16.mxu1 %v9986_v54 }
 0x1ef   :  { %9015 = vmatpush3.bf16.msra.mxu1 %v9986_v54  ;;  %v1930_v54 = vpack.c.bf16 %v1923_v50, %v1922_v52  ;;  %v2358_v50 = vld [vmem:[#allocation3 + $0x31] ss:$2 sm:$0xf]  ;;  %v2210_v52 = vld [vmem:[#allocation3 + $0x60] ss:$2 sm:$0xf] }
 0x1f0   :  { %9016 = vmatprep.subr.bf16.mxu1 %v9987_v55 }
 0x1f3   :  { %9017 = vmatpush3.bf16.msra.mxu1 %v9987_v55  ;;  %v10009_v55 = vld [vmem:[%s12059_s3 + $0x290] sm:$0xff]  }
 0x1f4   :  { %9018 = vmatprep.subr.bf16.mxu1 %v9988_v56 }
 0x1f7   :  { %9019 = vmatpush3.bf16.msra.mxu1 %v9988_v56  ;;  %v10010_v56 = vld [vmem:[%s12059_s3 + $0x298] sm:$0xff]  }
 0x1f8   :  { %9020 = vmatprep.subr.bf16.mxu1 %v9989_v57 }
 0x1fb   :  { %9021 = vmatpush3.bf16.msra.mxu1 %v9989_v57  ;;  %v10011_v57 = vld [vmem:[%s12059_s3 + $0x2a0] sm:$0xff]  }
 0x1fc   :  { %9022 = vmatprep.subr.bf16.mxu1 %v9990_v58 }
 0x1ff   :  { %9023 = vmatpush3.bf16.msra.mxu1 %v9990_v58  ;;  %v10012_v58 = vld [vmem:[%s12059_s3 + $0x2a8] sm:$0xff]  }
 0x200   :  { %9028 = vmatprep.subr.bf16.mxu1 %v9991_v3 }
 0x202   :  { %9025 = vmatmul.mubr.bf16.vlgmr.msra.gmra.mrb[0].mxu1 %v1476_v8  ;;  %v1924_v8 = vcombine.low %v1907_v61, %v1909_v2  ;;  %v10033_v61 = vld [vmem:[%s12059_s3 + $0x350] sm:$0xff]   ;;  %v10038_v2 = vld [vmem:[%s12059_s3 + $0x378] sm:$0xff]  }
 0x203   :  { %9029 = vmatpush3.bf16.msra.mxu1 %v9991_v3  ;;  %9044 = vmatprep.mubr.bf16.mxu1 %v1626_v10  ;;  %v2051_v3 = vld [vmem:[#allocation2 + $0x13] ss:$2 sm:$0xf] }
 0x204   :  { %9030 = vmatprep.subr.bf16.mxu1 %v9992_v9  ;;  %v1931_v10 = vpack.c.bf16 %v1925_v4, %v1924_v8  ;;  %v2366_v4 = vld [vmem:[#allocation3 + $0x81] ss:$2 sm:$0xf]  ;;  %v2512_v8 = vld [vmem:[#allocation3 + $0x42] ss:$2 sm:$0xf] }
 0x207   :  { %9031 = vmatpush3.bf16.msra.mxu1 %v9992_v9  ;;  %v2074_v9 = vcombine.low %v2051_v3, %v2053_v6  ;;  %v2364_v3 = vld [vmem:[#allocation3 + $0x71] ss:$2 sm:$0xf]  ;;  %v2508_v6 = vld [vmem:[#allocation3 + $0x22] ss:$2 sm:$0xf] }
 0x208   :  { %9032 = vmatprep.subr.bf16.mxu1 %v9993_v11 }
 0x20b   :  { %9033 = vmatpush3.bf16.msra.mxu1 %v9993_v11  ;;  %v10016_v11 = vld [vmem:[%s12059_s3 + $0x2c8] sm:$0xff]  }
 0x20c   :  { %9034 = vmatprep.subr.bf16.mxu1 %v9994_v12 }
 0x20f   :  { %9035 = vmatpush3.bf16.msra.mxu1 %v9994_v12  ;;  %v2082_v12 = vpack.c.bf16 %v2075_v7, %v2074_v9  ;;  %v2510_v7 = vld [vmem:[#allocation3 + $0x32] ss:$2 sm:$0xf]  ;;  %v2362_v9 = vld [vmem:[#allocation3 + $0x61] ss:$2 sm:$0xf] }
 0x210   :  { %9036 = vmatprep.subr.bf16.mxu1 %v9995_v13 }
 0x213   :  { %9037 = vmatpush3.bf16.msra.mxu1 %v9995_v13  ;;  %v10017_v13 = vld [vmem:[%s12059_s3 + $0x2d0] sm:$0xff]  }
 0x214   :  { %9038 = vmatprep.subr.bf16.mxu1 %v9996_v14 }
 0x217   :  { %9039 = vmatpush3.bf16.msra.mxu1 %v9996_v14  ;;  %v10018_v14 = vld [vmem:[%s12059_s3 + $0x2d8] sm:$0xff]  }
 0x218   :  { %9040 = vmatprep.subr.bf16.mxu1 %v9997_v15 }
 0x21b   :  { %9041 = vmatpush3.bf16.msra.mxu1 %v9997_v15  ;;  %v10019_v15 = vld [vmem:[%s12059_s3 + $0x2e0] sm:$0xff]  }
 0x21c   :  { %9042 = vmatprep.subr.bf16.mxu1 %v9998_v16 }
 0x21f   :  { %9043 = vmatpush3.bf16.msra.mxu1 %v9998_v16  ;;  %v10020_v16 = vld [vmem:[%s12059_s3 + $0x2e8] sm:$0xff]  }
 0x220   :  { %9048 = vmatprep.subr.bf16.mxu1 %v9999_v27 }
 0x222   :  { %9045 = vmatmul.mubr.bf16.vlgmr.msra.gmra.mrb[0].mxu1 %v1627_v32  ;;  %v2226_v32 = vcombine.low %v2206_v23, %v2208_v19  ;;  %v10041_v19 = vld [vmem:[%s12059_s3 + $0x390] sm:$0xff]  }
 0x223   :  { %9049 = vmatpush3.bf16.msra.mxu1 %v9999_v27  ;;  %9064 = vmatprep.mubr.bf16.mxu1 %v1778_v34  ;;  %v2061_v27 = vld [vmem:[#allocation2 + $0x73] ss:$2 sm:$0xf] }
 0x224   :  { %9050 = vmatprep.subr.bf16.mxu1 %v10000_v33  ;;  %v10045_v23 = vld [vmem:[%s12059_s3 + $0x3b0] sm:$0xff]  }
 0x227   :  { %9051 = vmatpush3.bf16.msra.mxu1 %v10000_v33  ;;  %v2076_v33 = vcombine.low %v2059_v24, %v2061_v27  ;;  %v10046_v24 = vld [vmem:[%s12059_s3 + $0x3b8] sm:$0xff]  }
 0x228   :  { %9052 = vmatprep.subr.bf16.mxu1 %v10001_v35  ;;  %v2516_v27 = vld [vmem:[#allocation3 + $0x72] ss:$2 sm:$0xf] }
 0x229   :  { %v2083_v34 = vpack.c.bf16 %v2077_v28, %v2076_v33  ;;  %v2520_v28 = vld [vmem:[#allocation3 + $0x92] ss:$2 sm:$0xf]  ;;  %v2514_v33 = vld [vmem:[#allocation3 + $0x62] ss:$2 sm:$0xf] }
 0x22b   :  { %9053 = vmatpush3.bf16.msra.mxu1 %v10001_v35  ;;  %v10024_v35 = vld [vmem:[%s12059_s3 + $0x308] sm:$0xff]  }
 0x22c   :  { %9054 = vmatprep.subr.bf16.mxu1 %v10002_v36 }
 0x22f   :  { %9055 = vmatpush3.bf16.msra.mxu1 %v10002_v36  ;;  %v2233_v36 = vpack.c.bf16 %v2226_v32, %v2225_v31  ;;  %v2660_v31 = vld [vmem:[#allocation3 + $0x23] ss:$2 sm:$0xf]  ;;  %v2662_v32 = vld [vmem:[#allocation3 + $0x33] ss:$2 sm:$0xf] }
 0x230   :  { %9056 = vmatprep.subr.bf16.mxu1 %v10003_v37 }
 0x233   :  { %9057 = vmatpush3.bf16.msra.mxu1 %v10003_v37  ;;  %v10055_v37 = vld [vmem:[%s12061_s5 + $0x40] sm:$0xff]  }
 0x234   :  { %9058 = vmatprep.subr.bf16.mxu1 %v10004_v38  ;;  %9189 = vmatpush3.bf16.msra.mxu0 %v10055_v37  ;;  %v2658_v37 = vld [vmem:[#allocation3 + $0x13] ss:$2 sm:$0xf] }
 0x235   :  { %9190 = vmatprep.subr.bf16.mxu0 %v10773_v41 }
 0x237   :  { %9059 = vmatpush3.bf16.msra.mxu1 %v10004_v38  ;;  %v10025_v38 = vld [vmem:[%s12059_s3 + $0x310] sm:$0xff]  }
 0x238   :  { %9060 = vmatprep.subr.bf16.mxu1 %v10005_v39 }
 0x23b   :  { %9061 = vmatpush3.bf16.msra.mxu1 %v10005_v39  ;;  %v10056_v39 = vld [vmem:[%s12061_s5 + $0x48] sm:$0xff]  }
 0x23c   :  { %9062 = vmatprep.subr.bf16.mxu1 %v10006_v40  ;;  %9191 = vmatpush3.bf16.msra.mxu0 %v10056_v39 }
 0x23d   :  { %9192 = vmatprep.subr.bf16.mxu0 %v10773_v41 }
 0x23f   :  { %9063 = vmatpush3.bf16.msra.mxu1 %v10006_v40  ;;  %v10026_v40 = vld [vmem:[%s12059_s3 + $0x318] sm:$0xff]  }
 0x240   :  { %9068 = vmatprep.subr.bf16.mxu1 %v10007_v48  ;;  %9193 = vmatpush3.bf16.msra.mxu0 %v10057_v26  ;;  %v10048_v26 = vld [vmem:[%s12059_s3 + $0x3c8] sm:$0xff]  }
 0x241   :  { %9194 = vmatprep.subr.bf16.mxu0 %v10773_v41 }
 0x242   :  { %9065 = vmatmul.mubr.bf16.vlgmr.msra.gmra.mrb[0].mxu1 %v1779_v25  ;;  %v10031_v25 = vld [vmem:[%s12059_s3 + $0x340] sm:$0xff]  }
 0x243   :  { %9069 = vmatpush3.bf16.msra.mxu1 %v10007_v48  ;;  %9084 = vmatprep.mubr.bf16.mxu1 %v1930_v54  ;;  %v2216_v48 = vld [vmem:[#allocation3 + $0x90] ss:$2 sm:$0xf]  ;;  %v2227_v54 = vcombine.low %v2210_v52, %v2212_v46  ;;  %v10052_v46 = vld [vmem:[%s12059_s3 + $0x3e8] sm:$0xff]  }
 0x244   :  { %9070 = vmatprep.subr.bf16.mxu1 %v10008_v53  ;;  %v2666_v52 = vld [vmem:[#allocation3 + $0x63] ss:$2 sm:$0xf] }
 0x247   :  { %9071 = vmatpush3.bf16.msra.mxu1 %v10008_v53  ;;  %v2354_v53 = vld [vmem:[#allocation3 + $0x11] ss:$2 sm:$0xf] }
 0x248   :  { %9072 = vmatprep.subr.bf16.mxu1 %v10009_v55 }
 0x24b   :  { %9073 = vmatpush3.bf16.msra.mxu1 %v10009_v55  ;;  %v2228_v55 = vcombine.low %v2214_v47, %v2216_v48  ;;  %v10053_v47 = vld [vmem:[%s12059_s3 + $0x3f0] sm:$0xff]   ;;  %v10054_v48 = vld [vmem:[%s12059_s3 + $0x3f8] sm:$0xff]  }
 0x24c   :  { %9074 = vmatprep.subr.bf16.mxu1 %v10010_v56 }
 0x24f   :  { %9075 = vmatpush3.bf16.msra.mxu1 %v10010_v56  ;;  %v2377_v56 = vcombine.low %v2354_v53, %v2356_v49  ;;  %v2672_v49 = vld [vmem:[#allocation3 + $0x93] ss:$2 sm:$0xf] }
 0x250   :  { %9076 = vmatprep.subr.bf16.mxu1 %v10011_v57 }
 0x253   :  { %9077 = vmatpush3.bf16.msra.mxu1 %v10011_v57  ;;  %v2378_v57 = vcombine.low %v2358_v50, %v2360_v51  ;;  %v2668_v50 = vld [vmem:[#allocation3 + $0x73] ss:$2 sm:$0xf]  ;;  %v2670_v51 = vld [vmem:[#allocation3 + $0x83] ss:$2 sm:$0xf] }
 0x254   :  { %9078 = vmatprep.subr.bf16.mxu1 %v10012_v58  ;;  %v2684_v53 = vcombine.low %v2670_v51, %v2672_v49  ;;  %v10073_v51 = vld [vmem:[%s12061_s5 + $0x90] sm:$0xff]  }
 0x257   :  { %9079 = vmatpush3.bf16.msra.mxu1 %v10012_v58  ;;  %v10032_v58 = vld [vmem:[%s12059_s3 + $0x348] sm:$0xff]  }
 0x258   :  { %9080 = vmatprep.subr.bf16.mxu1 %v10013_v59 }
 0x25b   :  { %9081 = vmatpush3.bf16.msra.mxu1 %v10013_v59  ;;  %v2234_v59 = vpack.c.bf16 %v2228_v55, %v2227_v54  ;;  %v10058_v55 = vld [vmem:[%s12061_s5 + $0x58] sm:$0xff]  }
 0x25c   :  { %9082 = vmatprep.subr.bf16.mxu1 %v10014_v60  ;;  %9195 = vmatpush3.bf16.msra.mxu0 %v10058_v55  ;;  %v3134_v55 = vld [vmem:[#allocation4 + $0x1a] ss:$2 sm:$0x3] }
 0x25d   :  { %9196 = vmatprep.subr.bf16.mxu0 %v10773_v41 }
 0x25f   :  { %9083 = vmatpush3.bf16.msra.mxu1 %v10014_v60  ;;  %v2385_v60 = vpack.c.bf16 %v2378_v57, %v2377_v56  ;;  %v10059_v56 = vld [vmem:[%s12061_s5 + $0x60] sm:$0xff]   ;;  %v10060_v57 = vld [vmem:[%s12061_s5 + $0x68] sm:$0xff]  }
 0x260   :  { %9088 = vmatprep.subr.bf16.mxu1 %v10015_v5  ;;  %9197 = vmatpush3.bf16.msra.mxu0 %v10059_v56 }
 0x261   :  { %9198 = vmatprep.subr.bf16.mxu0 %v10773_v41 }
 0x262   :  { %9085 = vmatmul.mubr.bf16.vlgmr.msra.gmra.mrb[0].mxu1 %v1931_v10  ;;  %v10039_v10 = vld [vmem:[%s12059_s3 + $0x380] sm:$0xff]  }
 0x263   :  { %9089 = vmatpush3.bf16.msra.mxu1 %v10015_v5  ;;  %9104 = vmatprep.mubr.bf16.mxu1 %v2082_v12  ;;  %v2368_v5 = vld [vmem:[#allocation3 + $0x91] ss:$2 sm:$0xf]  ;;  %v2379_v12 = vcombine.low %v2362_v9, %v2364_v3 }
 0x264   :  { %9090 = vmatprep.subr.bf16.mxu1 %v10016_v11  ;;  %9199 = vmatpush3.bf16.msra.mxu0 %v10060_v57  ;;  %v10076_v57 = vld [vmem:[%s12061_s5 + $0xa8] sm:$0xff]  }
 0x265   :  { %9200 = vmatprep.subr.bf16.mxu0 %v10773_v41 }
 0x267   :  { %9091 = vmatpush3.bf16.msra.mxu1 %v10016_v11  ;;  %v2506_v11 = vld [vmem:[#allocation3 + $0x12] ss:$2 sm:$0xf] }
 0x268   :  { %9092 = vmatprep.subr.bf16.mxu1 %v10017_v13 }
 0x26b   :  { %9093 = vmatpush3.bf16.msra.mxu1 %v10017_v13  ;;  %v2380_v13 = vcombine.low %v2366_v4, %v2368_v5  ;;  %v2875_v5 = vlaneseq }
 0x26c   :  { %9094 = vmatprep.subr.bf16.mxu1 %v10018_v14 }
 0x26f   :  { %9095 = vmatpush3.bf16.msra.mxu1 %v10018_v14  ;;  %v2529_v14 = vcombine.low %v2506_v11, %v2508_v6 }
 0x270   :  { %9096 = vmatprep.subr.bf16.mxu1 %v10019_v15 }
 0x273   :  { %9097 = vmatpush3.bf16.msra.mxu1 %v10019_v15  ;;  %v2530_v15 = vcombine.low %v2510_v7, %v2512_v8  ;;  %v10333_v8 = vmov 1983009808  }
 0x274   :  { %9098 = vmatprep.subr.bf16.mxu1 %v10020_v16  ;;  %v2873_v9 = vunpack.c.l.s4 %v10333_v8  ;;  %v3271_v8 = vld [vmem:[#allocation4 + $0x1b] ss:$2 sm:$0x3] }
 0x277   :  { %9099 = vmatpush3.bf16.msra.mxu1 %v10020_v16  ;;  %v10040_v16 = vld [vmem:[%s12059_s3 + $0x388] sm:$0xff]  }
 0x278   :  { %9100 = vmatprep.subr.bf16.mxu1 %v10021_v17 }
 0x27b   :  { %9101 = vmatpush3.bf16.msra.mxu1 %v10021_v17  ;;  %v2386_v17 = vpack.c.bf16 %v2380_v13, %v2379_v12 }
 0x27c   :  { %9102 = vmatprep.subr.bf16.mxu1 %v10022_v18 }
 0x27f   :  { %9103 = vmatpush3.bf16.msra.mxu1 %v10022_v18  ;;  %v2537_v18 = vpack.c.bf16 %v2530_v15, %v2529_v14 }
 0x280   :  { %9108 = vmatprep.subr.bf16.mxu1 %v10023_v29 }
 0x282   :  { %9105 = vmatmul.mubr.bf16.vlgmr.msra.gmra.mrb[0].mxu1 %v2083_v34  ;;  %v2531_v34 = vcombine.low %v2514_v33, %v2516_v27  ;;  %v10065_v33 = vld [vmem:[%s12061_s5 + $0x10] sm:$0xff]  }
 0x283   :  { %9109 = vmatpush3.bf16.msra.mxu1 %v10023_v29  ;;  %9124 = vmatprep.mubr.bf16.mxu1 %v2233_v36  ;;  %v2664_v29 = vld [vmem:[#allocation3 + $0x43] ss:$2 sm:$0xf] }
 0x284   :  { %9110 = vmatprep.subr.bf16.mxu1 %v10024_v35  ;;  %v10047_v36 = vld [vmem:[%s12059_s3 + $0x3c0] sm:$0xff]   ;;  %v2682_v39 = vcombine.low %v2662_v32, %v2664_v29  ;;  %v10064_v32 = vld [vmem:[%s12061_s5 + $0x8] sm:$0xff]  }
 0x287   :  { %9111 = vmatpush3.bf16.msra.mxu1 %v10024_v35  ;;  %v2532_v35 = vcombine.low %v2518_v30, %v2520_v28  ;;  %v10063_v30 = vld [vmem:[%s12061_s5] sm:$0xff]  }
 0x288   :  { %9112 = vmatprep.subr.bf16.mxu1 %v10025_v38 }
 0x28b   :  { %9113 = vmatpush3.bf16.msra.mxu1 %v10025_v38  ;;  %v2681_v38 = vcombine.low %v2658_v37, %v2660_v31  ;;  %v2863_v37 = vld [vmem:[#allocation4 + $0x18] ss:$2 sm:$0x3] }
 0x28c   :  { %9114 = vmatprep.subr.bf16.mxu1 %v10026_v40 }
 0x28f   :  { %9115 = vmatpush3.bf16.msra.mxu1 %v10026_v40  ;;  %v2538_v40 = vpack.c.bf16 %v2532_v35, %v2531_v34  ;;  %v10066_v34 = vld [vmem:[%s12061_s5 + $0x18] sm:$0xff]   ;;  %v10067_v35 = vld [vmem:[%s12061_s5 + $0x20] sm:$0xff]  }
 0x290   :  { %9116 = vmatprep.subr.bf16.mxu1 %v10027_v42 }
 0x293   :  { %9117 = vmatpush3.bf16.msra.mxu1 %v10027_v42  ;;  %v2689_v42 = vpack.c.bf16 %v2682_v39, %v2681_v38 }
 0x294   :  { %9118 = vmatprep.subr.bf16.mxu1 %v10028_v43 }
 0x297   :  { %9119 = vmatpush3.bf16.msra.mxu1 %v10028_v43  ;;  %v10049_v43 = vld [vmem:[%s12059_s3 + $0x3d0] sm:$0xff]  }
 0x298   :  { %9120 = vmatprep.subr.bf16.mxu1 %v10029_v44 }
 0x29b   :  { %9121 = vmatpush3.bf16.msra.mxu1 %v10029_v44  ;;  %v10050_v44 = vld [vmem:[%s12059_s3 + $0x3d8] sm:$0xff]  }
 0x29c   :  { %9122 = vmatprep.subr.bf16.mxu1 %v10030_v45 }
 0x29f   :  { %9123 = vmatpush3.bf16.msra.mxu1 %v10030_v45  ;;  %v10051_v45 = vld [vmem:[%s12059_s3 + $0x3e0] sm:$0xff]  }
 0x2a0   :  { %9128 = vmatprep.subr.bf16.mxu1 %v10031_v25 }
 0x2a2   :  { %9125 = vmatmul.mubr.bf16.vlgmr.msra.gmra.mrb[0].mxu1 %v2234_v59  ;;  %v10062_v59 = vld [vmem:[%s12061_s5 + $0x78] sm:$0xff]  }
 0x2a3   :  { %9129 = vmatpush3.bf16.msra.mxu1 %v10031_v25  ;;  %9144 = vmatprep.mubr.bf16.mxu1 %v2385_v60  ;;  %v2683_v25 = vcombine.low %v2666_v52, %v2668_v50  ;;  %v7613_v60 = vld [vmem:[%s12062_s4] ss:$0 sm:$0xff]  ;;  %v10072_v50 = vld [vmem:[%s12061_s5 + $0x88] sm:$0xff]   ;;  %v10074_v52 = vld [vmem:[%s12061_s5 + $0x98] sm:$0xff]  }
 0x2a4   :  { %9130 = vmatprep.subr.bf16.mxu1 %v10032_v58 }
 0x2a5   :  { %v2690_v54 = vpack.c.bf16 %v2684_v53, %v2683_v25  ;;  %v10949_v25 = vld [vmem:[#allocation2] sm:$0xff] }
 0x2a6   :  { %v10075_v53 = vld [vmem:[%s12061_s5 + $0xa0] sm:$0xff]  }
 0x2a7   :  { %9131 = vmatpush3.bf16.msra.mxu1 %v10032_v58  ;;  %v10061_v58 = vld [vmem:[%s12061_s5 + $0x70] sm:$0xff]  }
 0x2a8   :  { %9132 = vmatprep.subr.bf16.mxu1 %v10033_v61  ;;  %9201 = vmatpush3.bf16.msra.mxu0 %v10061_v58 }
 0x2a9   :  { %9202 = vmatprep.subr.bf16.mxu0 %v10773_v41 }
 0x2ab   :  { %9133 = vmatpush3.bf16.msra.mxu1 %v10033_v61 }
 0x2ac   :  { %9134 = vmatprep.subr.bf16.mxu1 %v10034_v62  ;;  %9203 = vmatpush3.bf16.msra.mxu0 %v10062_v59 }
 0x2ad   :  { %9208 = vmatprep.subr.bf16.mxu0 %v10773_v41 }
 0x2af   :  { %9135 = vmatpush3.bf16.msra.mxu1 %v10034_v62 }
 0x2b0   :  { %9136 = vmatprep.subr.bf16.mxu1 %v10035_v63 }
 0x2b3   :  { %9137 = vmatpush3.bf16.msra.mxu1 %v10035_v63 }
 0x2b4   :  { %9138 = vmatprep.subr.bf16.mxu1 %v10036_v0 }
 0x2b7   :  { %9139 = vmatpush3.bf16.msra.mxu1 %v10036_v0 }
 0x2b8   :  { %9140 = vmatprep.subr.bf16.mxu1 %v10037_v1 }
 0x2bb   :  { %9141 = vmatpush3.bf16.msra.mxu1 %v10037_v1 }
 0x2bc   :  { %9142 = vmatprep.subr.bf16.mxu1 %v10038_v2 }
 0x2bf   :  { %9143 = vmatpush3.bf16.msra.mxu1 %v10038_v2 }
 0x2c0   :  { %9148 = vmatprep.subr.bf16.mxu1 %v10039_v10 }
 0x2c2   :  { %9145 = vmatmul.mubr.bf16.vlgmr.msra.gmra.mrb[0].mxu1 %v2386_v17  ;;  %v2876_v17 = vshrl.u32 %v2875_v5, 7  ;;  %v10082_v5 = vld [vmem:[%s12061_s5 + $0xd8] sm:$0xff]  }
 0x2c3   :  { %9149 = vmatpush3.bf16.msra.mxu1 %v10039_v10  ;;  %9164 = vmatprep.mubr.bf16.mxu1 %v2537_v18  ;;  %v2910_v18 = vld [vmem:[#allocation4 + $0x19] ss:$2 sm:$0x3] }
 0x2c4   :  { %9150 = vmatprep.subr.bf16.mxu1 %v10040_v16 }
 0x2c7   :  { %9151 = vmatpush3.bf16.msra.mxu1 %v10040_v16  ;;  %v2874_v16 = vunpack.c.0.s8 %v2873_v9 }
 0x2c8   :  { %9152 = vmatprep.subr.bf16.mxu1 %v10041_v19 }
 0x2cb   :  { %9153 = vmatpush3.bf16.msra.mxu1 %v10041_v19  ;;  %v10893_v19 = vsub.s32 %v2874_v16, %v2876_v17  ;;  %v10086_v17 = vld [vmem:[%s12061_s5 + $0xf8] sm:$0xff]  }
 0x2cc   :  { %9154 = vmatprep.subr.bf16.mxu1 %v10042_v20 }
 0x2cf   :  { %9155 = vmatpush3.bf16.msra.mxu1 %v10042_v20  ;;  %v2906_v20 = vld [vmem:[#allocation4 + $0x1] ss:$2 sm:$0x3] }
 0x2d0   :  { %9156 = vmatprep.subr.bf16.mxu1 %v10043_v21 }
 0x2d3   :  { %9157 = vmatpush3.bf16.msra.mxu1 %v10043_v21 }
 0x2d4   :  { %9158 = vmatprep.subr.bf16.mxu1 %v10044_v22 }
 0x2d7   :  { %9159 = vmatpush3.bf16.msra.mxu1 %v10044_v22 }
 0x2d8   :  { %9160 = vmatprep.subr.bf16.mxu1 %v10045_v23 }
 0x2db   :  { %9161 = vmatpush3.bf16.msra.mxu1 %v10045_v23 }
 0x2dc   :  { %9162 = vmatprep.subr.bf16.mxu1 %v10046_v24 }
 0x2df   :  { %9163 = vmatpush3.bf16.msra.mxu1 %v10046_v24 }
 0x2e0   :  { %9168 = vmatprep.subr.bf16.mxu1 %v10047_v36 }
 0x2e2   :  { %9165 = vmatmul.mubr.bf16.vlgmr.msra.gmra.mrb[0].mxu1 %v2538_v40  ;;  %v10068_v40 = vld [vmem:[%s12061_s5 + $0x28] sm:$0xff]  }
 0x2e3   :  { %9169 = vmatpush3.bf16.msra.mxu1 %v10047_v36  ;;  %9184 = vmatprep.mubr.bf16.mxu1 %v2689_v42  ;;  %v2859_v36 = vld [vmem:[#allocation4] ss:$2 sm:$0x3] }
 0x2e4   :  { %9170 = vmatprep.subr.bf16.mxu1 %v10048_v26 }
 0x2e7   :  { %9171 = vmatpush3.bf16.msra.mxu1 %v10048_v26 }
 0x2e8   :  { %9172 = vmatprep.subr.bf16.mxu1 %v10049_v43 }
 0x2eb   :  { %9173 = vmatpush3.bf16.msra.mxu1 %v10049_v43  ;;  %v10069_v43 = vld [vmem:[%s12061_s5 + $0x30] sm:$0xff]  }
 0x2ec   :  { %9174 = vmatprep.subr.bf16.mxu1 %v10050_v44 }
 0x2ef   :  { %9175 = vmatpush3.bf16.msra.mxu1 %v10050_v44 }
 0x2f0   :  { %9176 = vmatprep.subr.bf16.mxu1 %v10051_v45 }
 0x2f3   :  { %9177 = vmatpush3.bf16.msra.mxu1 %v10051_v45 }
 0x2f4   :  { %9178 = vmatprep.subr.bf16.mxu1 %v10052_v46 }
 0x2f7   :  { %9179 = vmatpush3.bf16.msra.mxu1 %v10052_v46  ;;  %v10070_v46 = vld [vmem:[%s12061_s5 + $0x38] sm:$0xff]  }
 0x2f8   :  { %9180 = vmatprep.subr.bf16.mxu1 %v10053_v47 }
 0x2fb   :  { %9181 = vmatpush3.bf16.msra.mxu1 %v10053_v47 }
 0x2fc   :  { %9182 = vmatprep.subr.bf16.mxu1 %v10054_v48 }
 0x2ff   :  { %9183 = vmatpush3.bf16.msra.mxu1 %v10054_v48  ;;  %v10071_v48 = vld [vmem:[%s12061_s5 + $0x80] sm:$0xff]  }
 0x300   :  { %9508 = vmatprep.subr.bf16.mxu1 %v10773_v41 }
 0x302   :  { %9185 = vmatmul.mubr.bf16.vlgmr.msra.gmra.mrb[0].mxu1 %v2690_v54  ;;  %v3130_v54 = vld [vmem:[#allocation4 + $0x2] ss:$2 sm:$0x3] }
 0x303   :  { %9524 = vmatprep.mubr.msk.bf16.mxu1 %vm10332_vm0, %v10773_v41 }
 0x3d5   :  { %v9186_v61 = vpop.f32.mrb[0].mxu1 }
 0x3d6   :  { %v2818_v62 = vadd.f32 %v9186_v61, %v7613_v60  ;;  %v2790_v63 = vpop.f32.mrb[1].mxu1 }
 0x3d7   :  { %v2816_v0 = vadd.f32 %v7613_v60, %v2790_v63  ;;  %v9187_v1 = vpop.f32.mrb[2].mxu1  ;;  %v10078_v63 = vld [vmem:[%s12061_s5 + $0xb8] sm:$0xff]  }
 0x3d8   :  { %vm2822_vm1 = vcmp.gt.f32.partialorder %v2818_v62, 0.0  ;;  %v2826_v2 = vmul.f32 0.2, %v2818_v62  ;;  %v2819_v3 = vadd.f32 %v9187_v1, %v7613_v60  ;;  %v2793_v4 = vpop.f32.mrb[3].mxu1  ;;  %v10079_v1 = vld [vmem:[%s12061_s5 + $0xc0] sm:$0xff]  }
 0x3d9   :  { %vm2820_vm2 = vcmp.gt.f32.partialorder %v2816_v0, 0.0  ;;  %v2824_v6 = vmul.f32 0.2, %v2816_v0  ;;  %v2817_v7 = vadd.f32 %v7613_v60, %v2793_v4  ;;  %v10077_v60 = vld [vmem:[%s12061_s5 + $0xb0] sm:$0xff]  }
 0x3da   :  { %v2830_v10 = vsel %vm2822_vm1, %v2818_v62, %v2826_v2  ;;  %vm2823_vm3 = vcmp.gt.f32.partialorder %v2819_v3, 0.0  ;;  %v2827_v11 = vmul.f32 0.2, %v2819_v3  ;;  %v10081_v4 = vld [vmem:[%s12061_s5 + $0xd0] sm:$0xff]  }
 0x3db   :  { %2852 = vst [vmem:[#allocation5 + $0x19] sm:$0xf] %v2830_v10  ;;  %2854 = vst [vmem:[#allocation4 + $0x1d] sm:$0xf0] %v2830_v10  ;;  %v2828_v12 = vsel %vm2820_vm2, %v2816_v0, %v2824_v6  ;;  %vm2821_vm4 = vcmp.gt.f32.partialorder %v2817_v7, 0.0  ;;  %v10083_v6 = vld [vmem:[%s12061_s5 + $0xe0] sm:$0xff]  }
 0x3dc   :  { %v2825_v13 = vmul.f32 0.2, %v2817_v7  ;;  %2844 = vst [vmem:[#allocation5 + $0x1] sm:$0xf] %v2828_v12  ;;  %2846 = vst [vmem:[#allocation4 + $0x5] sm:$0xf0] %v2828_v12  ;;  %v2831_v14 = vsel %vm2823_vm3, %v2819_v3, %v2827_v11 }
 0x3dd   :  { %2856 = vst [vmem:[#allocation5 + $0x21] sm:$0xf] %v2831_v14  ;;  %2858 = vst [vmem:[#allocation4 + $0x25] sm:$0xf0] %v2831_v14  ;;  %v10080_v3 = vld [vmem:[%s12061_s5 + $0xc8] sm:$0xff]   ;;  %v10085_v14 = vld [vmem:[%s12061_s5 + $0xf0] sm:$0xff]  }
 0x3de   :  { %v2829_v15 = vsel %vm2821_vm4, %v2817_v7, %v2825_v13  ;;  %v3267_v7 = vld [vmem:[#allocation4 + $0x3] ss:$2 sm:$0x3]  ;;  %v10084_v11 = vld [vmem:[%s12061_s5 + $0xe8] sm:$0xff]  }
 0x3df   :  { %2848 = vst [vmem:[#allocation5 + $0x9] sm:$0xf] %v2829_v15  ;;  %2850 = vst [vmem:[#allocation4 + $0xd] sm:$0xf0] %v2829_v15 }
 0x3e2   :  { %v2912_v21 = vld [vmem:[#allocation4 + $0x21] ss:$2 sm:$0x3]  ;;  %v2865_v39 = vld [vmem:[#allocation4 + $0x20] ss:$2 sm:$0x3] }
 0x3e3   :  { %v2908_v22 = vld [vmem:[#allocation4 + $0x9] ss:$2 sm:$0x3]  ;;  %v2918_v23 = vcombine.low %v2910_v18, %v2912_v21  ;;  %v2861_v38 = vld [vmem:[#allocation4 + $0x8] ss:$2 sm:$0x3]  ;;  %v2871_v42 = vcombine.low %v2863_v37, %v2865_v39 }
 0x3e4   :  { %v2917_v24 = vcombine.low %v2906_v20, %v2908_v22  ;;  %v2870_v26 = vcombine.low %v2859_v36, %v2861_v38  ;;  %v3132_v56 = vld [vmem:[#allocation4 + $0xa] ss:$2 sm:$0x3]  ;;  %v3269_v9 = vld [vmem:[#allocation4 + $0xb] ss:$2 sm:$0x3] }
 0x3e5   :  { %v2932_v27 = vrot.slane %v2918_v23, %v10893_v19  ;;  %v2885_v45 = vrot.slane %v2871_v42, %v10893_v19  ;;  %v3141_v58 = vcombine.low %v3130_v54, %v3132_v56  ;;  %v3273_v10 = vld [vmem:[#allocation4 + $0x23] ss:$2 sm:$0x3]  ;;  %v3278_v12 = vcombine.low %v3267_v7, %v3269_v9  ;;  %v10088_v22 = vld [vmem:[%s12061_s5 + $0x108] sm:$0xff]   ;;  %v10089_v23 = vld [vmem:[%s12061_s5 + $0x110] sm:$0xff]  }
 0x3e6   :  { %v2925_v28 = vrot.slane %v2917_v24, %v10893_v19  ;;  %v2878_v44 = vrot.slane %v2870_v26, %v10893_v19  ;;  %v3279_v13 = vcombine.low %v3271_v8, %v3273_v10  ;;  %v10087_v20 = vld [vmem:[%s12061_s5 + $0x100] sm:$0xff]   ;;  %v10090_v24 = vld [vmem:[%s12061_s5 + $0x118] sm:$0xff]   ;;  %v10096_v42 = vld [vmem:[%s12061_s5 + $0x148] sm:$0xff]  }
 0x3e7   :  { %v3149_v61 = vrot.slane %v3141_v58, %v10893_v19  ;;  %v3286_v15 = vrot.slane %v3278_v12, %v10893_v19  ;;  %v10094_v38 = vld [vmem:[%s12061_s5 + $0x138] sm:$0xff]  }
 0x3e8   :  { %v2933_v29 = vcombine.low %v2925_v28, %v2932_v27  ;;  %v2886_v47 = vcombine.low %v2878_v44, %v2885_v45  ;;  %v3293_v16 = vrot.slane %v3279_v13, %v10893_v19  ;;  %v10091_v27 = vld [vmem:[%s12061_s5 + $0x120] sm:$0xff]   ;;  %v3405_v28 = vld [vmem:[#allocation5 + $0x8] ss:$2 sm:$0x3]  ;;  %v10112_v13 = vld [vmem:[%s12061_s5 + $0x1c8] sm:$0xff]  }
 0x3e9   :  { %v10098_v44 = vld [vmem:[%s12061_s5 + $0x158] sm:$0xff]   ;;  %v10099_v45 = vld [vmem:[%s12061_s5 + $0x160] sm:$0xff]  }
 0x3ea   :  { %v2935_v31 = vpack.c.bf16 %v2933_v29, %v2933_v29  ;;  %v2888_v49 = vpack.c.bf16 %v2886_v47, %v2886_v47  ;;  %v3294_v18 = vcombine.low %v3286_v15, %v3293_v16  ;;  %v3409_v29 = vld [vmem:[#allocation5 + $0x20] ss:$2 sm:$0x3]  ;;  %v3546_v47 = vld [vmem:[#allocation5 + $0x21] ss:$2 sm:$0x3] }
 0x3eb   :  { %v10102_v56 = vld [vmem:[%s12061_s5 + $0x178] sm:$0xff]   ;;  %v10115_v16 = vld [vmem:[%s12061_s5 + $0x1e0] sm:$0xff]  }
 0x3ec   :  { %9205 = vmatmul.mubr.bf16.vlgmr.msra.gmra.mrb[16].mxu0 %v2935_v31  ;;  %v3296_v21 = vpack.c.bf16 %v3294_v18, %v3294_v18  ;;  %v3403_v31 = vld [vmem:[#allocation5] ss:$2 sm:$0x3]  ;;  %v10110_v9 = vld [vmem:[%s12061_s5 + $0x1b8] sm:$0xff]  }
 0x3ed   :  { %9209 = vmatpush3.bf16.msra.mxu0 %v10063_v30  ;;  %9224 = vmatprep.mubr.msk.bf16.mxu0 %vm10332_vm0, %v10773_v41  ;;  %v10092_v30 = vld [vmem:[%s12061_s5 + $0x128] sm:$0xff]   ;;  %v10114_v15 = vld [vmem:[%s12061_s5 + $0x1d8] sm:$0xff]   ;;  %v3820_v18 = vld [vmem:[#allocation5 + $0x23] ss:$2 sm:$0x3] }
 0x3ee   :  { %9210 = vmatprep.subr.bf16.mxu0 %v10773_v41 }
 0x3f1   :  { %9211 = vmatpush3.bf16.msra.mxu0 %v10064_v32  ;;  %v3407_v32 = vld [vmem:[#allocation5 + $0x18] ss:$2 sm:$0x3] }
 0x3f2   :  { %9212 = vmatprep.subr.bf16.mxu0 %v10773_v41 }
 0x3f5   :  { %9213 = vmatpush3.bf16.msra.mxu0 %v10065_v33  ;;  %v3414_v33 = vcombine.low %v3403_v31, %v3405_v28 }
 0x3f6   :  { %9214 = vmatprep.subr.bf16.mxu0 %v10773_v41 }
 0x3f7   :  { %v3422_v36 = vrot.slane %v3414_v33, %v10893_v19 }
 0x3f9   :  { %9215 = vmatpush3.bf16.msra.mxu0 %v10066_v34  ;;  %v3415_v34 = vcombine.low %v3407_v32, %v3409_v29 }
 0x3fa   :  { %9216 = vmatprep.subr.bf16.mxu0 %v10773_v41 }
 0x3fb   :  { %v3429_v37 = vrot.slane %v3415_v34, %v10893_v19  ;;  %v10118_v34 = vld [vmem:[%s12061_s5 + $0x1f8] sm:$0xff]  }
 0x3fd   :  { %9217 = vmatpush3.bf16.msra.mxu0 %v10067_v35  ;;  %v10093_v35 = vld [vmem:[%s12061_s5 + $0x130] sm:$0xff]   ;;  %v3430_v39 = vcombine.low %v3422_v36, %v3429_v37  ;;  %v10119_v36 = vld [vmem:[%s12061_s5 + $0x200] sm:$0xff]  }
 0x3fe   :  { %9218 = vmatprep.subr.bf16.mxu0 %v10773_v41 }
 0x3ff   :  { %v3432_v26 = vpack.c.bf16 %v3430_v39, %v3430_v39  ;;  %v10121_v39 = vld [vmem:[%s12061_s5 + $0x210] sm:$0xff]  }
 0x401   :  { %9219 = vmatpush3.bf16.msra.mxu0 %v10068_v40  ;;  %v10095_v40 = vld [vmem:[%s12061_s5 + $0x140] sm:$0xff]  }
 0x402   :  { %9220 = vmatprep.subr.bf16.mxu0 %v10773_v41 }
 0x405   :  { %9221 = vmatpush3.bf16.msra.mxu0 %v10069_v43  ;;  %v10097_v43 = vld [vmem:[%s12061_s5 + $0x150] sm:$0xff]  }
 0x406   :  { %9222 = vmatprep.subr.bf16.mxu0 %v10773_v41 }
 0x409   :  { %9223 = vmatpush3.bf16.msra.mxu0 %v10070_v46  ;;  %v3542_v46 = vld [vmem:[#allocation5 + $0x9] ss:$2 sm:$0x3] }
 0x40a   :  { %9228 = vmatprep.subr.bf16.mxu0 %v10773_v41 }
 0x40c   :  { %9225 = vmatmul.mubr.bf16.vlgmr.msra.gmra.mrb[20].mxu0 %v2888_v49  ;;  %v10100_v49 = vld [vmem:[%s12061_s5 + $0x168] sm:$0xff]  }
 0x40d   :  { %9229 = vmatpush3.bf16.msra.mxu0 %v10071_v48  ;;  %9244 = vmatprep.mubr.msk.bf16.mxu0 %vm10332_vm0, %v10773_v41  ;;  %v3540_v48 = vld [vmem:[#allocation5 + $0x1] ss:$2 sm:$0x3] }
 0x40e   :  { %9230 = vmatprep.subr.bf16.mxu0 %v10773_v41 }
 0x411   :  { %9231 = vmatpush3.bf16.msra.mxu0 %v10072_v50  ;;  %v3544_v50 = vld [vmem:[#allocation5 + $0x19] ss:$2 sm:$0x3] }
 0x412   :  { %9232 = vmatprep.subr.bf16.mxu0 %v10773_v41  ;;  %v3136_v41 = vld [vmem:[#allocation4 + $0x22] ss:$2 sm:$0x3] }
 0x413   :  { %v3142_v59 = vcombine.low %v3134_v55, %v3136_v41 }
 0x415   :  { %9233 = vmatpush3.bf16.msra.mxu0 %v10073_v51  ;;  %v3156_v62 = vrot.slane %v3142_v59, %v10893_v19  ;;  %v3551_v51 = vcombine.low %v3540_v48, %v3542_v46  ;;  %v10104_v59 = vld [vmem:[%s12061_s5 + $0x188] sm:$0xff]   ;;  %v3954_v46 = vld [vmem:[#allocation4 + $0x20] ss:$2 sm:$0x3] }
 0x416   :  { %9234 = vmatprep.subr.bf16.mxu0 %v10949_v25 }
 0x417   :  { %v3157_v0 = vcombine.low %v3149_v61, %v3156_v62  ;;  %v3559_v54 = vrot.slane %v3551_v51, %v10893_v19  ;;  %v10106_v61 = vld [vmem:[%s12061_s5 + $0x198] sm:$0xff]   ;;  %v10107_v62 = vld [vmem:[%s12061_s5 + $0x1a0] sm:$0xff]  }
 0x419   :  { %9235 = vmatpush3.bf16.msra.mxu0 %v10074_v52  ;;  %v3159_v2 = vpack.c.bf16 %v3157_v0, %v3157_v0  ;;  %v3552_v52 = vcombine.low %v3544_v50, %v3546_v47  ;;  %v3683_v0 = vld [vmem:[#allocation5 + $0x22] ss:$2 sm:$0x3] }
 0x41a   :  { %9236 = vmatprep.subr.bf16.mxu0 %v10949_v25 }
 0x41b   :  { %v3566_v55 = vrot.slane %v3552_v52, %v10893_v19 }
 0x41d   :  { %9237 = vmatpush3.bf16.msra.mxu0 %v10075_v53  ;;  %v10101_v53 = vld [vmem:[%s12061_s5 + $0x170] sm:$0xff]   ;;  %v3567_v41 = vcombine.low %v3559_v54, %v3566_v55 }
 0x41e   :  { %9238 = vmatprep.subr.bf16.mxu0 %v10949_v25 }
 0x41f   :  { %v3569_v58 = vpack.c.bf16 %v3567_v41, %v3567_v41  ;;  %v10126_v41 = vld [vmem:[%s12061_s5 + $0x238] sm:$0xff]  }
 0x421   :  { %9239 = vmatpush3.bf16.msra.mxu0 %v10076_v57  ;;  %v10103_v57 = vld [vmem:[%s12061_s5 + $0x180] sm:$0xff]  }
 0x422   :  { %9240 = vmatprep.subr.bf16.mxu0 %v10949_v25 }
 0x425   :  { %9241 = vmatpush3.bf16.msra.mxu0 %v10077_v60  ;;  %v10105_v60 = vld [vmem:[%s12061_s5 + $0x190] sm:$0xff]  }
 0x426   :  { %9242 = vmatprep.subr.bf16.mxu0 %v10949_v25 }
 0x429   :  { %9243 = vmatpush3.bf16.msra.mxu0 %v10078_v63  ;;  %v3679_v63 = vld [vmem:[#allocation5 + $0xa] ss:$2 sm:$0x3] }
 0x42a   :  { %9248 = vmatprep.subr.bf16.mxu0 %v10949_v25 }
 0x42c   :  { %9245 = vmatmul.mubr.bf16.vlgmr.msra.gmra.mrb[24].mxu0 %v3159_v2  ;;  %v10108_v2 = vld [vmem:[%s12061_s5 + $0x1a8] sm:$0xff]  }
 0x42d   :  { %9249 = vmatpush3.bf16.msra.mxu0 %v10079_v1  ;;  %9264 = vmatprep.mubr.msk.bf16.mxu0 %vm10332_vm0, %v10949_v25  ;;  %v3677_v1 = vld [vmem:[#allocation5 + $0x2] ss:$2 sm:$0x3] }
 0x42e   :  { %9250 = vmatprep.subr.bf16.mxu0 %v10949_v25 }
 0x431   :  { %9251 = vmatpush3.bf16.msra.mxu0 %v10080_v3  ;;  %v3681_v3 = vld [vmem:[#allocation5 + $0x1a] ss:$2 sm:$0x3] }
 0x432   :  { %9252 = vmatprep.subr.bf16.mxu0 %v10949_v25 }
 0x435   :  { %9253 = vmatpush3.bf16.msra.mxu0 %v10081_v4  ;;  %v3688_v4 = vcombine.low %v3677_v1, %v3679_v63  ;;  %v10131_v63 = vld [vmem:[%s12061_s5 + $0x260] sm:$0xff]   ;;  %v4093_v1 = vld [vmem:[#allocation4 + $0x29] ss:$2 sm:$0x3] }
 0x436   :  { %9254 = vmatprep.subr.bf16.mxu0 %v10949_v25 }
 0x437   :  { %v3696_v7 = vrot.slane %v3688_v4, %v10893_v19  ;;  %v4091_v4 = vld [vmem:[#allocation4 + $0x21] ss:$2 sm:$0x3] }
 0x439   :  { %9255 = vmatpush3.bf16.msra.mxu0 %v10082_v5  ;;  %v3689_v5 = vcombine.low %v3681_v3, %v3683_v0  ;;  %v4089_v0 = vld [vmem:[#allocation4 + $0x11] ss:$2 sm:$0x3]  ;;  %v10132_v3 = vld [vmem:[%s12061_s5 + $0x268] sm:$0xff]  }
 0x43a   :  { %9256 = vmatprep.subr.bf16.mxu0 %v10949_v25 }
 0x43b   :  { %v3703_v8 = vrot.slane %v3689_v5, %v10893_v19 }
 0x43d   :  { %9257 = vmatpush3.bf16.msra.mxu0 %v10083_v6  ;;  %v10109_v6 = vld [vmem:[%s12061_s5 + $0x1b0] sm:$0xff]   ;;  %v3704_v10 = vcombine.low %v3696_v7, %v3703_v8 }
 0x43e   :  { %9258 = vmatprep.subr.bf16.mxu0 %v10949_v25 }
 0x43f   :  { %v3706_v12 = vpack.c.bf16 %v3704_v10, %v3704_v10 }
 0x441   :  { %9259 = vmatpush3.bf16.msra.mxu0 %v10084_v11  ;;  %v10111_v11 = vld [vmem:[%s12061_s5 + $0x1c0] sm:$0xff]  }
 0x442   :  { %9260 = vmatprep.subr.bf16.mxu0 %v10949_v25 }
 0x445   :  { %9261 = vmatpush3.bf16.msra.mxu0 %v10085_v14  ;;  %v10113_v14 = vld [vmem:[%s12061_s5 + $0x1d0] sm:$0xff]  }
 0x446   :  { %9262 = vmatprep.subr.bf16.mxu0 %v10949_v25 }
 0x449   :  { %9263 = vmatpush3.bf16.msra.mxu0 %v10086_v17  ;;  %v3816_v17 = vld [vmem:[#allocation5 + $0xb] ss:$2 sm:$0x3] }
 0x44a   :  { %9268 = vmatprep.subr.bf16.mxu0 %v10949_v25 }
 0x44c   :  { %9265 = vmatmul.mubr.bf16.vlgmr.msra.gmra.mrb[28].mxu0 %v3296_v21  ;;  %v10116_v21 = vld [vmem:[%s12061_s5 + $0x1e8] sm:$0xff]  }
 0x44d   :  { %9269 = vmatpush3.bf16.msra.mxu0 %v10087_v20  ;;  %9284 = vmatprep.mubr.msk.bf16.mxu0 %vm10332_vm0, %v10949_v25  ;;  %v3814_v20 = vld [vmem:[#allocation5 + $0x3] ss:$2 sm:$0x3] }
 0x44e   :  { %9270 = vmatprep.subr.bf16.mxu0 %v10949_v25 }
 0x451   :  { %9271 = vmatpush3.bf16.msra.mxu0 %v10088_v22  ;;  %v3818_v22 = vld [vmem:[#allocation5 + $0x1b] ss:$2 sm:$0x3] }
 0x452   :  { %9272 = vmatprep.subr.bf16.mxu0 %v10949_v25 }
 0x455   :  { %9273 = vmatpush3.bf16.msra.mxu0 %v10089_v23  ;;  %v3825_v23 = vcombine.low %v3814_v20, %v3816_v17  ;;  %v10135_v17 = vld [vmem:[%s12061_s5 + $0x280] sm:$0xff]   ;;  %v10136_v20 = vld [vmem:[%s12061_s5 + $0x288] sm:$0xff]  }
 0x456   :  { %9274 = vmatprep.subr.bf16.mxu0 %v10949_v25 }
 0x457   :  { %v3833_v32 = vrot.slane %v3825_v23, %v10893_v19  ;;  %v10139_v23 = vld [vmem:[%s12061_s5 + $0x2a0] sm:$0xff]  }
 0x459   :  { %9275 = vmatpush3.bf16.msra.mxu0 %v10090_v24  ;;  %v3826_v24 = vcombine.low %v3818_v22, %v3820_v18  ;;  %v10138_v22 = vld [vmem:[%s12061_s5 + $0x298] sm:$0xff]  }
 0x45a   :  { %9276 = vmatprep.subr.bf16.mxu0 %v10949_v25 }
 0x45b   :  { %v3840_v33 = vrot.slane %v3826_v24, %v10893_v19  ;;  %v4226_v24 = vld [vmem:[#allocation4 + $0x12] ss:$2 sm:$0x3] }
 0x45d   :  { %9277 = vmatpush3.bf16.msra.mxu0 %v10091_v27 }
 0x45e   :  { %9278 = vmatprep.subr.bf16.mxu0 %v10949_v25 }
 0x461   :  { %9279 = vmatpush3.bf16.msra.mxu0 %v10092_v30  ;;  %v10117_v30 = vld [vmem:[%s12061_s5 + $0x1f0] sm:$0xff]  }
 0x462   :  { %9280 = vmatprep.subr.bf16.mxu0 %v10949_v25 }
 0x465   :  { %9281 = vmatpush3.bf16.msra.mxu0 %v10093_v35  ;;  %v3841_v35 = vcombine.low %v3833_v32, %v3840_v33 }
 0x466   :  { %9282 = vmatprep.subr.bf16.mxu0 %v10949_v25 }
 0x467   :  { %v3843_v37 = vpack.c.bf16 %v3841_v35, %v3841_v35 }
 0x469   :  { %9283 = vmatpush3.bf16.msra.mxu0 %v10094_v38  ;;  %v10120_v38 = vld [vmem:[%s12061_s5 + $0x208] sm:$0xff]  }
 0x46a   :  { %9288 = vmatprep.subr.bf16.mxu0 %v10949_v25 }
 0x46c   :  { %9285 = vmatmul.mubr.bf16.vlgmr.msra.gmra.mrb[32].mxu0 %v3432_v26  ;;  %v10123_v26 = vld [vmem:[%s12061_s5 + $0x220] sm:$0xff]  }
 0x46d   :  { %9289 = vmatpush3.bf16.msra.mxu0 %v10095_v40  ;;  %9304 = vmatprep.mubr.msk.bf16.mxu0 %vm10332_vm0, %v10949_v25  ;;  %v10122_v40 = vld [vmem:[%s12061_s5 + $0x218] sm:$0xff]  }
 0x46e   :  { %9290 = vmatprep.subr.bf16.mxu0 %v10949_v25 }
 0x471   :  { %9291 = vmatpush3.bf16.msra.mxu0 %v10096_v42  ;;  %v3952_v42 = vld [vmem:[#allocation4 + $0x10] ss:$2 sm:$0x3] }
 0x472   :  { %9292 = vmatprep.subr.bf16.mxu0 %v10949_v25 }
 0x475   :  { %9293 = vmatpush3.bf16.msra.mxu0 %v10097_v43  ;;  %v3956_v43 = vld [vmem:[#allocation4 + $0x28] ss:$2 sm:$0x3] }
 0x476   :  { %9294 = vmatprep.subr.bf16.mxu0 %v10949_v25  ;;  %v3962_v48 = vcombine.low %v3954_v46, %v3956_v43  ;;  %v10143_v43 = vld [vmem:[%s12061_s5 + $0x2c0] sm:$0xff]   ;;  %v10145_v46 = vld [vmem:[%s12061_s5 + $0x2d0] sm:$0xff]  }
 0x479   :  { %9295 = vmatpush3.bf16.msra.mxu0 %v10098_v44  ;;  %v3950_v44 = vld [vmem:[#allocation4 + $0x8] ss:$2 sm:$0x3] }
 0x47a   :  { %9296 = vmatprep.subr.bf16.mxu0 %v10949_v25  ;;  %v3961_v47 = vcombine.low %v3950_v44, %v3952_v42 }
 0x47c   :  { %v3969_v55 = vrot.slane %v3961_v47, %v10893_v19  ;;  %v10146_v47 = vld [vmem:[%s12061_s5 + $0x2d8] sm:$0xff]  }
 0x47d   :  { %9297 = vmatpush3.bf16.msra.mxu0 %v10099_v45  ;;  %v10124_v45 = vld [vmem:[%s12061_s5 + $0x228] sm:$0xff]  }
 0x47e   :  { %9298 = vmatprep.subr.bf16.mxu0 %v10949_v25 }
 0x481   :  { %9299 = vmatpush3.bf16.msra.mxu0 %v10100_v49 }
 0x482   :  { %9300 = vmatprep.subr.bf16.mxu0 %v10949_v25 }
 0x485   :  { %9301 = vmatpush3.bf16.msra.mxu0 %v10101_v53  ;;  %v10125_v53 = vld [vmem:[%s12061_s5 + $0x230] sm:$0xff]  }
 0x486   :  { %9302 = vmatprep.subr.bf16.mxu0 %v10949_v25 }
 0x489   :  { %9303 = vmatpush3.bf16.msra.mxu0 %v10102_v56  ;;  %v3976_v56 = vrot.slane %v3962_v48, %v10893_v19  ;;  %v10147_v48 = vld [vmem:[%s12061_s5 + $0x2e0] sm:$0xff]  }
 0x48a   :  { %9308 = vmatprep.subr.bf16.mxu0 %v10949_v25 }
 0x48c   :  { %9305 = vmatmul.mubr.bf16.vlgmr.msra.gmra.mrb[36].mxu0 %v3569_v58  ;;  %v10127_v58 = vld [vmem:[%s12061_s5 + $0x240] sm:$0xff]  }
 0x48d   :  { %9309 = vmatpush3.bf16.msra.mxu0 %v10103_v57  ;;  %9324 = vmatprep.mubr.msk.bf16.mxu0 %vm10332_vm0, %v10949_v25  ;;  %v3977_v57 = vcombine.low %v3969_v55, %v3976_v56 }
 0x48e   :  { %9310 = vmatprep.subr.bf16.mxu0 %v10949_v25 }
 0x491   :  { %9311 = vmatpush3.bf16.msra.mxu0 %v10104_v59  ;;  %v3979_v59 = vpack.c.bf16 %v3977_v57, %v3977_v57 }
 0x492   :  { %9312 = vmatprep.subr.bf16.mxu0 %v10949_v25 }
 0x495   :  { %9313 = vmatpush3.bf16.msra.mxu0 %v10105_v60  ;;  %v10128_v60 = vld [vmem:[%s12061_s5 + $0x248] sm:$0xff]  }
 0x496   :  { %9314 = vmatprep.subr.bf16.mxu0 %v10949_v25 }
 0x499   :  { %9315 = vmatpush3.bf16.msra.mxu0 %v10106_v61  ;;  %v10129_v61 = vld [vmem:[%s12061_s5 + $0x250] sm:$0xff]  }
 0x49a   :  { %9316 = vmatprep.subr.bf16.mxu0 %v10949_v25 }
 0x49d   :  { %9317 = vmatpush3.bf16.msra.mxu0 %v10107_v62  ;;  %v10130_v62 = vld [vmem:[%s12061_s5 + $0x258] sm:$0xff]  }
 0x49e   :  { %9318 = vmatprep.subr.bf16.mxu0 %v10949_v25 }
 0x4a1   :  { %9319 = vmatpush3.bf16.msra.mxu0 %v10108_v2  ;;  %v4087_v2 = vld [vmem:[#allocation4 + $0x9] ss:$2 sm:$0x3] }
 0x4a2   :  { %9320 = vmatprep.subr.bf16.mxu0 %v10949_v25  ;;  %v4098_v5 = vcombine.low %v4087_v2, %v4089_v0 }
 0x4a5   :  { %9321 = vmatpush3.bf16.msra.mxu0 %v10109_v6  ;;  %v4099_v6 = vcombine.low %v4091_v4, %v4093_v1  ;;  %v10151_v1 = vld [vmem:[%s12061_s5 + $0x300] sm:$0xff]   ;;  %v10153_v4 = vld [vmem:[%s12061_s5 + $0x310] sm:$0xff]  }
 0x4a6   :  { %9322 = vmatprep.subr.bf16.mxu0 %v10949_v25 }
 0x4a9   :  { %9323 = vmatpush3.bf16.msra.mxu0 %v10110_v9 }
 0x4aa   :  { %9328 = vmatprep.subr.bf16.mxu0 %v10949_v25 }
 0x4ac   :  { %9325 = vmatmul.mubr.bf16.vlgmr.msra.gmra.mrb[40].mxu0 %v3706_v12 }
 0x4ad   :  { %9329 = vmatpush3.bf16.msra.mxu0 %v10111_v11  ;;  %9344 = vmatprep.mubr.msk.bf16.mxu0 %vm10332_vm0, %v10949_v25  ;;  %v10133_v11 = vld [vmem:[%s12061_s5 + $0x270] sm:$0xff]  }
 0x4ae   :  { %9330 = vmatprep.subr.bf16.mxu0 %v10949_v25 }
 0x4b1   :  { %9331 = vmatpush3.bf16.msra.mxu0 %v10112_v13  ;;  %v4106_v13 = vrot.slane %v4098_v5, %v10893_v19  ;;  %v10154_v5 = vld [vmem:[%s12061_s5 + $0x318] sm:$0xff]  }
 0x4b2   :  { %9332 = vmatprep.subr.bf16.mxu0 %v10949_v25 }
 0x4b5   :  { %9333 = vmatpush3.bf16.msra.mxu0 %v10113_v14  ;;  %v4113_v14 = vrot.slane %v4099_v6, %v10893_v19  ;;  %v10155_v6 = vld [vmem:[%s12061_s5 + $0x320] sm:$0xff]  }
 0x4b6   :  { %9334 = vmatprep.subr.bf16.mxu0 %v10949_v25 }
 0x4b9   :  { %9335 = vmatpush3.bf16.msra.mxu0 %v10114_v15  ;;  %v10134_v15 = vld [vmem:[%s12061_s5 + $0x278] sm:$0xff]  }
 0x4ba   :  { %9336 = vmatprep.subr.bf16.mxu0 %v10949_v25 }
 0x4bd   :  { %9337 = vmatpush3.bf16.msra.mxu0 %v10115_v16  ;;  %v4114_v16 = vcombine.low %v4106_v13, %v4113_v14 }
 0x4be   :  { %9338 = vmatprep.subr.bf16.mxu0 %v10949_v25 }
 0x4bf   :  { %v3035_v27 = vpop.f32.mrb[16].mxu0  ;;  %v4116_v18 = vpack.c.bf16 %v4114_v16, %v4114_v16 }
 0x4c0   :  { %v9206_v28 = vpop.f32.mrb[17].mxu0 }
 0x4c1   :  { %9339 = vmatpush3.bf16.msra.mxu0 %v10116_v21  ;;  %v3038_v29 = vpop.f32.mrb[18].mxu0  ;;  %v10137_v21 = vld [vmem:[%s12061_s5 + $0x290] sm:$0xff]   ;;  %v4224_v28 = vld [vmem:[#allocation4 + $0xa] ss:$2 sm:$0x3] }
 0x4c2   :  { %v9207_v31 = vpop.f32.mrb[19].mxu0  ;;  %9340 = vmatprep.subr.bf16.mxu0 %v10949_v25  ;;  %v10140_v29 = vld [vmem:[%s12061_s5 + $0x2a8] sm:$0xff]  }
 0x4c3   :  { %v4235_v31 = vcombine.low %v4224_v28, %v4226_v24 }
 0x4c5   :  { %9341 = vmatpush3.bf16.msra.mxu0 %v10117_v30  ;;  %v4228_v30 = vld [vmem:[#allocation4 + $0x22] ss:$2 sm:$0x3] }
 0x4c6   :  { %9342 = vmatprep.subr.bf16.mxu0 %v10949_v25 }
 0x4c9   :  { %9343 = vmatpush3.bf16.msra.mxu0 %v10118_v34 }
 0x4ca   :  { %9348 = vmatprep.subr.bf16.mxu0 %v10949_v25 }
 0x4cc   :  { %9345 = vmatmul.mubr.bf16.vlgmr.msra.gmra.mrb[44].mxu0 %v3843_v37  ;;  %v10141_v37 = vld [vmem:[%s12061_s5 + $0x2b0] sm:$0xff]  }
 0x4cd   :  { %9349 = vmatpush3.bf16.msra.mxu0 %v10119_v36  ;;  %9364 = vmatprep.mubr.msk.bf16.mxu0 %vm10332_vm0, %v10949_v25 }
 0x4ce   :  { %9350 = vmatprep.subr.bf16.mxu0 %v10949_v25 }
 0x4d1   :  { %9351 = vmatpush3.bf16.msra.mxu0 %v10120_v38 }
 0x4d2   :  { %9352 = vmatprep.subr.bf16.mxu0 %v10949_v25 }
 0x4d5   :  { %9353 = vmatpush3.bf16.msra.mxu0 %v10121_v39  ;;  %v4243_v39 = vrot.slane %v4235_v31, %v10893_v19  ;;  %v10162_v31 = vld [vmem:[%s12061_s5 + $0x358] sm:$0xff]  }
 0x4d6   :  { %9354 = vmatprep.subr.bf16.mxu0 %v10949_v25 }
 0x4d9   :  { %9355 = vmatpush3.bf16.msra.mxu0 %v10122_v40 }
 0x4da   :  { %9356 = vmatprep.subr.bf16.mxu0 %v10949_v25 }
 0x4dd   :  { %9357 = vmatpush3.bf16.msra.mxu0 %v10123_v26  ;;  %v10142_v26 = vld [vmem:[%s12061_s5 + $0x2b8] sm:$0xff]  }
 0x4de   :  { %9358 = vmatprep.subr.bf16.mxu0 %v10949_v25 }
 0x4df   :  { %v3123_v49 = vpop.f32.mrb[20].mxu0 }
 0x4e0   :  { %v3124_v50 = vadd.f32 %v3123_v49, %v3035_v27  ;;  %v9226_v51 = vpop.f32.mrb[21].mxu0  ;;  %v4230_v27 = vld [vmem:[#allocation4 + $0x2a] ss:$2 sm:$0x3] }
 0x4e1   :  { %v3126_v52 = vpop.f32.mrb[22].mxu0  ;;  %9359 = vmatpush3.bf16.msra.mxu0 %v10124_v45  ;;  %v4236_v32 = vcombine.low %v4228_v30, %v4230_v27  ;;  %v10144_v45 = vld [vmem:[%s12061_s5 + $0x2c8] sm:$0xff]   ;;  %v4363_v49 = vld [vmem:[#allocation4 + $0x13] ss:$2 sm:$0x3]  ;;  %v10159_v27 = vld [vmem:[%s12061_s5 + $0x340] sm:$0xff]  }
 0x4e2   :  { %v9227_v54 = vpop.f32.mrb[23].mxu0  ;;  %9360 = vmatprep.subr.bf16.mxu0 %v10949_v25  ;;  %v4361_v51 = vld [vmem:[#allocation4 + $0xb] ss:$2 sm:$0x3]  ;;  %v10161_v30 = vld [vmem:[%s12061_s5 + $0x350] sm:$0xff]  }
 0x4e3   :  { %v4250_v40 = vrot.slane %v4236_v32, %v10893_v19  ;;  %v10148_v52 = vld [vmem:[%s12061_s5 + $0x2e8] sm:$0xff]   ;;  %v4372_v54 = vcombine.low %v4361_v51, %v4363_v49  ;;  %v10163_v32 = vld [vmem:[%s12061_s5 + $0x360] sm:$0xff]  }
 0x4e4   :  { %v10183_v49 = vld [vmem:[%s12063_s7 + $0x40] sm:$0xff]  }
 0x4e5   :  { %9361 = vmatpush3.bf16.msra.mxu0 %v10125_v53  ;;  %v4251_v42 = vcombine.low %v4243_v39, %v4250_v40  ;;  %v4365_v53 = vld [vmem:[#allocation4 + $0x23] ss:$2 sm:$0x3]  ;;  %9509 = vmatpush3.bf16.msra.mxu1 %v10183_v49 }
 0x4e6   :  { %9362 = vmatprep.subr.bf16.mxu0 %v10949_v25  ;;  %9510 = vmatprep.subr.bf16.mxu1 %v10949_v25  ;;  %v10167_v51 = vld [vmem:[%s12061_s5 + $0x380] sm:$0xff]  }
 0x4e7   :  { %v4253_v44 = vpack.c.bf16 %v4251_v42, %v4251_v42 }
 0x4e9   :  { %9363 = vmatpush3.bf16.msra.mxu0 %v10126_v41 }
 0x4ea   :  { %9368 = vmatprep.subr.bf16.mxu0 %v10949_v25 }
 0x4ec   :  { %9365 = vmatmul.mubr.bf16.vlgmr.msra.gmra.mrb[48].mxu0 %v3979_v59  ;;  %v10149_v59 = vld [vmem:[%s12061_s5 + $0x2f0] sm:$0xff]  }
 0x4ed   :  { %9369 = vmatpush3.bf16.msra.mxu0 %v10127_v58  ;;  %9384 = vmatprep.mubr.msk.bf16.mxu0 %vm10332_vm0, %v10949_v25 }
 0x4ee   :  { %9370 = vmatprep.subr.bf16.mxu0 %v10949_v25 }
 0x4f1   :  { %9371 = vmatpush3.bf16.msra.mxu0 %v10128_v60 }
 0x4f2   :  { %9372 = vmatprep.subr.bf16.mxu0 %v10949_v25 }
 0x4f5   :  { %9373 = vmatpush3.bf16.msra.mxu0 %v10129_v61  ;;  %v4380_v61 = vrot.slane %v4372_v54, %v10893_v19  ;;  %v10169_v54 = vld [vmem:[%s12061_s5 + $0x390] sm:$0xff]  }
 0x4f6   :  { %9374 = vmatprep.subr.bf16.mxu0 %v10949_v25 }
 0x4f9   :  { %9375 = vmatpush3.bf16.msra.mxu0 %v10130_v62 }
 0x4fa   :  { %9376 = vmatprep.subr.bf16.mxu0 %v10949_v25 }
 0x4fd   :  { %9377 = vmatpush3.bf16.msra.mxu0 %v10131_v63  ;;  %v10150_v63 = vld [vmem:[%s12061_s5 + $0x2f8] sm:$0xff]  }
 0x4fe   :  { %9378 = vmatprep.subr.bf16.mxu0 %v10949_v25 }
 0x4ff   :  { %v3259_v7 = vpop.f32.mrb[24].mxu0 }
 0x500   :  { %v3265_v8 = vadd.f32 %v3259_v7, %v3124_v50  ;;  %v9246_v9 = vpop.f32.mrb[25].mxu0  ;;  %v4367_v50 = vld [vmem:[#allocation4 + $0x2b] ss:$2 sm:$0x3] }
 0x501   :  { %v3262_v10 = vpop.f32.mrb[26].mxu0  ;;  %9379 = vmatpush3.bf16.msra.mxu0 %v10132_v3  ;;  %v4373_v55 = vcombine.low %v4365_v53, %v4367_v50  ;;  %v10152_v3 = vld [vmem:[%s12061_s5 + $0x308] sm:$0xff]   ;;  %v4499_v7 = vld [vmem:[#allocation5 + $0x10] ss:$2 sm:$0x3] }
 0x502   :  { %v9247_v12 = vpop.f32.mrb[27].mxu0  ;;  %9380 = vmatprep.subr.bf16.mxu0 %v10949_v25  ;;  %v4497_v9 = vld [vmem:[#allocation5 + $0x8] ss:$2 sm:$0x3]  ;;  %v10168_v53 = vld [vmem:[%s12061_s5 + $0x388] sm:$0xff]  }
 0x503   :  { %v4387_v62 = vrot.slane %v4373_v55, %v10893_v19  ;;  %v4501_v10 = vld [vmem:[#allocation5 + $0x20] ss:$2 sm:$0x3]  ;;  %v4508_v12 = vcombine.low %v4497_v9, %v4499_v7  ;;  %v10170_v55 = vld [vmem:[%s12061_s5 + $0x398] sm:$0xff]  }
 0x504   :  { %v10174_v9 = vld [vmem:[%s12061_s5 + $0x3b8] sm:$0xff]  }
 0x505   :  { %9381 = vmatpush3.bf16.msra.mxu0 %v10133_v11  ;;  %v4388_v0 = vcombine.low %v4380_v61, %v4387_v62  ;;  %v10156_v11 = vld [vmem:[%s12061_s5 + $0x328] sm:$0xff]  }
 0x506   :  { %9382 = vmatprep.subr.bf16.mxu0 %v10949_v25 }
 0x507   :  { %v4390_v2 = vpack.c.bf16 %v4388_v0, %v4388_v0 }
 0x509   :  { %9383 = vmatpush3.bf16.msra.mxu0 %v10134_v15 }
 0x50a   :  { %9388 = vmatprep.subr.bf16.mxu0 %v10949_v25 }
 0x50c   :  { %9385 = vmatmul.mubr.bf16.vlgmr.msra.gmra.mrb[52].mxu0 %v4116_v18  ;;  %v10157_v18 = vld [vmem:[%s12061_s5 + $0x330] sm:$0xff]  }
 0x50d   :  { %9389 = vmatpush3.bf16.msra.mxu0 %v10135_v17  ;;  %9404 = vmatprep.mubr.msk.bf16.mxu0 %vm10332_vm0, %v10949_v25 }
 0x50e   :  { %9390 = vmatprep.subr.bf16.mxu0 %v10949_v25 }
 0x511   :  { %9391 = vmatpush3.bf16.msra.mxu0 %v10136_v20 }
 0x512   :  { %9392 = vmatprep.subr.bf16.mxu0 %v10949_v25 }
 0x515   :  { %9393 = vmatpush3.bf16.msra.mxu0 %v10137_v21  ;;  %v4516_v21 = vrot.slane %v4508_v12, %v10893_v19 }
 0x516   :  { %9394 = vmatprep.subr.bf16.mxu0 %v10949_v25 }
 0x519   :  { %9395 = vmatpush3.bf16.msra.mxu0 %v10138_v22 }
 0x51a   :  { %9396 = vmatprep.subr.bf16.mxu0 %v10949_v25 }
 0x51d   :  { %9397 = vmatpush3.bf16.msra.mxu0 %v10139_v23  ;;  %v10158_v23 = vld [vmem:[%s12061_s5 + $0x338] sm:$0xff]  }
 0x51e   :  { %9398 = vmatprep.subr.bf16.mxu0 %v10949_v25 }
 0x51f   :  { %v3396_v33 = vpop.f32.mrb[28].mxu0 }
 0x520   :  { %v3402_v34 = vadd.f32 %v3396_v33, %v3265_v8  ;;  %v9266_v35 = vpop.f32.mrb[29].mxu0  ;;  %v4503_v8 = vld [vmem:[#allocation5 + $0x28] ss:$2 sm:$0x3] }
 0x521   :  { %v3399_v36 = vpop.f32.mrb[30].mxu0  ;;  %9399 = vmatpush3.bf16.msra.mxu0 %v10140_v29  ;;  %v4509_v13 = vcombine.low %v4501_v10, %v4503_v8  ;;  %v10160_v29 = vld [vmem:[%s12061_s5 + $0x348] sm:$0xff]   ;;  %v4636_v33 = vld [vmem:[#allocation5 + $0x11] ss:$2 sm:$0x3]  ;;  %v10185_v8 = vld [vmem:[%s12063_s7 + $0x50] sm:$0xff]  }
 0x522   :  { %v9267_v38 = vpop.f32.mrb[31].mxu0  ;;  %9400 = vmatprep.subr.bf16.mxu0 %v10949_v25  ;;  %v4634_v35 = vld [vmem:[#allocation5 + $0x9] ss:$2 sm:$0x3] }
 0x523   :  { %v4523_v22 = vrot.slane %v4509_v13, %v10893_v19  ;;  %v4638_v36 = vld [vmem:[#allocation5 + $0x21] ss:$2 sm:$0x3]  ;;  %v4645_v38 = vcombine.low %v4634_v35, %v4636_v33  ;;  %v10186_v10 = vld [vmem:[%s12063_s7 + $0x58] sm:$0xff]  }
 0x524   :  { %v4908_v33 = vld [vmem:[#allocation5 + $0xb] ss:$2 sm:$0x3]  ;;  %v4912_v35 = vld [vmem:[#allocation5 + $0x23] ss:$2 sm:$0x3] }
 0x525   :  { %9401 = vmatpush3.bf16.msra.mxu0 %v10141_v37  ;;  %v4524_v24 = vcombine.low %v4516_v21, %v4523_v22  ;;  %v10164_v37 = vld [vmem:[%s12061_s5 + $0x368] sm:$0xff]  }
 0x526   :  { %9402 = vmatprep.subr.bf16.mxu0 %v10949_v25  ;;  %v10176_v21 = vld [vmem:[%s12061_s5 + $0x3c8] sm:$0xff]  }
 0x527   :  { %v4526_v28 = vpack.c.bf16 %v4524_v24, %v4524_v24  ;;  %v10188_v22 = vld [vmem:[%s12063_s7 + $0x68] sm:$0xff]  }
 0x529   :  { %9403 = vmatpush3.bf16.msra.mxu0 %v10142_v26 }
 0x52a   :  { %9408 = vmatprep.subr.bf16.mxu0 %v10949_v25 }
 0x52c   :  { %9405 = vmatmul.mubr.bf16.vlgmr.msra.gmra.mrb[56].mxu0 %v4253_v44  ;;  %v10165_v44 = vld [vmem:[%s12061_s5 + $0x370] sm:$0xff]  }
 0x52d   :  { %9409 = vmatpush3.bf16.msra.mxu0 %v10143_v43  ;;  %9424 = vmatprep.mubr.msk.bf16.mxu0 %vm10332_vm0, %v10949_v25 }
 0x52e   :  { %9410 = vmatprep.subr.bf16.mxu0 %v10949_v25 }
 0x531   :  { %9411 = vmatpush3.bf16.msra.mxu0 %v10144_v45 }
 0x532   :  { %9412 = vmatprep.subr.bf16.mxu0 %v10949_v25 }
 0x535   :  { %9413 = vmatpush3.bf16.msra.mxu0 %v10145_v46  ;;  %v4653_v46 = vrot.slane %v4645_v38, %v10893_v19 }
 0x536   :  { %9414 = vmatprep.subr.bf16.mxu0 %v10949_v25 }
 0x539   :  { %9415 = vmatpush3.bf16.msra.mxu0 %v10146_v47 }
 0x53a   :  { %9416 = vmatprep.subr.bf16.mxu0 %v10949_v25 }
 0x53d   :  { %9417 = vmatpush3.bf16.msra.mxu0 %v10147_v48  ;;  %v10166_v48 = vld [vmem:[%s12061_s5 + $0x378] sm:$0xff]  }
 0x53e   :  { %9418 = vmatprep.subr.bf16.mxu0 %v10949_v25 }
 0x53f   :  { %v3532_v56 = vpop.f32.mrb[32].mxu0 }
 0x540   :  { %v3538_v41 = vadd.f32 %v3532_v56, %v3402_v34  ;;  %v9286_v57 = vpop.f32.mrb[33].mxu0  ;;  %v4640_v34 = vld [vmem:[#allocation5 + $0x29] ss:$2 sm:$0x3]  ;;  %v11387_v56 = vld [vmem:[#allocation2] sm:$0xff] }
 0x541   :  { %v3535_v58 = vpop.f32.mrb[34].mxu0  ;;  %9419 = vmatpush3.bf16.msra.mxu0 %v10148_v52  ;;  %v4646_v39 = vcombine.low %v4638_v36, %v4640_v34  ;;  %v4771_v57 = vld [vmem:[#allocation5 + $0xa] ss:$2 sm:$0x3] }
 0x542   :  { %v9287_v60 = vpop.f32.mrb[35].mxu0  ;;  %9420 = vmatprep.subr.bf16.mxu0 %v10949_v25  ;;  %v4773_v58 = vld [vmem:[#allocation5 + $0x12] ss:$2 sm:$0x3] }
 0x543   :  { %v4660_v47 = vrot.slane %v4646_v39, %v10893_v19  ;;  %v4777_v60 = vld [vmem:[#allocation5 + $0x2a] ss:$2 sm:$0x3]  ;;  %v4782_v61 = vcombine.low %v4771_v57, %v4773_v58  ;;  %v4910_v34 = vld [vmem:[#allocation5 + $0x13] ss:$2 sm:$0x3] }
 0x544   :  { %v4914_v36 = vld [vmem:[#allocation5 + $0x2b] ss:$2 sm:$0x3]  ;;  %v10180_v39 = vld [vmem:[%s12061_s5 + $0x3e8] sm:$0xff]  }
 0x545   :  { %9421 = vmatpush3.bf16.msra.mxu0 %v10149_v59  ;;  %v4661_v50 = vcombine.low %v4653_v46, %v4660_v47  ;;  %v4775_v59 = vld [vmem:[#allocation5 + $0x22] ss:$2 sm:$0x3]  ;;  %v10194_v47 = vld [vmem:[%s12063_s7 + $0x88] sm:$0xff]  }
 0x546   :  { %9422 = vmatprep.subr.bf16.mxu0 %v10949_v25  ;;  %v4783_v62 = vcombine.low %v4775_v59, %v4777_v60  ;;  %v5308_v58 = vld [vmem:[#allocation6 + $0x2] ss:$2 sm:$0x1]  ;;  %v10193_v59 = vld [vmem:[%s12063_s7 + $0x8] sm:$0xff]  }
 0x547   :  { %v4663_v52 = vpack.c.bf16 %v4661_v50, %v4661_v50  ;;  %v10200_v60 = vld [vmem:[%s12063_s7 + $0xa0] sm:$0xff]  }
 0x548   :  { %v4797_v7 = vrot.slane %v4783_v62, %v10893_v19 }
 0x549   :  { %9423 = vmatpush3.bf16.msra.mxu0 %v10150_v63 }
 0x54a   :  { %9428 = vmatprep.subr.bf16.mxu0 %v10949_v25 }
 0x54c   :  { %9425 = vmatmul.mubr.bf16.vlgmr.msra.gmra.mrb[60].mxu0 %v4390_v2  ;;  %v10173_v2 = vld [vmem:[%s12061_s5 + $0x3b0] sm:$0xff]  }
 0x54d   :  { %9429 = vmatpush3.bf16.msra.mxu0 %v10151_v1  ;;  %9444 = vmatprep.mubr.msk.bf16.mxu0 %vm10332_vm0, %v10949_v25 }
 0x54e   :  { %9430 = vmatprep.subr.bf16.mxu0 %v10949_v25 }
 0x551   :  { %9431 = vmatpush3.bf16.msra.mxu0 %v10152_v3 }
 0x552   :  { %9432 = vmatprep.subr.bf16.mxu0 %v10949_v25 }
 0x555   :  { %9433 = vmatpush3.bf16.msra.mxu0 %v10153_v4  ;;  %v10184_v4 = vld [vmem:[%s12063_s7 + $0x48] sm:$0xff]  }
 0x556   :  { %9434 = vmatprep.subr.bf16.mxu0 %v10949_v25  ;;  %9511 = vmatpush3.bf16.msra.mxu1 %v10184_v4 }
 0x557   :  { %9512 = vmatprep.subr.bf16.mxu1 %v11387_v56 }
 0x559   :  { %9435 = vmatpush3.bf16.msra.mxu0 %v10154_v5 }
 0x55a   :  { %9436 = vmatprep.subr.bf16.mxu0 %v10949_v25  ;;  %9513 = vmatpush3.bf16.msra.mxu1 %v10185_v8  ;;  %v5070_v8 = vld [vmem:[#allocation6] ss:$2 sm:$0x1] }
 0x55b   :  { %9514 = vmatprep.subr.bf16.mxu1 %v11387_v56 }
 0x55d   :  { %9437 = vmatpush3.bf16.msra.mxu0 %v10155_v6  ;;  %v4790_v6 = vrot.slane %v4782_v61, %v10893_v19  ;;  %v10202_v61 = vld [vmem:[%s12063_s7 + $0xa8] sm:$0xff]  }
 0x55e   :  { %9438 = vmatprep.subr.bf16.mxu0 %v10949_v25  ;;  %9515 = vmatpush3.bf16.msra.mxu1 %v10186_v10  ;;  %v10208_v10 = vld [vmem:[%s12063_s7 + $0x100] sm:$0xff]  }
 0x55f   :  { %v3669_v14 = vpop.f32.mrb[36].mxu0  ;;  %v4798_v12 = vcombine.low %v4790_v6, %v4797_v7  ;;  %9516 = vmatprep.subr.bf16.mxu1 %v11387_v56  ;;  %v10199_v6 = vld [vmem:[%s12063_s7 + $0x20] sm:$0xff]  }
 0x560   :  { %v3675_v15 = vadd.f32 %v3669_v14, %v3538_v41  ;;  %v9306_v16 = vpop.f32.mrb[37].mxu0  ;;  %v10171_v41 = vld [vmem:[%s12061_s5 + $0x3a0] sm:$0xff]  }
 0x561   :  { %v3672_v17 = vpop.f32.mrb[38].mxu0  ;;  %9439 = vmatpush3.bf16.msra.mxu0 %v10156_v11  ;;  %v5094_v11 = vld [vmem:[#allocation6 + $0x9] ss:$2 sm:$0x1]  ;;  %v10175_v14 = vld [vmem:[%s12061_s5 + $0x3c0] sm:$0xff]   ;;  %v4800_v16 = vpack.c.bf16 %v4798_v12, %v4798_v12 }
 0x562   :  { %v9307_v20 = vpop.f32.mrb[39].mxu0  ;;  %9440 = vmatprep.subr.bf16.mxu0 %v10949_v25  ;;  %v5096_v13 = vpack.c.bf16 %v5094_v11, %v5094_v11  ;;  %v10187_v17 = vld [vmem:[%s12063_s7 + $0x60] sm:$0xff]   ;;  %v10201_v12 = vld [vmem:[%s12063_s7 + $0x28] sm:$0xff]  }
 0x563   :  { %9517 = vmatpush3.bf16.msra.mxu1 %v10187_v17 }
 0x564   :  { %9518 = vmatprep.subr.bf16.mxu1 %v11387_v56 }
 0x565   :  { %9441 = vmatpush3.bf16.msra.mxu0 %v10157_v18  ;;  %v5092_v18 = vld [vmem:[#allocation6 + $0x1] ss:$2 sm:$0x1] }
 0x566   :  { %9442 = vmatprep.subr.bf16.mxu0 %v10949_v25  ;;  %v5095_v24 = vpack.c.bf16 %v5092_v18, %v5092_v18 }
 0x567   :  { %9519 = vmatpush3.bf16.msra.mxu1 %v10188_v22 }
 0x568   :  { %9520 = vmatprep.subr.bf16.mxu1 %v11387_v56 }
 0x569   :  { %9443 = vmatpush3.bf16.msra.mxu0 %v10158_v23  ;;  %v10177_v23 = vld [vmem:[%s12061_s5 + $0x3d0] sm:$0xff]  }
 0x56a   :  { %9448 = vmatprep.subr.bf16.mxu0 %v10949_v25 }
 0x56c   :  { %9445 = vmatmul.mubr.bf16.vlgmr.msra.gmra.mrb[64].mxu0 %v4526_v28  ;;  %v10178_v28 = vld [vmem:[%s12061_s5 + $0x3d8] sm:$0xff]  }
 0x56d   :  { %9449 = vmatpush3.bf16.msra.mxu0 %v10159_v27  ;;  %9464 = vmatprep.mubr.msk.bf16.mxu0 %vm10332_vm0, %v10949_v25  ;;  %v10189_v27 = vld [vmem:[%s12063_s7 + $0x70] sm:$0xff]  }
 0x56e   :  { %9450 = vmatprep.subr.bf16.mxu0 %v10949_v25  ;;  %9521 = vmatpush3.bf16.msra.mxu1 %v10189_v27  ;;  %v10212_v27 = vld [vmem:[%s12063_s7 + $0x110] sm:$0xff]  }
 0x56f   :  { %9522 = vmatprep.subr.bf16.mxu1 %v11387_v56 }
 0x571   :  { %9451 = vmatpush3.bf16.msra.mxu0 %v10160_v29  ;;  %v5116_v29 = vunpack.c.l.b16 %v5095_v24 }
 0x572   :  { %9452 = vmatprep.subr.bf16.mxu0 %v10949_v25 }
 0x575   :  { %9453 = vmatpush3.bf16.msra.mxu0 %v10161_v30  ;;  %v10190_v30 = vld [vmem:[%s12063_s7 + $0x78] sm:$0xff]  }
 0x576   :  { %9454 = vmatprep.subr.bf16.mxu0 %v10949_v25  ;;  %9523 = vmatpush3.bf16.msra.mxu1 %v10190_v30  ;;  %v10207_v30 = vld [vmem:[%s12063_s7 + $0xc0] sm:$0xff]  }
 0x577   :  { %9548 = vmatprep.subr.bf16.mxu1 %v11387_v56 }
 0x579   :  { %9455 = vmatpush3.bf16.msra.mxu0 %v10162_v31  ;;  %v10179_v31 = vld [vmem:[%s12061_s5 + $0x3e0] sm:$0xff]  }
 0x57a   :  { %9456 = vmatprep.subr.bf16.mxu0 %v10949_v25 }
 0x57d   :  { %9457 = vmatpush3.bf16.msra.mxu0 %v10163_v32 }
 0x57e   :  { %9458 = vmatprep.subr.bf16.mxu0 %v10949_v25 }
 0x57f   :  { %v3806_v40 = vpop.f32.mrb[40].mxu0 }
 0x580   :  { %v3812_v26 = vadd.f32 %v3806_v40, %v3675_v15  ;;  %v9326_v42 = vpop.f32.mrb[41].mxu0  ;;  %v5117_v15 = vunpack.c.l.b16 %v5096_v13  ;;  %v4919_v40 = vcombine.low %v4908_v33, %v4910_v34  ;;  %v5547_v34 = vld [vmem:[#allocation7] ss:$2 sm:$0x1] }
 0x581   :  { %v3809_v43 = vpop.f32.mrb[42].mxu0  ;;  %9459 = vmatpush3.bf16.msra.mxu0 %v10164_v37  ;;  %v10192_v37 = vld [vmem:[%s12063_s7 + $0x80] sm:$0xff]  }
 0x582   :  { %v9327_v45 = vpop.f32.mrb[43].mxu0  ;;  %9460 = vmatprep.subr.bf16.mxu0 %v10949_v25  ;;  %v5118_v20 = vrot.slane %v5117_v15, 7  ;;  %v4927_v49 = vrot.slane %v4919_v40, %v10893_v19 }
 0x583   :  { %v10181_v45 = vld [vmem:[%s12061_s5 + $0x3f0] sm:$0xff]  }
 0x584   :  { %v5120_v32 = vsel %vm5119_vm5, %v5118_v20, %v5116_v29 }
 0x585   :  { %9461 = vmatpush3.bf16.msra.mxu0 %v10165_v44  ;;  %v5121_v38 = vpack.c.b16 %v5120_v32, %v5120_v32  ;;  %v5549_v32 = vld [vmem:[#allocation7 + $0x8] ss:$2 sm:$0x1] }
 0x586   :  { %9462 = vmatprep.subr.bf16.mxu0 %v10949_v25 }
 0x587   :  { %9525 = vmatmul.mubr.bf16.vlgmr.msra.gmra.mrb[4].mxu1 %v5121_v38  ;;  %v10218_v38 = vld [vmem:[%s12063_s7 + $0x128] sm:$0xff]  }
 0x588   :  { %9549 = vmatpush3.bf16.msra.mxu1 %v10192_v37  ;;  %9564 = vmatprep.mubr.msk.bf16.mxu1 %vm10332_vm0, %v11387_v56  ;;  %v10209_v37 = vld [vmem:[%s12063_s7 + $0xc8] sm:$0xff]  }
 0x589   :  { %9463 = vmatpush3.bf16.msra.mxu0 %v10166_v48  ;;  %9550 = vmatprep.subr.bf16.mxu1 %v11387_v56 }
 0x58a   :  { %9468 = vmatprep.subr.bf16.mxu0 %v10949_v25 }
 0x58c   :  { %9465 = vmatmul.mubr.bf16.vlgmr.msra.gmra.mrb[68].mxu0 %v4663_v52  ;;  %9551 = vmatpush3.bf16.msra.mxu1 %v10194_v47  ;;  %v10182_v52 = vld [vmem:[%s12061_s5 + $0x3f8] sm:$0xff]  }
 0x58d   :  { %9469 = vmatpush3.bf16.msra.mxu0 %v10167_v51  ;;  %9484 = vmatprep.mubr.msk.bf16.mxu0 %vm10332_vm0, %v10949_v25  ;;  %v10196_v51 = vld [vmem:[%s12063_s7 + $0x90] sm:$0xff]   ;;  %v10222_v47 = vld [vmem:[%s12063_s7 + $0x138] sm:$0xff]  }
 0x58e   :  { %9470 = vmatprep.subr.bf16.mxu0 %v10949_v25  ;;  %9552 = vmatprep.subr.bf16.mxu1 %v11387_v56 }
 0x590   :  { %9553 = vmatpush3.bf16.msra.mxu1 %v10196_v51  ;;  %v5428_v51 = vld [vmem:[#allocation6 + $0x3] ss:$2 sm:$0x1] }
 0x591   :  { %9471 = vmatpush3.bf16.msra.mxu0 %v10168_v53  ;;  %9554 = vmatprep.subr.bf16.mxu1 %v11387_v56 }
 0x592   :  { %9472 = vmatprep.subr.bf16.mxu0 %v10949_v25  ;;  %v10172_v25 = vld [vmem:[%s12061_s5 + $0x3a8] sm:$0xff]  }
 0x595   :  { %9473 = vmatpush3.bf16.msra.mxu0 %v10169_v54  ;;  %v10191_v54 = vld [vmem:[%s12063_s7] sm:$0xff]  }
 0x596   :  { %9474 = vmatprep.subr.bf16.mxu0 %v11387_v56 }
 0x599   :  { %9475 = vmatpush3.bf16.msra.mxu0 %v10170_v55  ;;  %v5310_v55 = vld [vmem:[#allocation6 + $0xa] ss:$2 sm:$0x1] }
 0x59a   :  { %9476 = vmatprep.subr.bf16.mxu0 %v11387_v56 }
 0x59d   :  { %9477 = vmatpush3.bf16.msra.mxu0 %v10171_v41  ;;  %v5312_v41 = vpack.c.bf16 %v5310_v55, %v5310_v55 }
 0x59e   :  { %9478 = vmatprep.subr.bf16.mxu0 %v11387_v56 }
 0x59f   :  { %v3943_v63 = vpop.f32.mrb[44].mxu0 }
 0x5a0   :  { %v11398_v0 = vadd.f32 %v3943_v63, %v3812_v26  ;;  %v9346_v1 = vpop.f32.mrb[45].mxu0  ;;  %v4920_v26 = vcombine.low %v4912_v35, %v4914_v36  ;;  %v10195_v63 = vld [vmem:[%s12063_s7 + $0x10] sm:$0xff]   ;;  %v10216_v35 = vld [vmem:[%s12063_s7 + $0x120] sm:$0xff]   ;;  %v5551_v36 = vpack.c.bf16 %v5549_v32, %v5549_v32 }
 0x5a1   :  { %v3946_v3 = vpop.f32.mrb[46].mxu0  ;;  %9479 = vmatpush3.bf16.msra.mxu0 %v10172_v25  ;;  %v5333_v25 = vunpack.c.l.b16 %v5312_v41  ;;  %v10204_v1 = vld [vmem:[%s12063_s7 + $0xb0] sm:$0xff]  }
 0x5a2   :  { %v9347_v5 = vpop.f32.mrb[47].mxu0  ;;  %9480 = vmatprep.subr.bf16.mxu0 %v11387_v56  ;;  %v4934_v50 = vrot.slane %v4920_v26, %v10893_v19  ;;  %v10198_v19 = vld [vmem:[%s12063_s7 + $0x98] sm:$0xff]   ;;  %v5072_v3 = vld [vmem:[#allocation6 + $0x8] ss:$2 sm:$0x1]  ;;  %v5572_v40 = vunpack.c.l.b16 %v5551_v36  ;;  %v10211_v26 = vld [vmem:[%s12063_s7 + $0xd0] sm:$0xff]  }
 0x5a3   :  { %9555 = vmatpush3.bf16.msra.mxu1 %v10198_v19  ;;  %v5334_v62 = vrot.slane %v5333_v25, 7  ;;  %v10206_v5 = vld [vmem:[%s12063_s7 + $0xb8] sm:$0xff]   ;;  %v5431_v19 = vpack.c.bf16 %v5428_v51, %v5428_v51 }
 0x5a4   :  { %v4935_v53 = vcombine.low %v4927_v49, %v4934_v50  ;;  %9556 = vmatprep.subr.bf16.mxu1 %v11387_v56  ;;  %v10215_v49 = vld [vmem:[%s12063_s7 + $0xe0] sm:$0xff]  }
 0x5a5   :  { %9481 = vmatpush3.bf16.msra.mxu0 %v10173_v2  ;;  %v10197_v2 = vld [vmem:[%s12063_s7 + $0x18] sm:$0xff]  }
 0x5a6   :  { %9482 = vmatprep.subr.bf16.mxu0 %v11387_v56  ;;  %v4937_v57 = vpack.c.bf16 %v4935_v53, %v4935_v53  ;;  %v10217_v53 = vld [vmem:[%s12063_s7 + $0xe8] sm:$0xff]  }
 0x5a7   :  { %9557 = vmatpush3.bf16.msra.mxu1 %v10200_v60  ;;  %v5452_v60 = vunpack.c.l.b16 %v5431_v19 }
 0x5a8   :  { %9558 = vmatprep.subr.bf16.mxu1 %v11387_v56 }
 0x5a9   :  { %9483 = vmatpush3.bf16.msra.mxu0 %v10174_v9  ;;  %v5074_v9 = vpack.c.bf16 %v5072_v3, %v5072_v3  ;;  %v10223_v3 = vld [vmem:[%s12063_s7 + $0x140] sm:$0xff]  }
 0x5aa   :  { %9488 = vmatprep.subr.bf16.mxu0 %v11387_v56 }
 0x5ab   :  { %9559 = vmatpush3.bf16.msra.mxu1 %v10202_v61  ;;  %v5214_v13 = vunpack.c.l.b16 %v5074_v9 }
 0x5ac   :  { %9485 = vmatmul.mubr.bf16.vlgmr.msra.gmra.mrb[72].mxu0 %v4800_v16  ;;  %9560 = vmatprep.subr.bf16.mxu1 %v11387_v56  ;;  %v10203_v16 = vld [vmem:[%s12063_s7 + $0x30] sm:$0xff]  }
 0x5ad   :  { %9489 = vmatpush3.bf16.msra.mxu0 %v10175_v14  ;;  %9504 = vmatprep.mubr.msk.bf16.mxu0 %vm10332_vm0, %v11387_v56  ;;  %v5073_v14 = vpack.c.bf16 %v5070_v8, %v5070_v8  ;;  %v5215_v20 = vrot.slane %v5214_v13, 7  ;;  %v10230_v13 = vld [vmem:[%s12063_s7 + $0x198] sm:$0xff]  }
 0x5ae   :  { %9490 = vmatprep.subr.bf16.mxu0 %v11387_v56 }
 0x5af   :  { %9561 = vmatpush3.bf16.msra.mxu1 %v10204_v1  ;;  %v5213_v22 = vunpack.c.l.b16 %v5073_v14  ;;  %v10231_v14 = vld [vmem:[%s12063_s7 + $0x160] sm:$0xff]  }
 0x5b0   :  { %9562 = vmatprep.subr.bf16.mxu1 %v11387_v56 }
 0x5b1   :  { %9491 = vmatpush3.bf16.msra.mxu0 %v10176_v21  ;;  %v5216_v29 = vsel %vm5119_vm5, %v5215_v20, %v5213_v22  ;;  %v10236_v20 = vld [vmem:[%s12063_s7 + $0x1b0] sm:$0xff]   ;;  %v10238_v22 = vld [vmem:[%s12063_s7 + $0x1b8] sm:$0xff]  }
 0x5b2   :  { %9492 = vmatprep.subr.bf16.mxu0 %v11387_v56  ;;  %v5217_v33 = vpack.c.b16 %v5216_v29, %v5216_v29 }
 0x5b3   :  { %9563 = vmatpush3.bf16.msra.mxu1 %v10206_v5 }
 0x5b4   :  { %9588 = vmatprep.subr.bf16.mxu1 %v11387_v56 }
 0x5b5   :  { %9493 = vmatpush3.bf16.msra.mxu0 %v10177_v23  ;;  %v10210_v23 = vld [vmem:[%s12063_s7 + $0x108] sm:$0xff]  }
 0x5b6   :  { %9494 = vmatprep.subr.bf16.mxu0 %v11387_v56 }
 0x5b9   :  { %9495 = vmatpush3.bf16.msra.mxu0 %v10178_v28  ;;  %v10205_v28 = vld [vmem:[%s12063_s7 + $0x38] sm:$0xff]  }
 0x5ba   :  { %9496 = vmatprep.subr.bf16.mxu0 %v11387_v56 }
 0x5bd   :  { %9497 = vmatpush3.bf16.msra.mxu0 %v10179_v31  ;;  %v10214_v31 = vld [vmem:[%s12063_s7 + $0x118] sm:$0xff]  }
 0x5be   :  { %9498 = vmatprep.subr.bf16.mxu0 %v11387_v56 }
 0x5bf   :  { %v4079_v42 = vpop.f32.mrb[48].mxu0 }
 0x5c0   :  { %v11471_v43 = vadd.f32 %v4079_v42, %v11398_v0  ;;  %v9366_v44 = vpop.f32.mrb[49].mxu0  ;;  %v5311_v0 = vpack.c.bf16 %v5308_v58, %v5308_v58  ;;  %v10220_v42 = vld [vmem:[%s12063_s7 + $0x130] sm:$0xff]  }
 0x5c1   :  { %v4082_v46 = vpop.f32.mrb[50].mxu0  ;;  %9499 = vmatpush3.bf16.msra.mxu0 %v10180_v39  ;;  %v5550_v39 = vpack.c.bf16 %v5547_v34, %v5547_v34  ;;  %v5573_v44 = vrot.slane %v5572_v40, 7 }
 0x5c2   :  { %v9367_v48 = vpop.f32.mrb[51].mxu0  ;;  %9500 = vmatprep.subr.bf16.mxu0 %v11387_v56  ;;  %v5332_v4 = vunpack.c.l.b16 %v5311_v0  ;;  %v5430_v46 = vld [vmem:[#allocation6 + $0xb] ss:$2 sm:$0x1]  ;;  %v10221_v0 = vld [vmem:[%s12063_s7 + $0xf8] sm:$0xff]  }
 0x5c3   :  { %v5432_v50 = vpack.c.bf16 %v5430_v46, %v5430_v46 }
 0x5c4   :  { %v5335_v7 = vsel %vm5119_vm5, %v5334_v62, %v5332_v4  ;;  %v10224_v62 = vld [vmem:[%s12063_s7 + $0x180] sm:$0xff]   ;;  %v10225_v4 = vld [vmem:[%s12063_s7 + $0x148] sm:$0xff]  }
 0x5c5   :  { %9501 = vmatpush3.bf16.msra.mxu0 %v10181_v45  ;;  %v5336_v11 = vpack.c.b16 %v5335_v7, %v5335_v7  ;;  %v10213_v45 = vld [vmem:[%s12063_s7 + $0xd8] sm:$0xff]  }
 0x5c6   :  { %9502 = vmatprep.subr.bf16.mxu0 %v11387_v56 }
 0x5c7   :  { %9565 = vmatmul.mubr.bf16.vlgmr.msra.gmra.mrb[8].mxu1 %v5336_v11  ;;  %v10228_v11 = vld [vmem:[%s12063_s7 + $0x190] sm:$0xff]  }
 0x5c8   :  { %9589 = vmatpush3.bf16.msra.mxu1 %v10208_v10  ;;  %9604 = vmatprep.mubr.msk.bf16.mxu1 %vm10332_vm0, %v11387_v56  ;;  %v10227_v10 = vld [vmem:[%s12063_s7 + $0x150] sm:$0xff]  }
 0x5c9   :  { %9503 = vmatpush3.bf16.msra.mxu0 %v10182_v52  ;;  %9590 = vmatprep.subr.bf16.mxu1 %v11387_v56 }
 0x5ca   :  { %9528 = vmatprep.subr.bf16.mxu0 %v11387_v56 }
 0x5cc   :  { %9505 = vmatmul.mubr.bf16.vlgmr.msra.gmra.mrb[76].mxu0 %v4937_v57  ;;  %9591 = vmatpush3.bf16.msra.mxu1 %v10210_v23 }
 0x5cd   :  { %9529 = vmatpush3.bf16.msra.mxu0 %v10191_v54  ;;  %9544 = vmatprep.mubr.msk.bf16.mxu0 %vm10332_vm0, %v11387_v56  ;;  %v5453_v54 = vunpack.c.l.b16 %v5432_v50 }
 0x5ce   :  { %9530 = vmatprep.subr.bf16.mxu0 %v11387_v56  ;;  %9592 = vmatprep.subr.bf16.mxu1 %v11387_v56 }
 0x5cf   :  { %v5454_v25 = vrot.slane %v5453_v54, 7 }
 0x5d0   :  { %9593 = vmatpush3.bf16.msra.mxu1 %v10212_v27 }
 0x5d1   :  { %9531 = vmatpush3.bf16.msra.mxu0 %v10193_v59  ;;  %9594 = vmatprep.subr.bf16.mxu1 %v11387_v56  ;;  %v10219_v59 = vld [vmem:[%s12063_s7 + $0xf0] sm:$0xff]   ;;  %v5455_v1 = vsel %vm5119_vm5, %v5454_v25, %v5452_v60 }
 0x5d2   :  { %9532 = vmatprep.subr.bf16.mxu0 %v11387_v56 }
 0x5d4   :  { %9595 = vmatpush3.bf16.msra.mxu1 %v10214_v31 }
 0x5d5   :  { %9533 = vmatpush3.bf16.msra.mxu0 %v10195_v63  ;;  %9596 = vmatprep.subr.bf16.mxu1 %v11387_v56  ;;  %v10226_v63 = vld [vmem:[%s12063_s7 + $0x188] sm:$0xff]  }
 0x5d6   :  { %9534 = vmatprep.subr.bf16.mxu0 %v11387_v56 }
 0x5d8   :  { %9597 = vmatpush3.bf16.msra.mxu1 %v10216_v35 }
 0x5d9   :  { %9535 = vmatpush3.bf16.msra.mxu0 %v10197_v2  ;;  %9598 = vmatprep.subr.bf16.mxu1 %v11387_v56  ;;  %v5456_v2 = vpack.c.b16 %v5455_v1, %v5455_v1 }
 0x5da   :  { %9536 = vmatprep.subr.bf16.mxu0 %v11387_v56 }
 0x5dc   :  { %9599 = vmatpush3.bf16.msra.mxu1 %v10218_v38 }
 0x5dd   :  { %9537 = vmatpush3.bf16.msra.mxu0 %v10199_v6  ;;  %9600 = vmatprep.subr.bf16.mxu1 %v11387_v56 }
 0x5de   :  { %9538 = vmatprep.subr.bf16.mxu0 %v11387_v56 }
 0x5df   :  { %v4216_v15 = vpop.f32.mrb[52].mxu0 }
 0x5e0   :  { %v11548_v17 = vadd.f32 %v4216_v15, %v11471_v43  ;;  %v9386_v18 = vpop.f32.mrb[53].mxu0  ;;  %v5571_v43 = vunpack.c.l.b16 %v5550_v39  ;;  %9601 = vmatpush3.bf16.msra.mxu1 %v10220_v42  ;;  %v10232_v15 = vld [vmem:[%s12063_s7 + $0x1a0] sm:$0xff]  }
 0x5e1   :  { %v4219_v21 = vpop.f32.mrb[54].mxu0  ;;  %9539 = vmatpush3.bf16.msra.mxu0 %v10201_v12  ;;  %9602 = vmatprep.subr.bf16.mxu1 %v11387_v56  ;;  %v10229_v12 = vld [vmem:[%s12063_s7 + $0x158] sm:$0xff]   ;;  %v10235_v18 = vld [vmem:[%s12063_s7 + $0x170] sm:$0xff]  }
 0x5e2   :  { %v9387_v24 = vpop.f32.mrb[55].mxu0  ;;  %9540 = vmatprep.subr.bf16.mxu0 %v11387_v56  ;;  %v5574_v48 = vsel %vm5119_vm5, %v5573_v44, %v5571_v43  ;;  %v10237_v21 = vld [vmem:[%s12063_s7 + $0x178] sm:$0xff]  }
 0x5e3   :  { %v5575_v52 = vpack.c.b16 %v5574_v48, %v5574_v48 }
 0x5e4   :  { %9603 = vmatpush3.bf16.msra.mxu1 %v10222_v47 }
 0x5e5   :  { %9541 = vmatpush3.bf16.msra.mxu0 %v10203_v16  ;;  %9628 = vmatprep.subr.bf16.mxu1 %v11387_v56  ;;  %v10233_v16 = vld [vmem:[%s12063_s7 + $0x168] sm:$0xff]  }
 0x5e6   :  { %9542 = vmatprep.subr.bf16.mxu0 %v11387_v56 }
 0x5e7   :  { %9605 = vmatmul.mubr.bf16.vlgmr.msra.gmra.mrb[12].mxu1 %v5575_v52 }
 0x5e8   :  { %9644 = vmatprep.mubr.msk.bf16.mxu1 %vm10332_vm0, %v11387_v56  ;;  %9629 = vmatpush3.bf16.msra.mxu1 %v10224_v62 }
 0x5e9   :  { %9543 = vmatpush3.bf16.msra.mxu0 %v10205_v28  ;;  %9630 = vmatprep.subr.bf16.mxu1 %v11387_v56 }
 0x5ea   :  { %9568 = vmatprep.subr.bf16.mxu0 %v11387_v56 }
 0x5ec   :  { %9545 = vmatmul.mubr.bf16.vlgmr.msra.gmra.mrb[80].mxu0 %v5217_v33  ;;  %9631 = vmatpush3.bf16.msra.mxu1 %v10226_v63 }
 0x5ed   :  { %9569 = vmatpush3.bf16.msra.mxu0 %v10207_v30  ;;  %9584 = vmatprep.mubr.msk.bf16.mxu0 %vm10332_vm0, %v11387_v56 }
 0x5ee   :  { %9570 = vmatprep.subr.bf16.mxu0 %v11387_v56  ;;  %9632 = vmatprep.subr.bf16.mxu1 %v11387_v56 }
 0x5f0   :  { %9633 = vmatpush3.bf16.msra.mxu1 %v10228_v11  ;;  %v10247_v11 = vld [vmem:[%s12063_s7 + $0x1e0] sm:$0xff]  }
 0x5f1   :  { %9571 = vmatpush3.bf16.msra.mxu0 %v10209_v37  ;;  %9634 = vmatprep.subr.bf16.mxu1 %v11387_v56 }
 0x5f2   :  { %9572 = vmatprep.subr.bf16.mxu0 %v11387_v56 }
 0x5f4   :  { %9635 = vmatpush3.bf16.msra.mxu1 %v10230_v13 }
 0x5f5   :  { %9573 = vmatpush3.bf16.msra.mxu0 %v10211_v26  ;;  %9636 = vmatprep.subr.bf16.mxu1 %v11387_v56 }
 0x5f6   :  { %9574 = vmatprep.subr.bf16.mxu0 %v11387_v56 }
 0x5f8   :  { %9637 = vmatpush3.bf16.msra.mxu1 %v10232_v15  ;;  %v5907_v15 = vld [vmem:[#allocation7 + $0x3] ss:$2 sm:$0x1] }
 0x5f9   :  { %9575 = vmatpush3.bf16.msra.mxu0 %v10213_v45  ;;  %9638 = vmatprep.subr.bf16.mxu1 %v11387_v56 }
 0x5fa   :  { %9576 = vmatprep.subr.bf16.mxu0 %v11387_v56 }
 0x5fd   :  { %9577 = vmatpush3.bf16.msra.mxu0 %v10215_v49 }
 0x5fe   :  { %9578 = vmatprep.subr.bf16.mxu0 %v11387_v56 }
 0x5ff   :  { %v4353_v55 = vpop.f32.mrb[56].mxu0 }
 0x600   :  { %v4359_v41 = vadd.f32 %v4353_v55, %v11548_v17  ;;  %v9406_v57 = vpop.f32.mrb[57].mxu0  ;;  %v10234_v17 = vld [vmem:[%s12063_s7 + $0x1a8] sm:$0xff]  }
 0x601   :  { %v4356_v58 = vpop.f32.mrb[58].mxu0  ;;  %9579 = vmatpush3.bf16.msra.mxu0 %v10217_v53  ;;  %9639 = vmatpush3.bf16.msra.mxu1 %v10234_v17 }
 0x602   :  { %v9407_v61 = vpop.f32.mrb[59].mxu0  ;;  %9580 = vmatprep.subr.bf16.mxu0 %v11387_v56  ;;  %9640 = vmatprep.subr.bf16.mxu1 %v11387_v56 }
 0x603   :  { %v10239_v61 = vld [vmem:[%s12063_s7 + $0x1c0] sm:$0xff]  }
 0x605   :  { %9581 = vmatpush3.bf16.msra.mxu0 %v10219_v59  ;;  %9641 = vmatpush3.bf16.msra.mxu1 %v10236_v20  ;;  %v6026_v20 = vld [vmem:[#allocation6 + $0x4] ss:$2 sm:$0x1] }
 0x606   :  { %9582 = vmatprep.subr.bf16.mxu0 %v11387_v56  ;;  %9642 = vmatprep.subr.bf16.mxu1 %v11387_v56 }
 0x609   :  { %9583 = vmatpush3.bf16.msra.mxu0 %v10221_v0  ;;  %9643 = vmatpush3.bf16.msra.mxu1 %v10238_v22  ;;  %v10240_v0 = vld [vmem:[%s12063_s7 + $0x200] sm:$0xff]  }
 0x60a   :  { %9608 = vmatprep.subr.bf16.mxu0 %v11387_v56  ;;  %9668 = vmatprep.subr.bf16.mxu1 %v11387_v56 }
 0x60c   :  { %9585 = vmatmul.mubr.bf16.vlgmr.msra.gmra.mrb[84].mxu0 %v5456_v2  ;;  %v10241_v2 = vld [vmem:[%s12063_s7 + $0x1c8] sm:$0xff]  }
 0x60d   :  { %9609 = vmatpush3.bf16.msra.mxu0 %v10223_v3  ;;  %9624 = vmatprep.mubr.msk.bf16.mxu0 %vm10332_vm0, %v11387_v56  ;;  %v11705_v3 = vld [vmem:[#allocation2] sm:$0xff] }
 0x60e   :  { %9610 = vmatprep.subr.bf16.mxu0 %v11387_v56 }
 0x611   :  { %9611 = vmatpush3.bf16.msra.mxu0 %v10225_v4  ;;  %v10242_v4 = vld [vmem:[%s12063_s7 + $0x208] sm:$0xff]  }
 0x612   :  { %9612 = vmatprep.subr.bf16.mxu0 %v11387_v56 }
 0x615   :  { %9613 = vmatpush3.bf16.msra.mxu0 %v10227_v10  ;;  %v6028_v10 = vld [vmem:[#allocation6 + $0xc] ss:$2 sm:$0x1] }
 0x616   :  { %9614 = vmatprep.subr.bf16.mxu0 %v11387_v56 }
 0x619   :  { %9615 = vmatpush3.bf16.msra.mxu0 %v10229_v12 }
 0x61a   :  { %9616 = vmatprep.subr.bf16.mxu0 %v11387_v56 }
 0x61d   :  { %9617 = vmatpush3.bf16.msra.mxu0 %v10231_v14  ;;  %v10248_v14 = vld [vmem:[%s12063_s7 + $0x220] sm:$0xff]  }
 0x61e   :  { %9618 = vmatprep.subr.bf16.mxu0 %v11387_v56 }
 0x61f   :  { %v4490_v5 = vpop.f32.mrb[60].mxu0 }
 0x620   :  { %v4496_v6 = vadd.f32 %v4490_v5, %v4359_v41  ;;  %v9426_v7 = vpop.f32.mrb[61].mxu0  ;;  %v10243_v5 = vld [vmem:[%s12063_s7 + $0x1d0] sm:$0xff]  }
 0x621   :  { %v4493_v8 = vpop.f32.mrb[62].mxu0  ;;  %9619 = vmatpush3.bf16.msra.mxu0 %v10233_v16  ;;  %v10245_v7 = vld [vmem:[%s12063_s7 + $0x1d8] sm:$0xff]   ;;  %v6030_v16 = vpack.c.bf16 %v6028_v10, %v6028_v10  ;;  %v10265_v10 = vld [vmem:[%s12063_s7 + $0x268] sm:$0xff]  }
 0x622   :  { %v9427_v9 = vpop.f32.mrb[63].mxu0  ;;  %9620 = vmatprep.subr.bf16.mxu0 %v11387_v56  ;;  %v10246_v8 = vld [vmem:[%s12063_s7 + $0x218] sm:$0xff]  }
 0x623   :  { %v5909_v9 = vld [vmem:[#allocation7 + $0xb] ss:$2 sm:$0x1] }
 0x624   :  { %v5911_v12 = vpack.c.bf16 %v5909_v9, %v5909_v9 }
 0x625   :  { %9621 = vmatpush3.bf16.msra.mxu0 %v10235_v18 }
 0x626   :  { %9622 = vmatprep.subr.bf16.mxu0 %v11387_v56 }
 0x629   :  { %9623 = vmatpush3.bf16.msra.mxu0 %v10237_v21 }
 0x62a   :  { %9648 = vmatprep.subr.bf16.mxu0 %v11387_v56  ;;  %v7982_v56 = vld [vmem:[%s12064_s6] ss:$0 sm:$0xff] }
 0x63f   :  { %v4626_v23 = vpop.f32.mrb[64].mxu0 }
 0x640   :  { %v4632_v24 = vadd.f32 %v4626_v23, %v4496_v6  ;;  %v9446_v27 = vpop.f32.mrb[65].mxu0  ;;  %v10244_v6 = vld [vmem:[%s12063_s7 + $0x210] sm:$0xff]  }
 0x641   :  { %v4629_v28 = vpop.f32.mrb[66].mxu0 }
 0x642   :  { %v9447_v29 = vpop.f32.mrb[67].mxu0  ;;  %v10249_v28 = vld [vmem:[%s12063_s7 + $0x1e8] sm:$0xff]  }
 0x643   :  { %v5910_v29 = vpack.c.bf16 %v5907_v15, %v5907_v15 }
 0x65a   :  { %v5205_v13 = vpop.f32.mrb[4].mxu1 }
 0x65b   :  { %v9526_v17 = vpop.f32.mrb[5].mxu1 }
 0x65c   :  { %v5208_v21 = vpop.f32.mrb[6].mxu1 }
 0x65f   :  { %v4763_v30 = vpop.f32.mrb[68].mxu0 }
 0x660   :  { %v4769_v31 = vadd.f32 %v4763_v30, %v4632_v24  ;;  %v9466_v32 = vpop.f32.mrb[69].mxu0  ;;  %v9527_v24 = vpop.f32.mrb[7].mxu1  ;;  %v5932_v30 = vunpack.c.l.b16 %v5911_v12 }
 0x661   :  { %v4766_v33 = vpop.f32.mrb[70].mxu0 }
 0x662   :  { %v9467_v34 = vpop.f32.mrb[71].mxu0  ;;  %v10250_v33 = vld [vmem:[%s12063_s7 + $0x228] sm:$0xff]  }
 0x663   :  { %v6029_v34 = vpack.c.bf16 %v6026_v20, %v6026_v20 }
 0x67f   :  { %v4900_v35 = vpop.f32.mrb[72].mxu0 }
 0x680   :  { %v4906_v36 = vadd.f32 %v4900_v35, %v4769_v31  ;;  %v9486_v37 = vpop.f32.mrb[73].mxu0  ;;  %v6051_v35 = vunpack.c.l.b16 %v6030_v16  ;;  %v10267_v16 = vld [vmem:[%s12063_s7 + $0x270] sm:$0xff]  }
 0x681   :  { %v4903_v38 = vpop.f32.mrb[74].mxu0 }
 0x682   :  { %v9487_v39 = vpop.f32.mrb[75].mxu0 }
 0x69a   :  { %v5420_v32 = vpop.f32.mrb[8].mxu1 }
 0x69b   :  { %v9566_v37 = vpop.f32.mrb[9].mxu1 }
 0x69c   :  { %v5423_v38 = vpop.f32.mrb[10].mxu1  ;;  %v10275_v37 = vld [vmem:[%s12063_s7 + $0x2d0] sm:$0xff]  }
 0x69d   :  { %v9567_v39 = vpop.f32.mrb[11].mxu1  ;;  %v10276_v38 = vld [vmem:[%s12063_s7 + $0x310] sm:$0xff]  }
 0x69e   :  { %v10277_v39 = vld [vmem:[%s12063_s7 + $0x2d8] sm:$0xff]  }
 0x69f   :  { %v5037_v40 = vpop.f32.mrb[76].mxu0 }
 0x6a0   :  { %v5043_v26 = vadd.f32 %v5037_v40, %v4906_v36  ;;  %v9506_v42 = vpop.f32.mrb[77].mxu0  ;;  %v10251_v40 = vld [vmem:[%s12063_s7 + $0x1f0] sm:$0xff]  }
 0x6a1   :  { %v5040_v43 = vpop.f32.mrb[78].mxu0  ;;  %v10252_v42 = vld [vmem:[%s12063_s7 + $0x230] sm:$0xff]  }
 0x6a2   :  { %v5051_v44 = vadd.f32 %v7982_v56, %v5043_v26  ;;  %v9507_v45 = vpop.f32.mrb[79].mxu0  ;;  %v5931_v56 = vunpack.c.l.b16 %v5910_v29  ;;  %v5933_v26 = vrot.slane %v5932_v30, 7  ;;  %v6050_v43 = vunpack.c.l.b16 %v6029_v34 }
 0x6a3   :  { %v10253_v45 = vld [vmem:[%s12063_s7 + $0x1f8] sm:$0xff]  }
 0x6a4   :  { %vm5052_vm6 = vcmp.gt.f32.partialorder %v5051_v44, 0.0  ;;  %v5053_v46 = vmul.f32 0.2, %v5051_v44 }
 0x6a6   :  { %v5054_v47 = vsel %vm5052_vm6, %v5051_v44, %v5053_v46  ;;  %v6052_v44 = vrot.slane %v6051_v35, 7  ;;  %v5934_v46 = vsel %vm5119_vm5, %v5933_v26, %v5931_v56  ;;  %v10273_v35 = vld [vmem:[%s12063_s7 + $0x2c8] sm:$0xff]   ;;  %v6508_v26 = vld [vmem:[#allocation7 + $0xc] ss:$2 sm:$0x1] }
 0x6a7   :  { %5063 = vst [vmem:[#allocation7 + $0x1] ss:$8 sps:$4 sm:$0x33] %v5054_v47   ;;  %5065 = vst [vmem:[#allocation6 + $0x3] ss:$8 sps:$4 sm:$0xcc] %v5054_v47  }
 0x6a8   :  { %v6388_v56 = vld [vmem:[#allocation6 + $0xf] ss:$2 sm:$0x1] }
 0x6ae   :  { %v5667_v48 = vld [vmem:[#allocation7 + $0x1] ss:$2 sm:$0x1]  ;;  %v5669_v49 = vld [vmem:[#allocation7 + $0x9] ss:$2 sm:$0x1] }
 0x6af   :  { %v5670_v50 = vpack.c.bf16 %v5667_v48, %v5667_v48  ;;  %v5671_v51 = vpack.c.bf16 %v5669_v49, %v5669_v49  ;;  %v5787_v52 = vld [vmem:[#allocation7 + $0x2] ss:$2 sm:$0x1]  ;;  %v5789_v53 = vld [vmem:[#allocation7 + $0xa] ss:$2 sm:$0x1]  ;;  %v6053_v49 = vsel %vm5119_vm5, %v6052_v44, %v6050_v43  ;;  %v6390_v43 = vpack.c.bf16 %v6388_v56, %v6388_v56 }
 0x6b0   :  { %v5790_v19 = vpack.c.bf16 %v5787_v52, %v5787_v52  ;;  %v5791_v54 = vpack.c.bf16 %v5789_v53, %v5789_v53  ;;  %v10254_v48 = vld [vmem:[%s12063_s7 + $0x238] sm:$0xff]   ;;  %v5935_v52 = vpack.c.b16 %v5934_v46, %v5934_v46  ;;  %v6146_v12 = vld [vmem:[#allocation6 + $0x5] ss:$2 sm:$0x1]  ;;  %v6510_v46 = vpack.c.bf16 %v6508_v26, %v6508_v26  ;;  %v10305_v56 = vld [vmem:[%s12063_s7 + $0x3d0] sm:$0xff]  }
 0x6b1   :  { %v5692_v55 = vunpack.c.l.b16 %v5671_v51  ;;  %v5691_v57 = vunpack.c.l.b16 %v5670_v50  ;;  %v6149_v17 = vpack.c.bf16 %v6146_v12, %v6146_v12  ;;  %v10280_v44 = vld [vmem:[%s12063_s7 + $0x320] sm:$0xff]   ;;  %v10306_v26 = vld [vmem:[%s12063_s7 + $0x3d8] sm:$0xff]  }
 0x6b2   :  { %v5812_v41 = vunpack.c.l.b16 %v5791_v54  ;;  %v5811_v59 = vunpack.c.l.b16 %v5790_v19  ;;  %v6054_v19 = vpack.c.b16 %v6053_v49, %v6053_v49  ;;  %v10255_v54 = vld [vmem:[%s12063_s7 + $0x240] sm:$0xff]  }
 0x6b3   :  { %v5693_v58 = vrot.slane %v5692_v55, 7  ;;  %v10256_v55 = vld [vmem:[%s12063_s7 + $0x280] sm:$0xff]   ;;  %v6170_v24 = vunpack.c.l.b16 %v6149_v17  ;;  %v6746_v17 = vld [vmem:[#allocation7 + $0x6] ss:$2 sm:$0x1] }
 0x6b4   :  { %v5813_v60 = vrot.slane %v5812_v41, 7  ;;  %v10257_v41 = vld [vmem:[%s12063_s7 + $0x248] sm:$0xff]   ;;  %v10295_v12 = vld [vmem:[%s12063_s7 + $0x360] sm:$0xff]  }
 0x6b5   :  { %v5694_v25 = vsel %vm5119_vm5, %v5693_v58, %v5691_v57  ;;  %v10258_v57 = vld [vmem:[%s12063_s7 + $0x288] sm:$0xff]   ;;  %v10259_v58 = vld [vmem:[%s12063_s7 + $0x250] sm:$0xff]  }
 0x6b6   :  { %v5695_v62 = vpack.c.b16 %v5694_v25, %v5694_v25  ;;  %v5814_v63 = vsel %vm5119_vm5, %v5813_v60, %v5811_v59  ;;  %v10260_v59 = vld [vmem:[%s12063_s7 + $0x290] sm:$0xff]  }
 0x6b7   :  { %v5815_v1 = vpack.c.b16 %v5814_v63, %v5814_v63 }
 0x6b8   :  { %9625 = vmatmul.mubr.bf16.vlgmr.msra.gmra.mrb[88].mxu0 %v5695_v62  ;;  %v10261_v62 = vld [vmem:[%s12063_s7 + $0x258] sm:$0xff]  }
 0x6b9   :  { %9645 = vmatmul.mubr.bf16.vlgmr.msra.gmra.mrb[16].mxu1 %v5815_v1  ;;  %9649 = vmatpush3.bf16.msra.mxu0 %v10239_v61 }
 0x6ba   :  { %9669 = vmatpush3.bf16.msra.mxu1 %v10240_v0  ;;  %9650 = vmatprep.subr.bf16.mxu0 %v11705_v3  ;;  %v5659_v47 = vpop.f32.mrb[12].mxu1  ;;  %v10262_v0 = vld [vmem:[%s12063_s7 + $0x298] sm:$0xff]  }
 0x6bb   :  { %9670 = vmatprep.subr.bf16.mxu1 %v11705_v3  ;;  %9664 = vmatprep.mubr.msk.bf16.mxu0 %vm10332_vm0, %v11705_v3  ;;  %v9606_v50 = vpop.f32.mrb[13].mxu1 }
 0x6bc   :  { %9684 = vmatprep.mubr.msk.bf16.mxu1 %vm10332_vm0, %v11705_v3  ;;  %v5662_v51 = vpop.f32.mrb[14].mxu1  ;;  %v6411_v50 = vunpack.c.l.b16 %v6390_v43  ;;  %v10307_v43 = vld [vmem:[%s12063_s7 + $0x3e0] sm:$0xff]  }
 0x6bd   :  { %9651 = vmatpush3.bf16.msra.mxu0 %v10241_v2  ;;  %v9607_v53 = vpop.f32.mrb[15].mxu1  ;;  %v10282_v51 = vld [vmem:[%s12063_s7 + $0x328] sm:$0xff]  }
 0x6be   :  { %9671 = vmatpush3.bf16.msra.mxu1 %v10242_v4  ;;  %9652 = vmatprep.subr.bf16.mxu0 %v11705_v3  ;;  %v6148_v4 = vld [vmem:[#allocation6 + $0xd] ss:$2 sm:$0x1]  ;;  %v6531_v53 = vunpack.c.l.b16 %v6510_v46 }
 0x6bf   :  { %9672 = vmatprep.subr.bf16.mxu1 %v11705_v3  ;;  %v5301_v18 = vpop.f32.mrb[80].mxu0  ;;  %v10308_v46 = vld [vmem:[%s12063_s7 + $0x3e8] sm:$0xff]  }
 0x6c0   :  { %v5302_v22 = vadd.f32 %v5301_v18, %v5205_v13  ;;  %v9546_v23 = vpop.f32.mrb[81].mxu0  ;;  %v10268_v18 = vld [vmem:[%s12063_s7 + $0x2b0] sm:$0xff]  }
 0x6c1   :  { %9653 = vmatpush3.bf16.msra.mxu0 %v10243_v5  ;;  %v5304_v27 = vpop.f32.mrb[82].mxu0  ;;  %v10263_v5 = vld [vmem:[%s12063_s7 + $0x260] sm:$0xff]   ;;  %v10269_v23 = vld [vmem:[%s12063_s7 + $0x278] sm:$0xff]  }
 0x6c2   :  { %9673 = vmatpush3.bf16.msra.mxu1 %v10244_v6  ;;  %9654 = vmatprep.subr.bf16.mxu0 %v11705_v3  ;;  %v9547_v31 = vpop.f32.mrb[83].mxu0  ;;  %v5426_v36 = vadd.f32 %v5420_v32, %v5302_v22  ;;  %v6268_v6 = vld [vmem:[#allocation6 + $0xe] ss:$2 sm:$0x1]  ;;  %v10270_v27 = vld [vmem:[%s12063_s7 + $0x2b8] sm:$0xff]  }
 0x6c3   :  { %9674 = vmatprep.subr.bf16.mxu1 %v11705_v3  ;;  %v6270_v9 = vpack.c.bf16 %v6268_v6, %v6268_v6  ;;  %v10271_v31 = vld [vmem:[%s12063_s7 + $0x2c0] sm:$0xff]   ;;  %v10291_v6 = vld [vmem:[%s12063_s7 + $0x350] sm:$0xff]  }
 0x6c5   :  { %9655 = vmatpush3.bf16.msra.mxu0 %v10245_v7  ;;  %v10264_v7 = vld [vmem:[%s12063_s7 + $0x2a0] sm:$0xff]   ;;  %v6291_v15 = vunpack.c.l.b16 %v6270_v9  ;;  %v10294_v9 = vld [vmem:[%s12063_s7 + $0x398] sm:$0xff]  }
 0x6c6   :  { %9675 = vmatpush3.bf16.msra.mxu1 %v10246_v8  ;;  %9656 = vmatprep.subr.bf16.mxu0 %v11705_v3  ;;  %v6150_v8 = vpack.c.bf16 %v6148_v4, %v6148_v4  ;;  %v10289_v4 = vld [vmem:[%s12063_s7 + $0x348] sm:$0xff]  }
 0x6c7   :  { %9676 = vmatprep.subr.bf16.mxu1 %v11705_v3  ;;  %v6292_v22 = vrot.slane %v6291_v15, 7  ;;  %v6626_v15 = vld [vmem:[#allocation7 + $0x5] ss:$2 sm:$0x1] }
 0x6c8   :  { %v6171_v13 = vunpack.c.l.b16 %v6150_v8  ;;  %v10293_v8 = vld [vmem:[%s12063_s7 + $0x358] sm:$0xff]  }
 0x6c9   :  { %9657 = vmatpush3.bf16.msra.mxu0 %v10247_v11  ;;  %v10266_v11 = vld [vmem:[%s12063_s7 + $0x2a8] sm:$0xff]  }
 0x6ca   :  { %9677 = vmatpush3.bf16.msra.mxu1 %v10248_v14  ;;  %9658 = vmatprep.subr.bf16.mxu0 %v11705_v3  ;;  %v6266_v14 = vld [vmem:[#allocation6 + $0x6] ss:$2 sm:$0x1]  ;;  %v6172_v21 = vrot.slane %v6171_v13, 7 }
 0x6cb   :  { %9678 = vmatprep.subr.bf16.mxu1 %v11705_v3  ;;  %v6269_v20 = vpack.c.bf16 %v6266_v14, %v6266_v14  ;;  %v10296_v14 = vld [vmem:[%s12063_s7 + $0x3a0] sm:$0xff]  }
 0x6cc   :  { %v6173_v29 = vsel %vm5119_vm5, %v6172_v21, %v6170_v24 }
 0x6cd   :  { %9659 = vmatpush3.bf16.msra.mxu0 %v10249_v28  ;;  %v6290_v28 = vunpack.c.l.b16 %v6269_v20  ;;  %v6174_v32 = vpack.c.b16 %v6173_v29, %v6173_v29  ;;  %v6629_v20 = vpack.c.bf16 %v6626_v15, %v6626_v15 }
 0x6ce   :  { %9679 = vmatpush3.bf16.msra.mxu1 %v10250_v33  ;;  %9660 = vmatprep.subr.bf16.mxu0 %v11705_v3  ;;  %v10272_v33 = vld [vmem:[%s12063_s7 + $0x300] sm:$0xff]  }
 0x6cf   :  { %9680 = vmatprep.subr.bf16.mxu1 %v11705_v3  ;;  %v6293_v30 = vsel %vm5119_vm5, %v6292_v22, %v6290_v28  ;;  %v10298_v22 = vld [vmem:[%s12063_s7 + $0x3a8] sm:$0xff]   ;;  %v6650_v28 = vunpack.c.l.b16 %v6629_v20 }
 0x6d0   :  { %v6294_v34 = vpack.c.b16 %v6293_v30, %v6293_v30  ;;  %v10300_v30 = vld [vmem:[%s12063_s7 + $0x3b0] sm:$0xff]  }
 0x6d1   :  { %9661 = vmatpush3.bf16.msra.mxu0 %v10251_v40  ;;  %v10278_v40 = vld [vmem:[%s12063_s7 + $0x318] sm:$0xff]  }
 0x6d2   :  { %9681 = vmatpush3.bf16.msra.mxu1 %v10252_v42  ;;  %9662 = vmatprep.subr.bf16.mxu0 %v11705_v3  ;;  %v10279_v42 = vld [vmem:[%s12063_s7 + $0x2e0] sm:$0xff]  }
 0x6d3   :  { %9682 = vmatprep.subr.bf16.mxu1 %v11705_v3 }
 0x6d5   :  { %9663 = vmatpush3.bf16.msra.mxu0 %v10253_v45  ;;  %v6386_v45 = vld [vmem:[#allocation6 + $0x7] ss:$2 sm:$0x1] }
 0x6d6   :  { %9683 = vmatpush3.bf16.msra.mxu1 %v10254_v48  ;;  %9688 = vmatprep.subr.bf16.mxu0 %v11705_v3  ;;  %v10281_v48 = vld [vmem:[%s12063_s7 + $0x2e8] sm:$0xff]   ;;  %v6389_v49 = vpack.c.bf16 %v6386_v45, %v6386_v45  ;;  %v6866_v45 = vld [vmem:[#allocation7 + $0x7] ss:$2 sm:$0x1] }
 0x6d7   :  { %9708 = vmatprep.subr.bf16.mxu1 %v11705_v3 }
 0x6d8   :  { %9665 = vmatmul.mubr.bf16.vlgmr.msra.gmra.mrb[92].mxu0 %v5935_v52 }
 0x6d9   :  { %9685 = vmatmul.mubr.bf16.vlgmr.msra.gmra.mrb[20].mxu1 %v6054_v19  ;;  %9689 = vmatpush3.bf16.msra.mxu0 %v10255_v54  ;;  %v10283_v19 = vld [vmem:[%s12063_s7 + $0x2f0] sm:$0xff]   ;;  %v6410_v54 = vunpack.c.l.b16 %v6389_v49 }
 0x6da   :  { %9709 = vmatpush3.bf16.msra.mxu1 %v10256_v55  ;;  %9690 = vmatprep.subr.bf16.mxu0 %v11705_v3  ;;  %v6412_v55 = vrot.slane %v6411_v50, 7  ;;  %v10309_v49 = vld [vmem:[%s12063_s7 + $0x3f0] sm:$0xff]  }
 0x6db   :  { %9710 = vmatprep.subr.bf16.mxu1 %v11705_v3  ;;  %9704 = vmatprep.mubr.msk.bf16.mxu0 %vm10332_vm0, %v11705_v3 }
 0x6dc   :  { %9724 = vmatprep.mubr.msk.bf16.mxu1 %vm10332_vm0, %v11705_v3 }
 0x6dd   :  { %9691 = vmatpush3.bf16.msra.mxu0 %v10257_v41  ;;  %v10284_v41 = vld [vmem:[%s12063_s7 + $0x330] sm:$0xff]  }
 0x6de   :  { %9711 = vmatpush3.bf16.msra.mxu1 %v10258_v57  ;;  %9692 = vmatprep.subr.bf16.mxu0 %v11705_v3 }
 0x6df   :  { %9712 = vmatprep.subr.bf16.mxu1 %v11705_v3  ;;  %v5540_v60 = vpop.f32.mrb[84].mxu0 }
 0x6e0   :  { %v5546_v25 = vadd.f32 %v5540_v60, %v5426_v36  ;;  %v9586_v61 = vpop.f32.mrb[85].mxu0  ;;  %v10274_v36 = vld [vmem:[%s12063_s7 + $0x308] sm:$0xff]   ;;  %v6413_v60 = vsel %vm5119_vm5, %v6412_v55, %v6410_v54 }
 0x6e1   :  { %9693 = vmatpush3.bf16.msra.mxu0 %v10259_v58  ;;  %v5543_v63 = vpop.f32.mrb[86].mxu0  ;;  %v6532_v58 = vrot.slane %v6531_v53, 7 }
 0x6e2   :  { %9713 = vmatpush3.bf16.msra.mxu1 %v10260_v59  ;;  %9694 = vmatprep.subr.bf16.mxu0 %v11705_v3  ;;  %v11801_v1 = vadd.f32 %v5659_v47, %v5546_v25  ;;  %v9587_v2 = vpop.f32.mrb[87].mxu0  ;;  %v6506_v47 = vld [vmem:[#allocation7 + $0x4] ss:$2 sm:$0x1]  ;;  %v10285_v59 = vld [vmem:[%s12063_s7 + $0x2f8] sm:$0xff]   ;;  %v10287_v63 = vld [vmem:[%s12063_s7 + $0x340] sm:$0xff]  }
 0x6e3   :  { %9714 = vmatprep.subr.bf16.mxu1 %v11705_v3  ;;  %v6509_v52 = vpack.c.bf16 %v6506_v47, %v6506_v47  ;;  %v10286_v25 = vld [vmem:[%s12063_s7 + $0x338] sm:$0xff]   ;;  %v10288_v2 = vld [vmem:[%s12063_s7 + $0x380] sm:$0xff]   ;;  %v6869_v47 = vpack.c.bf16 %v6866_v45, %v6866_v45 }
 0x6e5   :  { %9695 = vmatpush3.bf16.msra.mxu0 %v10261_v62  ;;  %v6530_v57 = vunpack.c.l.b16 %v6509_v52  ;;  %v6414_v62 = vpack.c.b16 %v6413_v60, %v6413_v60  ;;  %v6890_v50 = vunpack.c.l.b16 %v6869_v47  ;;  %v10310_v52 = vld [vmem:[%s12063_s7 + $0x3f8] sm:$0xff]  }
 0x6e6   :  { %9715 = vmatpush3.bf16.msra.mxu1 %v10262_v0  ;;  %9696 = vmatprep.subr.bf16.mxu0 %v11705_v3 }
 0x6e7   :  { %9716 = vmatprep.subr.bf16.mxu1 %v11705_v3  ;;  %v6533_v61 = vsel %vm5119_vm5, %v6532_v58, %v6530_v57 }
 0x6e8   :  { %v6534_v0 = vpack.c.b16 %v6533_v61, %v6533_v61 }
 0x6e9   :  { %9697 = vmatpush3.bf16.msra.mxu0 %v10263_v5  ;;  %v10290_v5 = vld [vmem:[%s12063_s7 + $0x388] sm:$0xff]  }
 0x6ea   :  { %9717 = vmatpush3.bf16.msra.mxu1 %v10264_v7  ;;  %9698 = vmatprep.subr.bf16.mxu0 %v11705_v3  ;;  %v10292_v7 = vld [vmem:[%s12063_s7 + $0x390] sm:$0xff]  }
 0x6eb   :  { %9718 = vmatprep.subr.bf16.mxu1 %v11705_v3 }
 0x6ed   :  { %9699 = vmatpush3.bf16.msra.mxu0 %v10265_v10  ;;  %v6628_v10 = vld [vmem:[#allocation7 + $0xd] ss:$2 sm:$0x1] }
 0x6ee   :  { %9719 = vmatpush3.bf16.msra.mxu1 %v10266_v11  ;;  %9700 = vmatprep.subr.bf16.mxu0 %v11705_v3  ;;  %v6748_v11 = vld [vmem:[#allocation7 + $0xe] ss:$2 sm:$0x1]  ;;  %v6630_v13 = vpack.c.bf16 %v6628_v10, %v6628_v10 }
 0x6ef   :  { %9720 = vmatprep.subr.bf16.mxu1 %v11705_v3 }
 0x6f0   :  { %v6651_v21 = vunpack.c.l.b16 %v6630_v13  ;;  %v10314_v13 = vld [vmem:[%s12065_s9 + $0x18] sm:$0xff]  }
 0x6f1   :  { %9701 = vmatpush3.bf16.msra.mxu0 %v10267_v16  ;;  %v6750_v16 = vpack.c.bf16 %v6748_v11, %v6748_v11  ;;  %v10312_v11 = vld [vmem:[%s12065_s9 + $0x8] sm:$0xff]  }
 0x6f2   :  { %9721 = vmatpush3.bf16.msra.mxu1 %v10268_v18  ;;  %9702 = vmatprep.subr.bf16.mxu0 %v11705_v3  ;;  %v10297_v18 = vld [vmem:[%s12063_s7 + $0x368] sm:$0xff]   ;;  %v6652_v29 = vrot.slane %v6651_v21, 7 }
 0x6f3   :  { %9722 = vmatprep.subr.bf16.mxu1 %v11705_v3  ;;  %v6771_v24 = vunpack.c.l.b16 %v6750_v16 }
 0x6f5   :  { %9703 = vmatpush3.bf16.msra.mxu0 %v10269_v23  ;;  %v6749_v23 = vpack.c.bf16 %v6746_v17, %v6746_v17 }
 0x6f6   :  { %9723 = vmatpush3.bf16.msra.mxu1 %v10270_v27  ;;  %9728 = vmatprep.subr.bf16.mxu0 %v11705_v3  ;;  %v10299_v27 = vld [vmem:[%s12063_s7 + $0x370] sm:$0xff]  }
 0x6f7   :  { %9748 = vmatprep.subr.bf16.mxu1 %v11705_v3 }
 0x6f8   :  { %9705 = vmatmul.mubr.bf16.vlgmr.msra.gmra.mrb[96].mxu0 %v6174_v32  ;;  %v6772_v32 = vrot.slane %v6771_v24, 7  ;;  %v10315_v24 = vld [vmem:[%s12065_s9 + $0x20] sm:$0xff]  }
 0x6f9   :  { %9725 = vmatmul.mubr.bf16.vlgmr.msra.gmra.mrb[24].mxu1 %v6294_v34  ;;  %9729 = vmatpush3.bf16.msra.mxu0 %v10271_v31  ;;  %v6770_v31 = vunpack.c.l.b16 %v6749_v23  ;;  %v6653_v34 = vsel %vm5119_vm5, %v6652_v29, %v6650_v28  ;;  %v10316_v28 = vld [vmem:[%s12065_s9 + $0x28] sm:$0xff]   ;;  %v10317_v29 = vld [vmem:[%s12065_s9 + $0x30] sm:$0xff]  }
 0x6fa   :  { %9749 = vmatpush3.bf16.msra.mxu1 %v10272_v33  ;;  %9730 = vmatprep.subr.bf16.mxu0 %v11705_v3  ;;  %v10301_v33 = vld [vmem:[%s12063_s7 + $0x378] sm:$0xff]  }
 0x6fb   :  { %9750 = vmatprep.subr.bf16.mxu1 %v11705_v3  ;;  %9744 = vmatprep.mubr.msk.bf16.mxu0 %vm10332_vm0, %v11705_v3 }
 0x6fc   :  { %9764 = vmatprep.mubr.msk.bf16.mxu1 %vm10332_vm0, %v11705_v3 }
 0x6fd   :  { %9731 = vmatpush3.bf16.msra.mxu0 %v10273_v35  ;;  %v10302_v35 = vld [vmem:[%s12063_s7 + $0x3b8] sm:$0xff]  }
 0x6fe   :  { %9751 = vmatpush3.bf16.msra.mxu1 %v10274_v36  ;;  %9732 = vmatprep.subr.bf16.mxu0 %v11705_v3  ;;  %v6773_v36 = vsel %vm5119_vm5, %v6772_v32, %v6770_v31 }
 0x6ff   :  { %9752 = vmatprep.subr.bf16.mxu1 %v11705_v3 }
 0x701   :  { %9733 = vmatpush3.bf16.msra.mxu0 %v10275_v37  ;;  %v6654_v37 = vpack.c.b16 %v6653_v34, %v6653_v34 }
 0x702   :  { %9753 = vmatpush3.bf16.msra.mxu1 %v10276_v38  ;;  %9734 = vmatprep.subr.bf16.mxu0 %v11705_v3  ;;  %v10303_v38 = vld [vmem:[%s12063_s7 + $0x3c0] sm:$0xff]  }
 0x703   :  { %9754 = vmatprep.subr.bf16.mxu1 %v11705_v3 }
 0x705   :  { %9735 = vmatpush3.bf16.msra.mxu0 %v10277_v39  ;;  %v6774_v39 = vpack.c.b16 %v6773_v36, %v6773_v36 }
 0x706   :  { %9755 = vmatpush3.bf16.msra.mxu1 %v10278_v40  ;;  %9736 = vmatprep.subr.bf16.mxu0 %v11705_v3  ;;  %v10304_v40 = vld [vmem:[%s12063_s7 + $0x3c8] sm:$0xff]  }
 0x707   :  { %9756 = vmatprep.subr.bf16.mxu1 %v11705_v3 }
 0x709   :  { %9737 = vmatpush3.bf16.msra.mxu0 %v10279_v42  ;;  %v6868_v42 = vld [vmem:[#allocation7 + $0xf] ss:$2 sm:$0x1] }
 0x70a   :  { %9757 = vmatpush3.bf16.msra.mxu1 %v10280_v44  ;;  %9738 = vmatprep.subr.bf16.mxu0 %v11705_v3  ;;  %v6870_v44 = vpack.c.bf16 %v6868_v42, %v6868_v42 }
 0x70b   :  { %9758 = vmatprep.subr.bf16.mxu1 %v11705_v3 }
 0x70d   :  { %9739 = vmatpush3.bf16.msra.mxu0 %v10281_v48  ;;  %v6891_v48 = vunpack.c.l.b16 %v6870_v44 }
 0x70e   :  { %9759 = vmatpush3.bf16.msra.mxu1 %v10282_v51  ;;  %9740 = vmatprep.subr.bf16.mxu0 %v11705_v3 }
 0x70f   :  { %9760 = vmatprep.subr.bf16.mxu1 %v11705_v3  ;;  %v6892_v51 = vrot.slane %v6891_v48, 7 }
 0x711   :  { %9741 = vmatpush3.bf16.msra.mxu0 %v10283_v19  ;;  %v6893_v53 = vsel %vm5119_vm5, %v6892_v51, %v6890_v50  ;;  %v8351_v50 = vld [vmem:[%s12066_s8] ss:$0 sm:$0xff] }
 0x712   :  { %9761 = vmatpush3.bf16.msra.mxu1 %v10284_v41  ;;  %9742 = vmatprep.subr.bf16.mxu0 %v11705_v3  ;;  %v6894_v19 = vpack.c.b16 %v6893_v53, %v6893_v53 }
 0x713   :  { %9762 = vmatprep.subr.bf16.mxu1 %v11705_v3 }
 0x715   :  { %9743 = vmatpush3.bf16.msra.mxu0 %v10285_v59 }
 0x716   :  { %9763 = vmatpush3.bf16.msra.mxu1 %v10286_v25  ;;  %9768 = vmatprep.subr.bf16.mxu0 %v11705_v3 }
 0x717   :  { %9788 = vmatprep.subr.bf16.mxu1 %v11705_v3 }
 0x718   :  { %9745 = vmatmul.mubr.bf16.vlgmr.msra.gmra.mrb[100].mxu0 %v6414_v62 }
 0x719   :  { %9769 = vmatpush3.bf16.msra.mxu0 %v10287_v63  ;;  %9765 = vmatmul.mubr.bf16.vlgmr.msra.gmra.mrb[28].mxu1 %v6534_v0 }
 0x71a   :  { %9789 = vmatpush3.bf16.msra.mxu1 %v10288_v2  ;;  %9770 = vmatprep.subr.bf16.mxu0 %v11705_v3 }
 0x71b   :  { %9790 = vmatprep.subr.bf16.mxu1 %v11705_v3  ;;  %9784 = vmatprep.mubr.msk.bf16.mxu0 %vm10332_vm0, %v11705_v3 }
 0x71c   :  { %9804 = vmatprep.mubr.msk.bf16.mxu1 %vm10332_vm0, %v11705_v3 }
 0x71d   :  { %9771 = vmatpush3.bf16.msra.mxu0 %v10289_v4 }
 0x71e   :  { %9791 = vmatpush3.bf16.msra.mxu1 %v10290_v5  ;;  %9772 = vmatprep.subr.bf16.mxu0 %v11705_v3 }
 0x71f   :  { %9792 = vmatprep.subr.bf16.mxu1 %v11705_v3 }
 0x721   :  { %9773 = vmatpush3.bf16.msra.mxu0 %v10291_v6 }
 0x722   :  { %9793 = vmatpush3.bf16.msra.mxu1 %v10292_v7  ;;  %9774 = vmatprep.subr.bf16.mxu0 %v11705_v3 }
 0x723   :  { %9794 = vmatprep.subr.bf16.mxu1 %v11705_v3 }
 0x725   :  { %9775 = vmatpush3.bf16.msra.mxu0 %v10293_v8 }
 0x726   :  { %9795 = vmatpush3.bf16.msra.mxu1 %v10294_v9  ;;  %9776 = vmatprep.subr.bf16.mxu0 %v11705_v3 }
 0x727   :  { %9796 = vmatprep.subr.bf16.mxu1 %v11705_v3 }
 0x729   :  { %9777 = vmatpush3.bf16.msra.mxu0 %v10295_v12  ;;  %v10313_v12 = vld [vmem:[%s12065_s9 + $0x10] sm:$0xff]  }
 0x72a   :  { %9797 = vmatpush3.bf16.msra.mxu1 %v10296_v14  ;;  %9778 = vmatprep.subr.bf16.mxu0 %v11705_v3 }
 0x72b   :  { %9798 = vmatprep.subr.bf16.mxu1 %v11705_v3 }
 0x72d   :  { %9779 = vmatpush3.bf16.msra.mxu0 %v10297_v18 }
 0x72e   :  { %9799 = vmatpush3.bf16.msra.mxu1 %v10298_v22  ;;  %9780 = vmatprep.subr.bf16.mxu0 %v11705_v3 }
 0x72f   :  { %9800 = vmatprep.subr.bf16.mxu1 %v11705_v3 }
 0x731   :  { %9781 = vmatpush3.bf16.msra.mxu0 %v10299_v27 }
 0x732   :  { %9801 = vmatpush3.bf16.msra.mxu1 %v10300_v30  ;;  %9782 = vmatprep.subr.bf16.mxu0 %v11705_v3  ;;  %v10318_v30 = vld [vmem:[%s12065_s9 + $0x38] sm:$0xff]  }
 0x733   :  { %9802 = vmatprep.subr.bf16.mxu1 %v11705_v3 }
 0x735   :  { %9783 = vmatpush3.bf16.msra.mxu0 %v10301_v33 }
 0x736   :  { %9803 = vmatpush3.bf16.msra.mxu1 %v10302_v35  ;;  %9808 = vmatprep.subr.bf16.mxu0 %v11705_v3 }
 0x737   :  { %9828 = vmatprep.subr.bf16.mxu1 %v11705_v3 }
 0x738   :  { %9785 = vmatmul.mubr.bf16.vlgmr.msra.gmra.mrb[104].mxu0 %v6654_v37 }
 0x739   :  { %9809 = vmatpush3.bf16.msra.mxu0 %v10303_v38  ;;  %9805 = vmatmul.mubr.bf16.vlgmr.msra.gmra.mrb[32].mxu1 %v6774_v39 }
 0x73a   :  { %9810 = vmatprep.subr.bf16.mxu0 %v11705_v3  ;;  %9824 = vmatprep.mubr.msk.bf16.mxu0 %vm10332_vm0, %v11705_v3 }
 0x73b   :  { %9844 = vmatprep.mubr.msk.bf16.mxu1 %vm10332_vm0, %v11705_v3 }
 0x73d   :  { %9811 = vmatpush3.bf16.msra.mxu0 %v10304_v40 }
 0x73e   :  { %9812 = vmatprep.subr.bf16.mxu0 %v11705_v3 }
 0x741   :  { %9813 = vmatpush3.bf16.msra.mxu0 %v10305_v56 }
 0x742   :  { %9814 = vmatprep.subr.bf16.mxu0 %v11705_v3 }
 0x745   :  { %9815 = vmatpush3.bf16.msra.mxu0 %v10306_v26 }
 0x746   :  { %9816 = vmatprep.subr.bf16.mxu0 %v11705_v3 }
 0x749   :  { %9817 = vmatpush3.bf16.msra.mxu0 %v10307_v43 }
 0x74a   :  { %9818 = vmatprep.subr.bf16.mxu0 %v11705_v3 }
 0x74d   :  { %9819 = vmatpush3.bf16.msra.mxu0 %v10308_v46 }
 0x74e   :  { %9820 = vmatprep.subr.bf16.mxu0 %v11705_v3 }
 0x751   :  { %9821 = vmatpush3.bf16.msra.mxu0 %v10309_v49 }
 0x752   :  { %9822 = vmatprep.subr.bf16.mxu0 %v11705_v3 }
 0x755   :  { %9823 = vmatpush3.bf16.msra.mxu0 %v10310_v52 }
 0x758   :  { %9825 = vmatmul.mubr.bf16.vlgmr.msra.gmra.mrb[108].mxu0 %v6894_v19 }
 0x78b   :  { %v5779_v54 = vpop.f32.mrb[88].mxu0 }
 0x78c   :  { %v5785_v55 = vadd.f32 %v5779_v54, %v11801_v1  ;;  %v5899_v41 = vpop.f32.mrb[16].mxu1  ;;  %v9626_v57 = vpop.f32.mrb[89].mxu0  ;;  %v10311_v1 = vld [vmem:[%s12065_s9] sm:$0xff]  }
 0x78d   :  { %v9646_v58 = vpop.f32.mrb[17].mxu1  ;;  %v5782_v59 = vpop.f32.mrb[90].mxu0  ;;  %9829 = vmatpush3.bf16.msra.mxu1 %v10311_v1 }
 0x78e   :  { %v5905_v60 = vadd.f32 %v5899_v41, %v5785_v55  ;;  %v5902_v25 = vpop.f32.mrb[18].mxu1  ;;  %v9627_v61 = vpop.f32.mrb[91].mxu0  ;;  %9830 = vmatprep.subr.bf16.mxu1 %v11705_v3 }
 0x78f   :  { %v9647_v62 = vpop.f32.mrb[19].mxu1 }
 0x791   :  { %9831 = vmatpush3.bf16.msra.mxu1 %v10312_v11 }
 0x792   :  { %9832 = vmatprep.subr.bf16.mxu1 %v11705_v3 }
 0x795   :  { %9833 = vmatpush3.bf16.msra.mxu1 %v10313_v12 }
 0x796   :  { %9834 = vmatprep.subr.bf16.mxu1 %v11705_v3 }
 0x799   :  { %9835 = vmatpush3.bf16.msra.mxu1 %v10314_v13 }
 0x79a   :  { %9836 = vmatprep.subr.bf16.mxu1 %v11705_v3 }
 0x79d   :  { %9837 = vmatpush3.bf16.msra.mxu1 %v10315_v24 }
 0x79e   :  { %9838 = vmatprep.subr.bf16.mxu1 %v11705_v3 }
 0x7a1   :  { %9839 = vmatpush3.bf16.msra.mxu1 %v10316_v28 }
 0x7a2   :  { %9840 = vmatprep.subr.bf16.mxu1 %v11705_v3 }
 0x7a5   :  { %9841 = vmatpush3.bf16.msra.mxu1 %v10317_v29 }
 0x7a6   :  { %9842 = vmatprep.subr.bf16.mxu1 %v11705_v3 }
 0x7a9   :  { %9843 = vmatpush3.bf16.msra.mxu1 %v10318_v30 }
 0x7ab   :  { %v6019_v63 = vpop.f32.mrb[92].mxu0 }
 0x7ac   :  { %v6025_v0 = vadd.f32 %v6019_v63, %v5905_v60  ;;  %v9666_v2 = vpop.f32.mrb[93].mxu0  ;;  %v6138_v4 = vpop.f32.mrb[20].mxu1  ;;  %v8353_v60 = vld [vmem:[%s12067_s10] ss:$0 sm:$0xff] }
 0x7ad   :  { %v6022_v5 = vpop.f32.mrb[94].mxu0  ;;  %v9686_v6 = vpop.f32.mrb[21].mxu1 }
 0x7ae   :  { %v6144_v7 = vadd.f32 %v6138_v4, %v6025_v0  ;;  %v9667_v8 = vpop.f32.mrb[95].mxu0  ;;  %v6141_v9 = vpop.f32.mrb[22].mxu1 }
 0x7af   :  { %v9687_v10 = vpop.f32.mrb[23].mxu1 }
 0x7cb   :  { %v6258_v14 = vpop.f32.mrb[96].mxu0 }
 0x7cc   :  { %v6264_v15 = vadd.f32 %v6258_v14, %v6144_v7  ;;  %v6378_v16 = vpop.f32.mrb[24].mxu1  ;;  %v9706_v17 = vpop.f32.mrb[97].mxu0 }
 0x7cd   :  { %v9726_v18 = vpop.f32.mrb[25].mxu1  ;;  %v6261_v20 = vpop.f32.mrb[98].mxu0 }
 0x7ce   :  { %v6384_v21 = vadd.f32 %v6378_v16, %v6264_v15  ;;  %v6381_v22 = vpop.f32.mrb[26].mxu1  ;;  %v9707_v23 = vpop.f32.mrb[99].mxu0 }
 0x7cf   :  { %v9727_v27 = vpop.f32.mrb[27].mxu1 }
 0x7eb   :  { %v6498_v31 = vpop.f32.mrb[100].mxu0 }
 0x7ec   :  { %v6504_v32 = vadd.f32 %v6498_v31, %v6384_v21  ;;  %v9746_v33 = vpop.f32.mrb[101].mxu0  ;;  %v6618_v34 = vpop.f32.mrb[28].mxu1 }
 0x7ed   :  { %v6501_v35 = vpop.f32.mrb[102].mxu0  ;;  %v9766_v36 = vpop.f32.mrb[29].mxu1 }
 0x7ee   :  { %v6624_v37 = vadd.f32 %v6618_v34, %v6504_v32  ;;  %v9747_v38 = vpop.f32.mrb[103].mxu0  ;;  %v6621_v39 = vpop.f32.mrb[30].mxu1 }
 0x7ef   :  { %v9767_v40 = vpop.f32.mrb[31].mxu1 }
 0x80b   :  { %v6738_v56 = vpop.f32.mrb[104].mxu0 }
 0x80c   :  { %v6744_v26 = vadd.f32 %v6738_v56, %v6624_v37  ;;  %v9786_v42 = vpop.f32.mrb[105].mxu0  ;;  %v6858_v43 = vpop.f32.mrb[32].mxu1 }
 0x80d   :  { %v6741_v44 = vpop.f32.mrb[106].mxu0  ;;  %v9806_v45 = vpop.f32.mrb[33].mxu1 }
 0x80e   :  { %v6864_v46 = vadd.f32 %v6858_v43, %v6744_v26  ;;  %v9787_v47 = vpop.f32.mrb[107].mxu0  ;;  %v6861_v3 = vpop.f32.mrb[34].mxu1 }
 0x80f   :  { %v9807_v48 = vpop.f32.mrb[35].mxu1 }
 0x82b   :  { %v6978_v49 = vpop.f32.mrb[108].mxu0 }
 0x82c   :  { %v6984_v51 = vadd.f32 %v6978_v49, %v6864_v46  ;;  %v9826_v52 = vpop.f32.mrb[109].mxu0 }
 0x82d   :  { %v6981_v53 = vpop.f32.mrb[110].mxu0 }
 0x82e   :  { %v6992_v19 = vadd.f32 %v8351_v50, %v6984_v51  ;;  %v9827_v54 = vpop.f32.mrb[111].mxu0 }
 0x830   :  { %v8352_v55 = vmul.f32 -1.442695, %v6992_v19 }
 0x832   :  { %10319 = vpow2.f32 %v8352_v55 }
 0x83c   :  { %v10320_v41 = vpop.eup %10319 }
 0x83d   :  { %v6996_v57 = vadd.f32 1.0, %v10320_v41 }
 0x83f   :  { %10321 = vrcp.f32 %v6996_v57 }
 0x849   :  { %v10322_v58 = vpop.eup %10321 }
 0x84a   :  { %v6999_v59 = vpack.c.bf16 %v10322_v58, %v10322_v58 }
 0x84c   :  { %9845 = vmatmul.mubr.bf16.vlgmr.msra.gmra.mrb[36].mxu1 %v6999_v59 }
 0x91f   :  { %v7105_v25 = vpop.f32.mrb[36].mxu1 }
 0x920   :  { %v7106_v61 = vadd.f32 %v8353_v60, %v7105_v25  ;;  %v9846_v62 = vpop.f32.mrb[37].mxu1 }
 0x921   :  { %v7108_v63 = vpop.f32.mrb[38].mxu1 }
 0x922   :  { %v8362_v0 = vmul.f32 -1.442695, %v7106_v61  ;;  %v9847_v2 = vpop.f32.mrb[39].mxu1 }
 0x924   :  { %10323 = vpow2.f32 %v8362_v0 }
 0x92e   :  { %v10324_v4 = vpop.eup %10323 }
 0x92f   :  { %v7114_v5 = vadd.f32 1.0, %v10324_v4 }
 0x931   :  { %10325 = vrcp.f32 %v7114_v5 }
 0x93b   :  { %v10326_v6 = vpop.eup %10325 }
 0x93c   :  { %7117 = vst [vmem:[%s12068_s11] sm:$0x3] %v10326_v6 }

</bundles_post_ra>
